<compile_context>
chip_gen: v7x
topology: tpu7x:2x2x1
jax: 0.10.0
libtpu: 0.0.40
codegen_flags: <defaults>
</compile_context>

<pallas_src>
import functools
import math

import jax
import jax.numpy as jnp
from jax.experimental import pallas as pl
from jax.experimental.pallas import tpu as pltpu

# ----- module hyper-parameters (Recycling defaults) ---------------------------
D_MSA = 256
D_PAIR = 128
D_STATE = 32
N_RBF = 36                           # rbf(D): gaussians on linspace(2, 22, 36)
RBF_MIN, RBF_MAX = 2.0, 22.0
RBF_SIGMA = (RBF_MAX - RBF_MIN) / N_RBF
LN_EPS = 1e-5                        # nn.LayerNorm default


# ----------------------------- in-kernel helpers ------------------------------
def _layer_norm(x, g, b):
    mu = jnp.mean(x, axis=-1, keepdims=True)
    xc = x - mu
    var = jnp.mean(xc * xc, axis=-1, keepdims=True)
    return xc * jax.lax.rsqrt(var + LN_EPS) * g + b


def _virtual_cb(get):
    """Virtual C-beta from flattened [N | Ca | C] coords.

    `get(k)` returns the k-th of the 9 flattened coordinates as a 2-D vector
    (either a (rows, 1) column or a (1, cols) row); the math is elementwise so
    the same code yields column- or row-oriented Cb components.
    """
    nx, ny, nz = get(0), get(1), get(2)
    cax, cay, caz = get(3), get(4), get(5)
    cx, cy, cz = get(6), get(7), get(8)
    bx, by, bz = cax - nx, cay - ny, caz - nz          # b = Ca - N
    ex, ey, ez = cx - cax, cy - cay, cz - caz          # c = C - Ca
    ax = by * ez - bz * ey                             # a = b x c
    ay = bz * ex - bx * ez
    az = bx * ey - by * ex
    cbx = -0.58273431 * ax + 0.56802827 * bx - 0.54067466 * ex + cax
    cby = -0.58273431 * ay + 0.56802827 * by - 0.54067466 * ey + cay
    cbz = -0.58273431 * az + 0.56802827 * bz - 0.54067466 * ez + caz
    return cbx, cby, cbz


# ------------------------ stage 1: state prep (per batch) ---------------------
def _state_prep_kernel(state_ref, g_state_ref, b_state_ref, w_left_ref,
                       w_right_ref, b_proj_ref,
                       state_out_ref, left_ref, right_ref):
    f32 = jnp.float32
    sn = _layer_norm(state_ref[0].astype(f32),
                     g_state_ref[...], b_state_ref[...])              # (L, ds)
    state_out_ref[0] = sn.astype(state_out_ref.dtype)
    # split proj_dist: cat(rbf, left, right) @ W == rbf@W_rbf + sn_i@Wl + sn_j@Wr
    # bias is folded into `left` (broadcast over j later).
    left_ref[0] = (jnp.dot(sn, w_left_ref[...], preferred_element_type=f32)
                   + b_proj_ref[...]).astype(left_ref.dtype)          # (L, dp)
    right_ref[0] = jnp.dot(sn, w_right_ref[...],
                           preferred_element_type=f32).astype(right_ref.dtype)


# ---------------------- stage 2: fused pair/msa main kernel -------------------
def _recycling_kernel(pair_ref, msa_ref, left_ref, right_ref,
                      xyz_t_ref, xyz_i_ref,
                      mu_ref, g_msa_ref, b_msa_ref, g_pair_ref, b_pair_ref,
                      w_rbf_ref,
                      pair_out_ref, msa_out_ref):
    f32 = jnp.float32

    # ---- msa LayerNorm (this grid step's tile of rows) ----
    msa_out_ref[0] = _layer_norm(msa_ref[0].astype(f32), g_msa_ref[...],
                                 b_msa_ref[...]).astype(msa_out_ref.dtype)

    # ---- virtual C-beta + pairwise distances (explicit differences, f32) ----
    xi = xyz_i_ref[0].astype(f32)                                     # (TI, 9)
    xj = xyz_t_ref[0].astype(f32)                                     # (9, L)
    cbx_i, cby_i, cbz_i = _virtual_cb(lambda k: xi[:, k:k + 1])       # (TI, 1)
    cbx_j, cby_j, cbz_j = _virtual_cb(lambda k: xj[k:k + 1, :])       # (1, L)
    dx = cbx_i - cbx_j
    dy = cby_i - cby_j
    dz = cbz_i - cbz_j
    dist = jnp.sqrt(dx * dx + dy * dy + dz * dz)                      # (TI, L)

    ti, ncols = dist.shape
    n_rbf = mu_ref.shape[-1]
    d_pair = w_rbf_ref.shape[-1]

    # ---- RBF featurization + projection to d_pair ----
    t = (dist[:, :, None]
         - mu_ref[...].reshape(1, 1, n_rbf)) * (1.0 / RBF_SIGMA)      # (TI, L, nr)
    rbf = jnp.exp(-(t * t))
    rbf_proj = jnp.dot(rbf.reshape(ti * ncols, n_rbf), w_rbf_ref[...],
                       preferred_element_type=f32).reshape(ti, ncols, d_pair)

    # ---- LN(pair) + distance embedding in one fused residual sum ----
    pn = _layer_norm(pair_ref[0].astype(f32),
                     g_pair_ref[...], b_pair_ref[...])                # (TI, L, dp)
    left_i = left_ref[0].astype(f32)                                  # (TI, dp), bias folded
    right_j = right_ref[0].astype(f32)                                # (L, dp)
    pair_out_ref[0] = (pn + rbf_proj + left_i[:, None, :]
                       + right_j[None, :, :]).astype(pair_out_ref.dtype)


# ------------------------------ tiling heuristics ------------------------------
def _vmem_capacity_bytes():
    try:
        cap = int(getattr(pltpu.get_tpu_info(), "vmem_capacity_bytes"))
        if cap > 0:
            return cap
    except Exception:
        pass
    return 64 * 1024 * 1024          # v7x floor (the tightest modern generation)


def _choose_tile_i(L, B, pair_itemsize, budget_bytes):
    """Largest row tile whose per-step working set fits the VMEM budget.

    Working set per grid step (bytes):
      pair in + out, double-buffered : 4 * ti * L * D_PAIR * pair_itemsize
      f32 intermediates (pn, rbf_proj, fused-sum temp): ~3 * ti * L * D_PAIR * 4
      rbf features (t, exp)          : ~2 * ti * L * N_RBF * 4
    """
    per_row = L * (D_PAIR * (4 * pair_itemsize + 3 * 4) + 2 * N_RBF * 4)
    cands = sorted({d for d in range(8, L + 1, 8) if L % d == 0} | {L})
    fitting = [c for c in cands if c * per_row <= budget_bytes]
    tile = fitting[-1] if fitting else cands[0]
    # keep >= 2 grid steps overall so both v7x TensorCores get work
    if B * (L // tile) < 2:
        smaller = [c for c in cands if c < tile]
        if smaller:
            tile = smaller[-1]
    return tile


# ------------------------------- pallas wrapper --------------------------------
def recycling_forward(seq, msa, pair, xyz, state, params, *, tile_i=None):
    del seq  # unused by the reference forward (only its shape matters)
    B, L = pair.shape[:2]
    d_pair, d_msa, d_state = pair.shape[-1], msa.shape[-1], state.shape[-1]
    n_rbf = params["w_rbf"].shape[0]
    p = params

    # ---------- stage 1: LN(state) + left/right projections (once / batch) ----
    prep_params = [p["g_state"], p["b_state"], p["w_left"], p["w_right"],
                   p["b_proj"]]

    def prep_full(a):
        return pl.BlockSpec(a.shape, lambda b, _nd=a.ndim: (0,) * _nd)

    state_n, left, right = pl.pallas_call(
        _state_prep_kernel,
        grid=(B,),
        in_specs=([pl.BlockSpec((1, L, d_state), lambda b: (b, 0, 0))]
                  + [prep_full(a) for a in prep_params]),
        out_specs=(pl.BlockSpec((1, L, d_state), lambda b: (b, 0, 0)),
                   pl.BlockSpec((1, L, d_pair), lambda b: (b, 0, 0)),
                   pl.BlockSpec((1, L, d_pair), lambda b: (b, 0, 0))),
        out_shape=(jax.ShapeDtypeStruct(state.shape, state.dtype),
                   jax.ShapeDtypeStruct((B, L, d_pair), jnp.float32),
                   jax.ShapeDtypeStruct((B, L, d_pair), jnp.float32)),
        compiler_params=pltpu.CompilerParams(
            dimension_semantics=("parallel",)),
    )(state, *prep_params)

    # ---------- stage 2: fused pair / msa streaming kernel ---------------------
    vmem_cap = _vmem_capacity_bytes()
    if tile_i is None:
        tile_i = _choose_tile_i(L, B, pair.dtype.itemsize,
                                int(vmem_cap * 0.60))
    assert L % tile_i == 0, "L must be divisible by tile_i"
    n_i = L // tile_i

    # tiny glue: flatten the three backbone atoms and build a transposed view
    # ((B, 9, L) is ~B*L*36 bytes) so in-kernel distance math needs no transposes.
    xyz3 = xyz[:, :, :3, :].reshape(B, L, 9).astype(jnp.float32)
    xyz3_t = jnp.transpose(xyz3, (0, 2, 1))                           # (B, 9, L)

    plist = [p["mu"], p["g_msa"], p["b_msa"], p["g_pair"], p["b_pair"],
             p["w_rbf"]]

    def full_spec(a):
        return pl.BlockSpec(a.shape, lambda b, i, _nd=a.ndim: (0,) * _nd)

    in_specs = (
        [pl.BlockSpec((1, tile_i, L, d_pair), lambda b, i: (b, i, 0, 0)),   # pair
         pl.BlockSpec((1, tile_i, d_msa), lambda b, i: (b, i, 0)),          # msa
         pl.BlockSpec((1, tile_i, d_pair), lambda b, i: (b, i, 0)),         # left tile
         pl.BlockSpec((1, L, d_pair), lambda b, i: (b, 0, 0)),              # right full
         pl.BlockSpec((1, 9, L), lambda b, i: (b, 0, 0)),                   # xyz^T full
         pl.BlockSpec((1, tile_i, 9), lambda b, i: (b, i, 0))]              # xyz tile
        + [full_spec(a) for a in plist])

    out_specs = (
        pl.BlockSpec((1, tile_i, L, d_pair), lambda b, i: (b, i, 0, 0)),
        pl.BlockSpec((1, tile_i, d_msa), lambda b, i: (b, i, 0)),
    )
    out_shape = (
        jax.ShapeDtypeStruct(pair.shape, pair.dtype),
        jax.ShapeDtypeStruct(msa.shape, msa.dtype),
    )

    cost = pl.CostEstimate(
        flops=int(B * L * L * (2 * n_rbf * d_pair + 12 * d_pair + 10 * n_rbf)
                  + 4 * B * L * d_state * d_pair
                  + 8 * B * L * d_msa),
        transcendentals=int(B * L * L * (n_rbf + 1)),
        bytes_accessed=int(2 * pair.size * pair.dtype.itemsize
                           + 2 * msa.size * msa.dtype.itemsize
                           + 4 * B * L * (2 * d_pair + 2 * d_state + 18)),
    )

    pair_o, msa_o = pl.pallas_call(
        _recycling_kernel,
        grid=(B, n_i),
        in_specs=in_specs,
        out_specs=out_specs,
        out_shape=out_shape,
        compiler_params=pltpu.CompilerParams(
            dimension_semantics=("parallel", "parallel"),
            vmem_limit_bytes=int(min(vmem_cap * 0.90, 128 * 1024 * 1024))),
        cost_estimate=cost,
    )(pair, msa, left, right, xyz3_t, xyz3, *plist)

    return msa_o, pair_o, state_n


# ------------------------- deterministic parameter init ------------------------
def init_params(key):
    ks = jax.random.split(key, 10)
    fan_in = N_RBF + 2 * D_STATE                  # proj_dist: Linear(100, d_pair)
    std = 1.0 / math.sqrt(fan_in)                 # lecun-normal scale

    def nrm(k, shape, scale=1.0):
        return scale * jax.random.normal(k, shape, jnp.float32)

    return {
        # rbf centers (constant buffer, not learned)
        "mu": jnp.linspace(RBF_MIN, RBF_MAX, N_RBF,
                           dtype=jnp.float32).reshape(1, N_RBF),
        # LayerNorm affines slightly randomized (module init is ones/zeros) so
        # the validation exercises the affine wiring.
        "g_msa": 1.0 + nrm(ks[0], (1, D_MSA), 0.1),
        "b_msa": nrm(ks[1], (1, D_MSA), 0.1),
        "g_pair": 1.0 + nrm(ks[2], (1, D_PAIR), 0.1),
        "b_pair": nrm(ks[3], (1, D_PAIR), 0.1),
        "g_state": 1.0 + nrm(ks[4], (1, D_STATE), 0.1),
        "b_state": nrm(ks[5], (1, D_STATE), 0.1),
        # proj_dist weight pre-transposed to (in, out) and split along the input
        # axis into [rbf | left(state_i) | right(state_j)] pieces.
        "w_rbf": nrm(ks[6], (N_RBF, D_PAIR), std),
        "w_left": nrm(ks[7], (D_STATE, D_PAIR), std),
        "w_right": nrm(ks[8], (D_STATE, D_PAIR), std),
        "b_proj": jnp.zeros((1, D_PAIR), jnp.float32),   # reset_parameter zeros it
    }


# ------------------------- pure-JAX reference (validation) ---------------------
def _ref_layer_norm(x, g, b):
    mu = jnp.mean(x, axis=-1, keepdims=True)
    var = jnp.mean((x - mu) ** 2, axis=-1, keepdims=True)
    return (x - mu) / jnp.sqrt(var + LN_EPS) * g.reshape(-1) + b.reshape(-1)


def _ref_forward(msa, pair, xyz, state, params):
    B, L = pair.shape[:2]
    sn = _ref_layer_norm(state, params["g_state"], params["b_state"])
    left = jnp.broadcast_to(sn[:, :, None, :], (B, L, L, sn.shape[-1]))
    right = jnp.broadcast_to(sn[:, None, :, :], (B, L, L, sn.shape[-1]))
    n_at, ca, c_at = xyz[:, :, 0], xyz[:, :, 1], xyz[:, :, 2]
    bb = ca - n_at
    cc = c_at - ca
    aa = jnp.cross(bb, cc)
    cb = -0.58273431 * aa + 0.56802827 * bb - 0.54067466 * cc + ca
    diff = cb[:, :, None, :] - cb[:, None, :, :]
    dmat = jnp.sqrt(jnp.sum(diff * diff, axis=-1))                 # torch.cdist
    mu = jnp.linspace(RBF_MIN, RBF_MAX, N_RBF)
    rbf_feat = jnp.exp(-(((dmat[..., None] - mu) / RBF_SIGMA) ** 2))
    feat = jnp.concatenate([rbf_feat, left, right], axis=-1)
    w_full = jnp.concatenate(
        [params["w_rbf"], params["w_left"], params["w_right"]], axis=0)
    dist = jnp.einsum("blmc,cd->blmd", feat, w_full,
                      precision=jax.lax.Precision.HIGHEST) + params["b_proj"].reshape(-1)
    pair_out = dist + _ref_layer_norm(pair, params["g_pair"], params["b_pair"])
    msa_out = _ref_layer_norm(msa, params["g_msa"], params["b_msa"])
    return msa_out, pair_out, sn


# -------------------------------------- main -----------------------------------
if __name__ == "__main__":
    key = jax.random.PRNGKey(0)
    k_seq, k_msa, k_pair, k_xyz, k_state, k_par = jax.random.split(key, 6)

    B, L = 2, 16
    seq = jax.random.randint(k_seq, (B, L), 0, 21, dtype=jnp.int32)
    msa = jax.random.normal(k_msa, (B, L, D_MSA), jnp.float32)
    pair = jax.random.normal(k_pair, (B, L, L, D_PAIR), jnp.float32)
    xyz = 3.0 * jax.random.normal(k_xyz, (B, L, 3, 3), jnp.float32)
    state = jax.random.normal(k_state, (B, L, D_STATE), jnp.float32)
    params = init_params(k_par)

    fwd = jax.jit(functools.partial(recycling_forward))
    msa_o, pair_o, state_o = fwd(seq, msa, pair, xyz, state, params)
    (msa_o, pair_o, state_o) = jax.block_until_ready((msa_o, pair_o, state_o))

    assert msa_o.shape == msa.shape
    assert pair_o.shape == pair.shape
    assert state_o.shape == state.shape
    assert bool(jnp.all(jnp.isfinite(msa_o)))
    assert bool(jnp.all(jnp.isfinite(pair_o)))
    assert bool(jnp.all(jnp.isfinite(state_o)))

    msa_r, pair_r, state_r = _ref_forward(msa, pair, xyz, state, params)
    err = max(float(jnp.max(jnp.abs(msa_o - msa_r))),
              float(jnp.max(jnp.abs(pair_o - pair_r))),
              float(jnp.max(jnp.abs(state_o - state_r))))
    # Tolerance covers possible bf16-input MXU passes inside the kernel's small
    # projection matmuls; the reference uses Precision.HIGHEST.
    assert err < 3e-2, f"max abs err too large: {err}"
    print("KERNEL_OK")
</pallas_src>

<mosaic_0001>
module attributes {stable_mosaic.version = 11 : i64} {
  func.func @_state_prep_kernel(%arg0: i32, %arg1: memref<1x16x32xf32, #tpu.memory_space<vmem>>, %arg2: memref<1x32xf32, #tpu.memory_space<vmem>>, %arg3: memref<1x32xf32, #tpu.memory_space<vmem>>, %arg4: memref<32x128xf32, #tpu.memory_space<vmem>>, %arg5: memref<32x128xf32, #tpu.memory_space<vmem>>, %arg6: memref<1x128xf32, #tpu.memory_space<vmem>>, %arg7: memref<1x16x32xf32, #tpu.memory_space<vmem>>, %arg8: memref<1x16x128xf32, #tpu.memory_space<vmem>>, %arg9: memref<1x16x128xf32, #tpu.memory_space<vmem>>) attributes {dimension_semantics = [#tpu.dimension_semantics<parallel>], iteration_bounds = array<i64: 2>, scalar_prefetch = 0 : i64, scratch_operands = 0 : i64, tpu.core_type = #tpu.core_type<tc>, window_params = [{transform_indices = @transform_0, window_bounds = array<i64: 1, 16, 32>}, {pipeline_mode = #tpu.pipeline_mode<synchronous>, transform_indices = @transform_1, window_bounds = array<i64: 1, 32>}, {pipeline_mode = #tpu.pipeline_mode<synchronous>, transform_indices = @transform_2, window_bounds = array<i64: 1, 32>}, {pipeline_mode = #tpu.pipeline_mode<synchronous>, transform_indices = @transform_3, window_bounds = array<i64: 32, 128>}, {pipeline_mode = #tpu.pipeline_mode<synchronous>, transform_indices = @transform_4, window_bounds = array<i64: 32, 128>}, {pipeline_mode = #tpu.pipeline_mode<synchronous>, transform_indices = @transform_5, window_bounds = array<i64: 1, 128>}, {transform_indices = @transform_6, window_bounds = array<i64: 1, 16, 32>}, {transform_indices = @transform_7, window_bounds = array<i64: 1, 16, 128>}, {transform_indices = @transform_8, window_bounds = array<i64: 1, 16, 128>}]} {
    %c0 = arith.constant 0 : index
    %c0_0 = arith.constant 0 : index
    %c0_1 = arith.constant 0 : index
    %0 = vector.load %arg1[%c0, %c0_0, %c0_1] : memref<1x16x32xf32, #tpu.memory_space<vmem>>, vector<1x16x32xf32>
    %1 = vector.shape_cast %0 : vector<1x16x32xf32> to vector<16x32xf32>
    %c0_2 = arith.constant 0 : index
    %c0_3 = arith.constant 0 : index
    %2 = vector.load %arg2[%c0_2, %c0_3] : memref<1x32xf32, #tpu.memory_space<vmem>>, vector<1x32xf32>
    %c0_4 = arith.constant 0 : index
    %c0_5 = arith.constant 0 : index
    %3 = vector.load %arg3[%c0_4, %c0_5] : memref<1x32xf32, #tpu.memory_space<vmem>>, vector<1x32xf32>
    %cst = arith.constant dense<0.000000e+00> : vector<16xf32>
    %4 = vector.multi_reduction <add>, %1, %cst [1] : vector<16x32xf32> to vector<16xf32>
    %5 = vector.shape_cast %4 : vector<16xf32> to vector<16x1xf32>
    %cst_6 = arith.constant 3.200000e+01 : f32
    %6 = vector.broadcast %cst_6 : f32 to vector<16x1xf32>
    %7 = arith.divf %5, %6 : vector<16x1xf32>
    %8 = vector.broadcast %7 : vector<16x1xf32> to vector<16x32xf32>
    %9 = arith.subf %1, %8 : vector<16x32xf32>
    %10 = arith.mulf %9, %9 : vector<16x32xf32>
    %cst_7 = arith.constant dense<0.000000e+00> : vector<16xf32>
    %11 = vector.multi_reduction <add>, %10, %cst_7 [1] : vector<16x32xf32> to vector<16xf32>
    %12 = vector.shape_cast %11 : vector<16xf32> to vector<16x1xf32>
    %cst_8 = arith.constant 3.200000e+01 : f32
    %13 = vector.broadcast %cst_8 : f32 to vector<16x1xf32>
    %14 = arith.divf %12, %13 : vector<16x1xf32>
    %cst_9 = arith.constant 9.99999974E-6 : f32
    %15 = vector.broadcast %cst_9 : f32 to vector<16x1xf32>
    %16 = arith.addf %14, %15 : vector<16x1xf32>
    %17 = math.rsqrt %16 : vector<16x1xf32>
    %18 = vector.broadcast %17 : vector<16x1xf32> to vector<16x32xf32>
    %19 = arith.mulf %9, %18 : vector<16x32xf32>
    %20 = vector.broadcast %2 : vector<1x32xf32> to vector<16x32xf32>
    %21 = arith.mulf %19, %20 : vector<16x32xf32>
    %22 = vector.broadcast %3 : vector<1x32xf32> to vector<16x32xf32>
    %23 = arith.addf %21, %22 : vector<16x32xf32>
    %c0_10 = arith.constant 0 : index
    %c0_11 = arith.constant 0 : index
    %c0_12 = arith.constant 0 : index
    %24 = vector.load %arg7[%c0_10, %c0_11, %c0_12] : memref<1x16x32xf32, #tpu.memory_space<vmem>>, vector<1x16x32xf32>
    %25 = vector.shape_cast %24 : vector<1x16x32xf32> to vector<16x32xf32>
    %26 = vector.shape_cast %23 : vector<16x32xf32> to vector<1x16x32xf32>
    tpu.vector_store %arg7[%c0_10, %c0_11, %c0_12], %26 {strides = array<i32>} : memref<1x16x32xf32, #tpu.memory_space<vmem>>, vector<1x16x32xf32>,
    %c0_13 = arith.constant 0 : index
    %c0_14 = arith.constant 0 : index
    %27 = vector.load %arg4[%c0_13, %c0_14] : memref<32x128xf32, #tpu.memory_space<vmem>>, vector<32x128xf32>
    %cst_15 = arith.constant dense<0.000000e+00> : vector<16x128xf32>
    %28 = tpu.matmul %23, %27, %cst_15 {dimension_numbers = #tpu.dot_dimension_numbers<[1], [0], [0], [1], [0, 0, 1, 1], [], []>} : vector<16x32xf32>, vector<32x128xf32>, vector<16x128xf32> -> vector<16x128xf32>
    %c0_16 = arith.constant 0 : index
    %c0_17 = arith.constant 0 : index
    %29 = vector.load %arg6[%c0_16, %c0_17] : memref<1x128xf32, #tpu.memory_space<vmem>>, vector<1x128xf32>
    %30 = vector.broadcast %29 : vector<1x128xf32> to vector<16x128xf32>
    %31 = arith.addf %28, %30 : vector<16x128xf32>
    %c0_18 = arith.constant 0 : index
    %c0_19 = arith.constant 0 : index
    %c0_20 = arith.constant 0 : index
    %32 = vector.load %arg8[%c0_18, %c0_19, %c0_20] : memref<1x16x128xf32, #tpu.memory_space<vmem>>, vector<1x16x128xf32>
    %33 = vector.shape_cast %32 : vector<1x16x128xf32> to vector<16x128xf32>
    %34 = vector.shape_cast %31 : vector<16x128xf32> to vector<1x16x128xf32>
    tpu.vector_store %arg8[%c0_18, %c0_19, %c0_20], %34 {strides = array<i32>} : memref<1x16x128xf32, #tpu.memory_space<vmem>>, vector<1x16x128xf32>,
    %c0_21 = arith.constant 0 : index
    %c0_22 = arith.constant 0 : index
    %35 = vector.load %arg5[%c0_21, %c0_22] : memref<32x128xf32, #tpu.memory_space<vmem>>, vector<32x128xf32>
    %cst_23 = arith.constant dense<0.000000e+00> : vector<16x128xf32>
    %36 = tpu.matmul %23, %35, %cst_23 {dimension_numbers = #tpu.dot_dimension_numbers<[1], [0], [0], [1], [0, 0, 1, 1], [], []>} : vector<16x32xf32>, vector<32x128xf32>, vector<16x128xf32> -> vector<16x128xf32>
    %c0_24 = arith.constant 0 : index
    %c0_25 = arith.constant 0 : index
    %c0_26 = arith.constant 0 : index
    %37 = vector.load %arg9[%c0_24, %c0_25, %c0_26] : memref<1x16x128xf32, #tpu.memory_space<vmem>>, vector<1x16x128xf32>
    %38 = vector.shape_cast %37 : vector<1x16x128xf32> to vector<16x128xf32>
    %39 = vector.shape_cast %36 : vector<16x128xf32> to vector<1x16x128xf32>
    tpu.vector_store %arg9[%c0_24, %c0_25, %c0_26], %39 {strides = array<i32>} : memref<1x16x128xf32, #tpu.memory_space<vmem>>, vector<1x16x128xf32>,
    return
  }
  func.func @transform_0(%arg0: i32) -> (i32, i32, i32) {
    %c0_i32 = arith.constant 0 : i32
    %c0_i32_0 = arith.constant 0 : i32
    %c0_i32_1 = arith.constant 0 : i32
    return %arg0, %c0_i32, %c0_i32_0 : i32, i32, i32
  }
  func.func @transform_1(%arg0: i32) -> (i32, i32) {
    %c0_i32 = arith.constant 0 : i32
    %c0_i32_0 = arith.constant 0 : i32
    %c0_i32_1 = arith.constant 0 : i32
    return %c0_i32, %c0_i32_0 : i32, i32
  }
  func.func @transform_2(%arg0: i32) -> (i32, i32) {
    %c0_i32 = arith.constant 0 : i32
    %c0_i32_0 = arith.constant 0 : i32
    %c0_i32_1 = arith.constant 0 : i32
    return %c0_i32, %c0_i32_0 : i32, i32
  }
  func.func @transform_3(%arg0: i32) -> (i32, i32) {
    %c0_i32 = arith.constant 0 : i32
    %c0_i32_0 = arith.constant 0 : i32
    %c0_i32_1 = arith.constant 0 : i32
    return %c0_i32, %c0_i32_0 : i32, i32
  }
  func.func @transform_4(%arg0: i32) -> (i32, i32) {
    %c0_i32 = arith.constant 0 : i32
    %c0_i32_0 = arith.constant 0 : i32
    %c0_i32_1 = arith.constant 0 : i32
    return %c0_i32, %c0_i32_0 : i32, i32
  }
  func.func @transform_5(%arg0: i32) -> (i32, i32) {
    %c0_i32 = arith.constant 0 : i32
    %c0_i32_0 = arith.constant 0 : i32
    %c0_i32_1 = arith.constant 0 : i32
    return %c0_i32, %c0_i32_0 : i32, i32
  }
  func.func @transform_6(%arg0: i32) -> (i32, i32, i32) {
    %c0_i32 = arith.constant 0 : i32
    %c0_i32_0 = arith.constant 0 : i32
    %c0_i32_1 = arith.constant 0 : i32
    return %arg0, %c0_i32, %c0_i32_0 : i32, i32, i32
  }
  func.func @transform_7(%arg0: i32) -> (i32, i32, i32) {
    %c0_i32 = arith.constant 0 : i32
    %c0_i32_0 = arith.constant 0 : i32
    %c0_i32_1 = arith.constant 0 : i32
    return %arg0, %c0_i32, %c0_i32_0 : i32, i32, i32
  }
  func.func @transform_8(%arg0: i32) -> (i32, i32, i32) {
    %c0_i32 = arith.constant 0 : i32
    %c0_i32_0 = arith.constant 0 : i32
    %c0_i32_1 = arith.constant 0 : i32
    return %arg0, %c0_i32, %c0_i32_0 : i32, i32, i32
  }
}

module attributes {stable_mosaic.version = 11 : i64} {
  func.func @_recycling_kernel(%arg0: i32, %arg1: i32, %arg2: memref<1x16x16x128xf32, #tpu.memory_space<vmem>>, %arg3: memref<1x16x256xf32, #tpu.memory_space<vmem>>, %arg4: memref<1x16x128xf32, #tpu.memory_space<vmem>>, %arg5: memref<1x16x128xf32, #tpu.memory_space<vmem>>, %arg6: memref<1x9x16xf32, #tpu.memory_space<vmem>>, %arg7: memref<1x16x9xf32, #tpu.memory_space<vmem>>, %arg8: memref<1x36xf32, #tpu.memory_space<vmem>>, %arg9: memref<1x256xf32, #tpu.memory_space<vmem>>, %arg10: memref<1x256xf32, #tpu.memory_space<vmem>>, %arg11: memref<1x128xf32, #tpu.memory_space<vmem>>, %arg12: memref<1x128xf32, #tpu.memory_space<vmem>>, %arg13: memref<36x128xf32, #tpu.memory_space<vmem>>, %arg14: memref<1x16x16x128xf32, #tpu.memory_space<vmem>>, %arg15: memref<1x16x256xf32, #tpu.memory_space<vmem>>) attributes {dimension_semantics = [#tpu.dimension_semantics<parallel>, #tpu.dimension_semantics<parallel>], iteration_bounds = array<i64: 2, 1>, scalar_prefetch = 0 : i64, scratch_operands = 0 : i64, tpu.core_type = #tpu.core_type<tc>, window_params = [{transform_indices = @transform_0, window_bounds = array<i64: 1, 16, 16, 128>}, {transform_indices = @transform_1, window_bounds = array<i64: 1, 16, 256>}, {transform_indices = @transform_2, window_bounds = array<i64: 1, 16, 128>}, {transform_indices = @transform_3, window_bounds = array<i64: 1, 16, 128>}, {transform_indices = @transform_4, window_bounds = array<i64: 1, 9, 16>}, {transform_indices = @transform_5, window_bounds = array<i64: 1, 16, 9>}, {pipeline_mode = #tpu.pipeline_mode<synchronous>, transform_indices = @transform_6, window_bounds = array<i64: 1, 36>}, {pipeline_mode = #tpu.pipeline_mode<synchronous>, transform_indices = @transform_7, window_bounds = array<i64: 1, 256>}, {pipeline_mode = #tpu.pipeline_mode<synchronous>, transform_indices = @transform_8, window_bounds = array<i64: 1, 256>}, {pipeline_mode = #tpu.pipeline_mode<synchronous>, transform_indices = @transform_9, window_bounds = array<i64: 1, 128>}, {pipeline_mode = #tpu.pipeline_mode<synchronous>, transform_indices = @transform_10, window_bounds = array<i64: 1, 128>}, {pipeline_mode = #tpu.pipeline_mode<synchronous>, transform_indices = @transform_11, window_bounds = array<i64: 36, 128>}, {transform_indices = @transform_12, window_bounds = array<i64: 1, 16, 16, 128>}, {transform_indices = @transform_13, window_bounds = array<i64: 1, 16, 256>}]} {
    %c0 = arith.constant 0 : index
    %c0_0 = arith.constant 0 : index
    %c0_1 = arith.constant 0 : index
    %0 = vector.load %arg3[%c0, %c0_0, %c0_1] : memref<1x16x256xf32, #tpu.memory_space<vmem>>, vector<1x16x256xf32>
    %1 = vector.shape_cast %0 : vector<1x16x256xf32> to vector<16x256xf32>
    %c0_2 = arith.constant 0 : index
    %c0_3 = arith.constant 0 : index
    %2 = vector.load %arg9[%c0_2, %c0_3] : memref<1x256xf32, #tpu.memory_space<vmem>>, vector<1x256xf32>
    %c0_4 = arith.constant 0 : index
    %c0_5 = arith.constant 0 : index
    %3 = vector.load %arg10[%c0_4, %c0_5] : memref<1x256xf32, #tpu.memory_space<vmem>>, vector<1x256xf32>
    %cst = arith.constant dense<0.000000e+00> : vector<16xf32>
    %4 = vector.multi_reduction <add>, %1, %cst [1] : vector<16x256xf32> to vector<16xf32>
    %5 = vector.shape_cast %4 : vector<16xf32> to vector<16x1xf32>
    %cst_6 = arith.constant 2.560000e+02 : f32
    %6 = vector.broadcast %cst_6 : f32 to vector<16x1xf32>
    %7 = arith.divf %5, %6 : vector<16x1xf32>
    %8 = vector.broadcast %7 : vector<16x1xf32> to vector<16x256xf32>
    %9 = arith.subf %1, %8 : vector<16x256xf32>
    %10 = arith.mulf %9, %9 : vector<16x256xf32>
    %cst_7 = arith.constant dense<0.000000e+00> : vector<16xf32>
    %11 = vector.multi_reduction <add>, %10, %cst_7 [1] : vector<16x256xf32> to vector<16xf32>
    %12 = vector.shape_cast %11 : vector<16xf32> to vector<16x1xf32>
    %cst_8 = arith.constant 2.560000e+02 : f32
    %13 = vector.broadcast %cst_8 : f32 to vector<16x1xf32>
    %14 = arith.divf %12, %13 : vector<16x1xf32>
    %cst_9 = arith.constant 9.99999974E-6 : f32
    %15 = vector.broadcast %cst_9 : f32 to vector<16x1xf32>
    %16 = arith.addf %14, %15 : vector<16x1xf32>
    %17 = math.rsqrt %16 : vector<16x1xf32>
    %18 = vector.broadcast %17 : vector<16x1xf32> to vector<16x256xf32>
    %19 = arith.mulf %9, %18 : vector<16x256xf32>
    %20 = vector.broadcast %2 : vector<1x256xf32> to vector<16x256xf32>
    %21 = arith.mulf %19, %20 : vector<16x256xf32>
    %22 = vector.broadcast %3 : vector<1x256xf32> to vector<16x256xf32>
    %23 = arith.addf %21, %22 : vector<16x256xf32>
    %c0_10 = arith.constant 0 : index
    %c0_11 = arith.constant 0 : index
    %c0_12 = arith.constant 0 : index
    %24 = vector.load %arg15[%c0_10, %c0_11, %c0_12] : memref<1x16x256xf32, #tpu.memory_space<vmem>>, vector<1x16x256xf32>
    %25 = vector.shape_cast %24 : vector<1x16x256xf32> to vector<16x256xf32>
    %26 = vector.shape_cast %23 : vector<16x256xf32> to vector<1x16x256xf32>
    tpu.vector_store %arg15[%c0_10, %c0_11, %c0_12], %26 {strides = array<i32>} : memref<1x16x256xf32, #tpu.memory_space<vmem>>, vector<1x16x256xf32>,
    %c0_13 = arith.constant 0 : index
    %c0_14 = arith.constant 0 : index
    %c0_15 = arith.constant 0 : index
    %27 = vector.load %arg7[%c0_13, %c0_14, %c0_15] : memref<1x16x9xf32, #tpu.memory_space<vmem>>, vector<1x16x9xf32>
    %28 = vector.shape_cast %27 : vector<1x16x9xf32> to vector<16x9xf32>
    %c0_16 = arith.constant 0 : index
    %c0_17 = arith.constant 0 : index
    %c0_18 = arith.constant 0 : index
    %29 = vector.load %arg6[%c0_16, %c0_17, %c0_18] : memref<1x9x16xf32, #tpu.memory_space<vmem>>, vector<1x9x16xf32>
    %30 = vector.shape_cast %29 : vector<1x9x16xf32> to vector<9x16xf32>
    %31 = vector.extract_strided_slice %28 {offsets = [0, 0], sizes = [16, 1], strides = [1, 1]} : vector<16x9xf32> to vector<16x1xf32>
    %32 = vector.extract_strided_slice %28 {offsets = [0, 1], sizes = [16, 1], strides = [1, 1]} : vector<16x9xf32> to vector<16x1xf32>
    %33 = vector.extract_strided_slice %28 {offsets = [0, 2], sizes = [16, 1], strides = [1, 1]} : vector<16x9xf32> to vector<16x1xf32>
    %34 = vector.extract_strided_slice %28 {offsets = [0, 3], sizes = [16, 1], strides = [1, 1]} : vector<16x9xf32> to vector<16x1xf32>
    %35 = vector.extract_strided_slice %28 {offsets = [0, 4], sizes = [16, 1], strides = [1, 1]} : vector<16x9xf32> to vector<16x1xf32>
    %36 = vector.extract_strided_slice %28 {offsets = [0, 5], sizes = [16, 1], strides = [1, 1]} : vector<16x9xf32> to vector<16x1xf32>
    %37 = vector.extract_strided_slice %28 {offsets = [0, 6], sizes = [16, 1], strides = [1, 1]} : vector<16x9xf32> to vector<16x1xf32>
    %38 = vector.extract_strided_slice %28 {offsets = [0, 7], sizes = [16, 1], strides = [1, 1]} : vector<16x9xf32> to vector<16x1xf32>
    %39 = vector.extract_strided_slice %28 {offsets = [0, 8], sizes = [16, 1], strides = [1, 1]} : vector<16x9xf32> to vector<16x1xf32>
    %40 = arith.subf %34, %31 : vector<16x1xf32>
    %41 = arith.subf %35, %32 : vector<16x1xf32>
    %42 = arith.subf %36, %33 : vector<16x1xf32>
    %43 = arith.subf %37, %34 : vector<16x1xf32>
    %44 = arith.subf %38, %35 : vector<16x1xf32>
    %45 = arith.subf %39, %36 : vector<16x1xf32>
    %46 = arith.mulf %41, %45 : vector<16x1xf32>
    %47 = arith.mulf %42, %44 : vector<16x1xf32>
    %48 = arith.subf %46, %47 : vector<16x1xf32>
    %49 = arith.mulf %42, %43 : vector<16x1xf32>
    %50 = arith.mulf %40, %45 : vector<16x1xf32>
    %51 = arith.subf %49, %50 : vector<16x1xf32>
    %52 = arith.mulf %40, %44 : vector<16x1xf32>
    %53 = arith.mulf %41, %43 : vector<16x1xf32>
    %54 = arith.subf %52, %53 : vector<16x1xf32>
    %cst_19 = arith.constant -0.582734287 : f32
    %55 = vector.broadcast %cst_19 : f32 to vector<16x1xf32>
    %56 = arith.mulf %55, %48 : vector<16x1xf32>
    %cst_20 = arith.constant 0.568028271 : f32
    %57 = vector.broadcast %cst_20 : f32 to vector<16x1xf32>
    %58 = arith.mulf %57, %40 : vector<16x1xf32>
    %59 = arith.addf %56, %58 : vector<16x1xf32>
    %cst_21 = arith.constant 0.540674686 : f32
    %60 = vector.broadcast %cst_21 : f32 to vector<16x1xf32>
    %61 = arith.mulf %60, %43 : vector<16x1xf32>
    %62 = arith.subf %59, %61 : vector<16x1xf32>
    %63 = arith.addf %62, %34 : vector<16x1xf32>
    %cst_22 = arith.constant -0.582734287 : f32
    %64 = vector.broadcast %cst_22 : f32 to vector<16x1xf32>
    %65 = arith.mulf %64, %51 : vector<16x1xf32>
    %cst_23 = arith.constant 0.568028271 : f32
    %66 = vector.broadcast %cst_23 : f32 to vector<16x1xf32>
    %67 = arith.mulf %66, %41 : vector<16x1xf32>
    %68 = arith.addf %65, %67 : vector<16x1xf32>
    %cst_24 = arith.constant 0.540674686 : f32
    %69 = vector.broadcast %cst_24 : f32 to vector<16x1xf32>
    %70 = arith.mulf %69, %44 : vector<16x1xf32>
    %71 = arith.subf %68, %70 : vector<16x1xf32>
    %72 = arith.addf %71, %35 : vector<16x1xf32>
    %cst_25 = arith.constant -0.582734287 : f32
    %73 = vector.broadcast %cst_25 : f32 to vector<16x1xf32>
    %74 = arith.mulf %73, %54 : vector<16x1xf32>
    %cst_26 = arith.constant 0.568028271 : f32
    %75 = vector.broadcast %cst_26 : f32 to vector<16x1xf32>
    %76 = arith.mulf %75, %42 : vector<16x1xf32>
    %77 = arith.addf %74, %76 : vector<16x1xf32>
    %cst_27 = arith.constant 0.540674686 : f32
    %78 = vector.broadcast %cst_27 : f32 to vector<16x1xf32>
    %79 = arith.mulf %78, %45 : vector<16x1xf32>
    %80 = arith.subf %77, %79 : vector<16x1xf32>
    %81 = arith.addf %80, %36 : vector<16x1xf32>
    %82 = vector.extract_strided_slice %30 {offsets = [0, 0], sizes = [1, 16], strides = [1, 1]} : vector<9x16xf32> to vector<1x16xf32>
    %83 = vector.extract_strided_slice %30 {offsets = [1, 0], sizes = [1, 16], strides = [1, 1]} : vector<9x16xf32> to vector<1x16xf32>
    %84 = vector.extract_strided_slice %30 {offsets = [2, 0], sizes = [1, 16], strides = [1, 1]} : vector<9x16xf32> to vector<1x16xf32>
    %85 = vector.extract_strided_slice %30 {offsets = [3, 0], sizes = [1, 16], strides = [1, 1]} : vector<9x16xf32> to vector<1x16xf32>
    %86 = vector.extract_strided_slice %30 {offsets = [4, 0], sizes = [1, 16], strides = [1, 1]} : vector<9x16xf32> to vector<1x16xf32>
    %87 = vector.extract_strided_slice %30 {offsets = [5, 0], sizes = [1, 16], strides = [1, 1]} : vector<9x16xf32> to vector<1x16xf32>
    %88 = vector.extract_strided_slice %30 {offsets = [6, 0], sizes = [1, 16], strides = [1, 1]} : vector<9x16xf32> to vector<1x16xf32>
    %89 = vector.extract_strided_slice %30 {offsets = [7, 0], sizes = [1, 16], strides = [1, 1]} : vector<9x16xf32> to vector<1x16xf32>
    %90 = vector.extract_strided_slice %30 {offsets = [8, 0], sizes = [1, 16], strides = [1, 1]} : vector<9x16xf32> to vector<1x16xf32>
    %91 = arith.subf %85, %82 : vector<1x16xf32>
    %92 = arith.subf %86, %83 : vector<1x16xf32>
    %93 = arith.subf %87, %84 : vector<1x16xf32>
    %94 = arith.subf %88, %85 : vector<1x16xf32>
    %95 = arith.subf %89, %86 : vector<1x16xf32>
    %96 = arith.subf %90, %87 : vector<1x16xf32>
    %97 = arith.mulf %92, %96 : vector<1x16xf32>
    %98 = arith.mulf %93, %95 : vector<1x16xf32>
    %99 = arith.subf %97, %98 : vector<1x16xf32>
    %100 = arith.mulf %93, %94 : vector<1x16xf32>
    %101 = arith.mulf %91, %96 : vector<1x16xf32>
    %102 = arith.subf %100, %101 : vector<1x16xf32>
    %103 = arith.mulf %91, %95 : vector<1x16xf32>
    %104 = arith.mulf %92, %94 : vector<1x16xf32>
    %105 = arith.subf %103, %104 : vector<1x16xf32>
    %cst_28 = arith.constant -0.582734287 : f32
    %106 = vector.broadcast %cst_28 : f32 to vector<1x16xf32>
    %107 = arith.mulf %106, %99 : vector<1x16xf32>
    %cst_29 = arith.constant 0.568028271 : f32
    %108 = vector.broadcast %cst_29 : f32 to vector<1x16xf32>
    %109 = arith.mulf %108, %91 : vector<1x16xf32>
    %110 = arith.addf %107, %109 : vector<1x16xf32>
    %cst_30 = arith.constant 0.540674686 : f32
    %111 = vector.broadcast %cst_30 : f32 to vector<1x16xf32>
    %112 = arith.mulf %111, %94 : vector<1x16xf32>
    %113 = arith.subf %110, %112 : vector<1x16xf32>
    %114 = arith.addf %113, %85 : vector<1x16xf32>
    %cst_31 = arith.constant -0.582734287 : f32
    %115 = vector.broadcast %cst_31 : f32 to vector<1x16xf32>
    %116 = arith.mulf %115, %102 : vector<1x16xf32>
    %cst_32 = arith.constant 0.568028271 : f32
    %117 = vector.broadcast %cst_32 : f32 to vector<1x16xf32>
    %118 = arith.mulf %117, %92 : vector<1x16xf32>
    %119 = arith.addf %116, %118 : vector<1x16xf32>
    %cst_33 = arith.constant 0.540674686 : f32
    %120 = vector.broadcast %cst_33 : f32 to vector<1x16xf32>
    %121 = arith.mulf %120, %95 : vector<1x16xf32>
    %122 = arith.subf %119, %121 : vector<1x16xf32>
    %123 = arith.addf %122, %86 : vector<1x16xf32>
    %cst_34 = arith.constant -0.582734287 : f32
    %124 = vector.broadcast %cst_34 : f32 to vector<1x16xf32>
    %125 = arith.mulf %124, %105 : vector<1x16xf32>
    %cst_35 = arith.constant 0.568028271 : f32
    %126 = vector.broadcast %cst_35 : f32 to vector<1x16xf32>
    %127 = arith.mulf %126, %93 : vector<1x16xf32>
    %128 = arith.addf %125, %127 : vector<1x16xf32>
    %cst_36 = arith.constant 0.540674686 : f32
    %129 = vector.broadcast %cst_36 : f32 to vector<1x16xf32>
    %130 = arith.mulf %129, %96 : vector<1x16xf32>
    %131 = arith.subf %128, %130 : vector<1x16xf32>
    %132 = arith.addf %131, %87 : vector<1x16xf32>
    %133 = vector.broadcast %63 : vector<16x1xf32> to vector<16x16xf32>
    %134 = vector.broadcast %114 : vector<1x16xf32> to vector<16x16xf32>
    %135 = arith.subf %133, %134 : vector<16x16xf32>
    %136 = vector.broadcast %72 : vector<16x1xf32> to vector<16x16xf32>
    %137 = vector.broadcast %123 : vector<1x16xf32> to vector<16x16xf32>
    %138 = arith.subf %136, %137 : vector<16x16xf32>
    %139 = vector.broadcast %81 : vector<16x1xf32> to vector<16x16xf32>
    %140 = vector.broadcast %132 : vector<1x16xf32> to vector<16x16xf32>
    %141 = arith.subf %139, %140 : vector<16x16xf32>
    %142 = arith.mulf %135, %135 : vector<16x16xf32>
    %143 = arith.mulf %138, %138 : vector<16x16xf32>
    %144 = arith.addf %142, %143 : vector<16x16xf32>
    %145 = arith.mulf %141, %141 : vector<16x16xf32>
    %146 = arith.addf %144, %145 : vector<16x16xf32>
    %147 = math.sqrt %146 : vector<16x16xf32>
    %148 = vector.shape_cast %147 : vector<16x16xf32> to vector<16x16x1xf32>
    %c0_37 = arith.constant 0 : index
    %c0_38 = arith.constant 0 : index
    %149 = vector.load %arg8[%c0_37, %c0_38] : memref<1x36xf32, #tpu.memory_space<vmem>>, vector<1x36xf32>
    %150 = vector.shape_cast %149 : vector<1x36xf32> to vector<1x1x36xf32>
    %151 = vector.broadcast %148 : vector<16x16x1xf32> to vector<16x16x36xf32>
    %152 = vector.broadcast %150 : vector<1x1x36xf32> to vector<16x16x36xf32>
    %153 = arith.subf %151, %152 : vector<16x16x36xf32>
    %cst_39 = arith.constant 1.800000e+00 : f32
    %154 = vector.broadcast %cst_39 : f32 to vector<16x16x36xf32>
    %155 = arith.mulf %153, %154 : vector<16x16x36xf32>
    %156 = arith.mulf %155, %155 : vector<16x16x36xf32>
    %cst_40 = arith.constant 0.000000e+00 : f32
    %157 = vector.broadcast %cst_40 : f32 to vector<16x16x36xf32>
    %158 = arith.subf %157, %156 : vector<16x16x36xf32>
    %159 = math.exp %158 : vector<16x16x36xf32>
    %160 = vector.shape_cast %159 : vector<16x16x36xf32> to vector<256x36xf32>
    %c0_41 = arith.constant 0 : index
    %c0_42 = arith.constant 0 : index
    %161 = vector.load %arg13[%c0_41, %c0_42] : memref<36x128xf32, #tpu.memory_space<vmem>>, vector<36x128xf32>
    %cst_43 = arith.constant dense<0.000000e+00> : vector<256x128xf32>
    %162 = tpu.matmul %160, %161, %cst_43 {dimension_numbers = #tpu.dot_dimension_numbers<[1], [0], [0], [1], [0, 0, 1, 1], [], []>} : vector<256x36xf32>, vector<36x128xf32>, vector<256x128xf32> -> vector<256x128xf32>
    %163 = vector.shape_cast %162 : vector<256x128xf32> to vector<16x16x128xf32>
    %c0_44 = arith.constant 0 : index
    %c0_45 = arith.constant 0 : index
    %c0_46 = arith.constant 0 : index
    %c0_47 = arith.constant 0 : index
    %164 = vector.load %arg2[%c0_44, %c0_45, %c0_46, %c0_47] : memref<1x16x16x128xf32, #tpu.memory_space<vmem>>, vector<1x16x16x128xf32>
    %165 = vector.shape_cast %164 : vector<1x16x16x128xf32> to vector<16x16x128xf32>
    %c0_48 = arith.constant 0 : index
    %c0_49 = arith.constant 0 : index
    %166 = vector.load %arg11[%c0_48, %c0_49] : memref<1x128xf32, #tpu.memory_space<vmem>>, vector<1x128xf32>
    %c0_50 = arith.constant 0 : index
    %c0_51 = arith.constant 0 : index
    %167 = vector.load %arg12[%c0_50, %c0_51] : memref<1x128xf32, #tpu.memory_space<vmem>>, vector<1x128xf32>
    %cst_52 = arith.constant dense<0.000000e+00> : vector<16x16xf32>
    %168 = vector.multi_reduction <add>, %165, %cst_52 [2] : vector<16x16x128xf32> to vector<16x16xf32>
    %169 = vector.shape_cast %168 : vector<16x16xf32> to vector<16x16x1xf32>
    %cst_53 = arith.constant 1.280000e+02 : f32
    %170 = vector.broadcast %cst_53 : f32 to vector<16x16x1xf32>
    %171 = arith.divf %169, %170 : vector<16x16x1xf32>
    %172 = vector.broadcast %171 : vector<16x16x1xf32> to vector<16x16x128xf32>
    %173 = arith.subf %165, %172 : vector<16x16x128xf32>
    %174 = arith.mulf %173, %173 : vector<16x16x128xf32>
    %cst_54 = arith.constant dense<0.000000e+00> : vector<16x16xf32>
    %175 = vector.multi_reduction <add>, %174, %cst_54 [2] : vector<16x16x128xf32> to vector<16x16xf32>
    %176 = vector.shape_cast %175 : vector<16x16xf32> to vector<16x16x1xf32>
    %cst_55 = arith.constant 1.280000e+02 : f32
    %177 = vector.broadcast %cst_55 : f32 to vector<16x16x1xf32>
    %178 = arith.divf %176, %177 : vector<16x16x1xf32>
    %cst_56 = arith.constant 9.99999974E-6 : f32
    %179 = vector.broadcast %cst_56 : f32 to vector<16x16x1xf32>
    %180 = arith.addf %178, %179 : vector<16x16x1xf32>
    %181 = math.rsqrt %180 : vector<16x16x1xf32>
    %182 = vector.broadcast %181 : vector<16x16x1xf32> to vector<16x16x128xf32>
    %183 = arith.mulf %173, %182 : vector<16x16x128xf32>
    %184 = vector.shape_cast %166 : vector<1x128xf32> to vector<1x1x128xf32>
    %185 = vector.broadcast %184 : vector<1x1x128xf32> to vector<16x16x128xf32>
    %186 = arith.mulf %183, %185 : vector<16x16x128xf32>
    %187 = vector.shape_cast %167 : vector<1x128xf32> to vector<1x1x128xf32>
    %188 = vector.broadcast %187 : vector<1x1x128xf32> to vector<16x16x128xf32>
    %189 = arith.addf %186, %188 : vector<16x16x128xf32>
    %c0_57 = arith.constant 0 : index
    %c0_58 = arith.constant 0 : index
    %c0_59 = arith.constant 0 : index
    %190 = vector.load %arg4[%c0_57, %c0_58, %c0_59] : memref<1x16x128xf32, #tpu.memory_space<vmem>>, vector<1x16x128xf32>
    %191 = vector.shape_cast %190 : vector<1x16x128xf32> to vector<16x128xf32>
    %c0_60 = arith.constant 0 : index
    %c0_61 = arith.constant 0 : index
    %c0_62 = arith.constant 0 : index
    %192 = vector.load %arg5[%c0_60, %c0_61, %c0_62] : memref<1x16x128xf32, #tpu.memory_space<vmem>>, vector<1x16x128xf32>
    %193 = vector.shape_cast %192 : vector<1x16x128xf32> to vector<16x128xf32>
    %194 = arith.addf %189, %163 : vector<16x16x128xf32>
    %195 = vector.shape_cast %191 : vector<16x128xf32> to vector<16x1x128xf32>
    %196 = vector.broadcast %195 : vector<16x1x128xf32> to vector<16x16x128xf32>
    %197 = arith.addf %194, %196 : vector<16x16x128xf32>
    %198 = vector.shape_cast %193 : vector<16x128xf32> to vector<1x16x128xf32>
    %199 = vector.broadcast %198 : vector<1x16x128xf32> to vector<16x16x128xf32>
    %200 = arith.addf %197, %199 : vector<16x16x128xf32>
    %c0_63 = arith.constant 0 : index
    %c0_64 = arith.constant 0 : index
    %c0_65 = arith.constant 0 : index
    %c0_66 = arith.constant 0 : index
    %201 = vector.load %arg14[%c0_63, %c0_64, %c0_65, %c0_66] : memref<1x16x16x128xf32, #tpu.memory_space<vmem>>, vector<1x16x16x128xf32>
    %202 = vector.shape_cast %201 : vector<1x16x16x128xf32> to vector<16x16x128xf32>
    %203 = vector.shape_cast %200 : vector<16x16x128xf32> to vector<1x16x16x128xf32>
    tpu.vector_store %arg14[%c0_63, %c0_64, %c0_65, %c0_66], %203 {strides = array<i32>} : memref<1x16x16x128xf32, #tpu.memory_space<vmem>>, vector<1x16x16x128xf32>,
    return
  }
  func.func @transform_0(%arg0: i32, %arg1: i32) -> (i32, i32, i32, i32) {
    %c0_i32 = arith.constant 0 : i32
    %c0_i32_0 = arith.constant 0 : i32
    %c0_i32_1 = arith.constant 0 : i32
    return %arg0, %arg1, %c0_i32, %c0_i32_0 : i32, i32, i32, i32
  }
  func.func @transform_1(%arg0: i32, %arg1: i32) -> (i32, i32, i32) {
    %c0_i32 = arith.constant 0 : i32
    %c0_i32_0 = arith.constant 0 : i32
    return %arg0, %arg1, %c0_i32 : i32, i32, i32
  }
  func.func @transform_2(%arg0: i32, %arg1: i32) -> (i32, i32, i32) {
    %c0_i32 = arith.constant 0 : i32
    %c0_i32_0 = arith.constant 0 : i32
    return %arg0, %arg1, %c0_i32 : i32, i32, i32
  }
  func.func @transform_3(%arg0: i32, %arg1: i32) -> (i32, i32, i32) {
    %c0_i32 = arith.constant 0 : i32
    %c0_i32_0 = arith.constant 0 : i32
    %c0_i32_1 = arith.constant 0 : i32
    return %arg0, %c0_i32, %c0_i32_0 : i32, i32, i32
  }
  func.func @transform_4(%arg0: i32, %arg1: i32) -> (i32, i32, i32) {
    %c0_i32 = arith.constant 0 : i32
    %c0_i32_0 = arith.constant 0 : i32
    %c0_i32_1 = arith.constant 0 : i32
    return %arg0, %c0_i32, %c0_i32_0 : i32, i32, i32
  }
  func.func @transform_5(%arg0: i32, %arg1: i32) -> (i32, i32, i32) {
    %c0_i32 = arith.constant 0 : i32
    %c0_i32_0 = arith.constant 0 : i32
    return %arg0, %arg1, %c0_i32 : i32, i32, i32
  }
  func.func @transform_6(%arg0: i32, %arg1: i32) -> (i32, i32) {
    %c0_i32 = arith.constant 0 : i32
    %c0_i32_0 = arith.constant 0 : i32
    %c0_i32_1 = arith.constant 0 : i32
    return %c0_i32, %c0_i32_0 : i32, i32
  }
  func.func @transform_7(%arg0: i32, %arg1: i32) -> (i32, i32) {
    %c0_i32 = arith.constant 0 : i32
    %c0_i32_0 = arith.constant 0 : i32
    %c0_i32_1 = arith.constant 0 : i32
    return %c0_i32, %c0_i32_0 : i32, i32
  }
  func.func @transform_8(%arg0: i32, %arg1: i32) -> (i32, i32) {
    %c0_i32 = arith.constant 0 : i32
    %c0_i32_0 = arith.constant 0 : i32
    %c0_i32_1 = arith.constant 0 : i32
    return %c0_i32, %c0_i32_0 : i32, i32
  }
  func.func @transform_9(%arg0: i32, %arg1: i32) -> (i32, i32) {
    %c0_i32 = arith.constant 0 : i32
    %c0_i32_0 = arith.constant 0 : i32
    %c0_i32_1 = arith.constant 0 : i32
    return %c0_i32, %c0_i32_0 : i32, i32
  }
  func.func @transform_10(%arg0: i32, %arg1: i32) -> (i32, i32) {
    %c0_i32 = arith.constant 0 : i32
    %c0_i32_0 = arith.constant 0 : i32
    %c0_i32_1 = arith.constant 0 : i32
    return %c0_i32, %c0_i32_0 : i32, i32
  }
  func.func @transform_11(%arg0: i32, %arg1: i32) -> (i32, i32) {
    %c0_i32 = arith.constant 0 : i32
    %c0_i32_0 = arith.constant 0 : i32
    %c0_i32_1 = arith.constant 0 : i32
    return %c0_i32, %c0_i32_0 : i32, i32
  }
  func.func @transform_12(%arg0: i32, %arg1: i32) -> (i32, i32, i32, i32) {
    %c0_i32 = arith.constant 0 : i32
    %c0_i32_0 = arith.constant 0 : i32
    %c0_i32_1 = arith.constant 0 : i32
    return %arg0, %arg1, %c0_i32, %c0_i32_0 : i32, i32, i32, i32
  }
  func.func @transform_13(%arg0: i32, %arg1: i32) -> (i32, i32, i32) {
    %c0_i32 = arith.constant 0 : i32
    %c0_i32_0 = arith.constant 0 : i32
    return %arg0, %arg1, %c0_i32 : i32, i32, i32
  }
}

</mosaic_0001>

<bundles_post_ra>
// kernel: recycling_forward.2
= control target key start
LH: loop header
LB: loop body
LE: loop exit
PB: predicated region body
PF: predicated region fallthrough
CT: control target
= control target key end

     0   :  { %14 = vsyncpa [#allocation3], 0  ;;  %s1087_s0 = inlined_call_operand.vmem [shape: f32[2,16,32], index: 0, kind: input, shape index: {}]   ;;  %s1088_s1 = inlined_call_operand.vmem [shape: f32[1,32], index: 1, kind: input, shape index: {}]   ;;  %s1089_s2 = inlined_call_operand.vmem [shape: f32[1,32], index: 2, kind: input, shape index: {}]   ;;  %s1090_s3 = inlined_call_operand.vmem [shape: f32[32,128], index: 3, kind: input, shape index: {}]   ;;  %s1091_s4 = inlined_call_operand.vmem [shape: f32[32,128], index: 4, kind: input, shape index: {}]   ;;  %s1092_s5 = inlined_call_operand.vmem [shape: f32[1,128], index: 5, kind: input, shape index: {}]   ;;  %s1093_s6 = inlined_call_operand.hbm [shape: f32[2,16,32], index: 6, kind: output, shape index: {0}]   ;;  %s1094_s7 = inlined_call_operand.vmem [shape: f32[2,16,128], index: 7, kind: output, shape index: {1}]   ;;  %s1095_s8 = inlined_call_operand.vmem [shape: f32[2,16,128], index: 8, kind: output, shape index: {2}]  }
   0x1   :  { %16 = vsyncpa [#allocation3 + $0x1], 0  ;;  %s930_s27 = smov 0   ;;  %s932_s28 = smov 0  }
   0x2   :  { %s934_s29 = smov 0   ;;  %s936_s30 = smov 0  }
   0x3 LB: > { %s951_s9 = sadd.s32 4294967295, %s880_s30   ;;  %s696_s10 = sadd.s32 4294967294, %s880_s30   ;;  %s880_s30 = sphi %s936_s30, %s1101_s30   ;;  %s876_s29 = sphi %s934_s29, %s1100_s29   ;;  %s872_s28 = sphi %s932_s28, %s1099_s28   ;;  %s868_s27 = sphi %s930_s27, %s1098_s27  }
   0x4   : > { %s955_s11 = sadd.s32 1, %s880_s30   ;;  %s160_s12 = sadd.s32 1, %s876_s29 }
   0x5   : > { %s157_s13 = ssub.s32 %s880_s30, %s955_s11  ;;  %p170_p0 = scmp.ne.s32.totalorder %s876_s29, %s872_s28 }
   0x6   : > { %p158_p1 = scmp.eq.s32.totalorder %s157_s13, 0  ;;  %p171_p2 = scmp.eq.s32.totalorder %s951_s9, 1 }
   0x7   : > { %p176_p3 = scmp.ne.s32.totalorder %s872_s28, %s868_s27  ;;  %p177_p4 = scmp.eq.s32.totalorder %s696_s10, 1 }
   0x8   : > { %s966_s14 = scalar_select %p158_p1, %s876_s29, %s160_s12  }
   0x9   : > { %p968_p5 = por %p171_p2, %p170_p0  ;;  %p972_p6 = por %p177_p4, %p176_p3 }
   0xa   : > { %p699_p7 = scmp.ge.s32.totalorder %s880_s30, 1  ;;  %p270_p8 = scmp.lt.s32.totalorder %s880_s30, 3 }
   0xc   : > { %p271_p9 = pnand %p699_p7, %p270_p8 }
   0xd   : > { %p314_p10 = scmp.lt.s32.totalorder (!%p271_p9), %s951_s9, 1  ;;  %vm333_vm0 = vcmask (!%p271_p9), 261120   ;;  %v379_v14 = vld [vmem:[%s1090_s3] sm:$0xff] (!%p271_p9)  ;;  %v380_v15 = vld [vmem:[%s1090_s3 + $0x8] sm:$0xff] (!%p271_p9)  ;;  %v381_v19 = vld [vmem:[%s1090_s3 + $0x10] sm:$0xff] (!%p271_p9)  ;;  %s297_s26 = sand.u32 (!%p271_p9), 1, %s872_s28  }
   0xe   : > { %274 = sbr.rel (%p271_p9) target bundleno = 559 (0x22f), region = 44  ;;  %v473_v16 = vld [vmem:[%s1091_s4] sm:$0xff] (!%p271_p9)  ;;  %v757_v17 = vpack.c.bf16 (!%p271_p9), %v380_v15, %v379_v14  ;;  %v474_v18 = vld [vmem:[%s1091_s4 + $0x8] sm:$0xff] (!%p271_p9)  ;;  %v382_v20 = vld [vmem:[%s1090_s3 + $0x18] sm:$0xff] (!%p271_p9)  ;;  %s700_s13 = sshll.u32 (!%p271_p9), %s297_s26, 4 }
   0xf   : > { %v765_v21 = vpack.c.bf16 (!%p271_p9), %v474_v18, %v473_v16  ;;  %v761_v22 = vpack.c.bf16 (!%p271_p9), %v382_v20, %v381_v19  ;;  %v475_v23 = vld [vmem:[%s1091_s4 + $0x10] sm:$0xff] (!%p271_p9)  ;;  %v476_v24 = vld [vmem:[%s1091_s4 + $0x18] sm:$0xff] (!%p271_p9)  ;;  %v707_v33 = vld [vmem:[%s1088_s1] ss:$0 sm:$0xff] (!%p271_p9)  ;;  %s299_s20 = scalar_lea.vmem (!%p271_p9), [#allocation2], %s700_s13  ;;  %s1035_s10 = scalar_lea.sflag (!%p271_p9), [#allocation3], %s297_s26 }
  0x10   : > { %758 = vmatprep.subr.bf16.mxu0 (!%p271_p9), %v757_v17  ;;  %v769_v25 = vpack.c.bf16 (!%p271_p9), %v476_v24, %v475_v23  ;;  %v708_v35 = vld [vmem:[%s1089_s2] ss:$0 sm:$0xff] (!%p271_p9)  ;;  %s578_s22 = sshll.u32 (!%p271_p9), %s299_s20, 4  ;;  %s882_s13 = smov (!%p271_p9), [#allocation2]   ;;  %s1033_s22 = int_to_ptr.vmem [resolvable:$true] %s578_s22 }
  0x11   : > { %766 = vmatprep.subr.bf16.mxu1 (!%p271_p9), %v765_v21  ;;  %760 = vmatpush3.bf16.msra.mxu0 (!%p271_p9), %v757_v17  ;;  %s818_s12 = scalar_lea.vmem (!%p271_p9), %s1033_s22, 256 }
  0x12   : > { %768 = vmatpush3.bf16.msra.mxu1 (!%p271_p9), %v765_v21  ;;  %762 = vmatprep.subr.bf16.mxu0 (!%p271_p9), %v761_v22  ;;  %p819_p11 = scmp.ne.s32.totalorder (!%p271_p9), %s1033_s22, %s818_s12 }
  0x13   : > { %770 = vmatprep.subr.bf16.mxu1 (!%p271_p9), %v769_v25 }
  0x14   : > { %p820_p12 = pnand (!%p271_p9), %p819_p11, %p968_p5 }
  0x15   : > { %s315_s17 = scalar_select %p314_p10, %s951_s9, 1  ;;  %764 = vmatpush3.bf16.msra.mxu0 %v761_v22 }
  0x16   : > { %772 = vmatpush3.bf16.msra.mxu1 %v769_v25  ;;  %p821_p13 = pneg %p820_p12 }
  0x17   : > { %s980_s18 = sshll.u32 %s315_s17, 4 }
  0x18   : > { %s318_s21 = scalar_lea.vmem %s1087_s0, %s980_s18 }
  0x19   : > { %v329_v0 = vld [vmem:[%s318_s21] sm:$0xff]  ;;  %v330_v1 = vld [vmem:[%s318_s21 + $0x8] sm:$0xff]  ;;  %s722_s21 = sshll.u32 %s951_s9, 8  ;;  %s822_s9 = sshll.u32 %s882_s13, 4  ;;  %s823_s9 = int_to_ptr.vmem [resolvable:$false] %s822_s9 }
  0x1a   : > { %v334_v2 = vsel %vm333_vm0, %v329_v0, 0.0  ;;  %v337_v3 = vsel %vm333_vm0, %v330_v1, 0.0  ;;  %s1031_s25 = scalar_lea.hbm %s1093_s6, %s722_s21  ;;  %s824_s17 = scalar_lea.vmem %s823_s9, 512 }
  0x1b   : > { %335 = vadd.xlane.f32.xlu0 %v334_v2  ;;  %p825_p0 = scmp.lt.s32.totalorder %s1033_s22, %s823_s9  ;;  %p826_p1 = scmp.lt.s32.totalorder %s824_s17, %s818_s12 }
  0x1d   : > { %p827_p2 = por %p826_p1, %p825_p0 }
  0x1f   : > { %338 = vadd.xlane.f32.xlu0 %v337_v3  ;;  %p828_p3 = pnand %p827_p2, %p821_p13 }
  0xa8   : > { %v336_v4 = vpop.xlane.xlu0 %335 }
  0xa9   : > { %v341_v5 = vmul.f32 0.03125, %v336_v4 }
  0xab   : > { %v343_v6 = vsub.f32 %v329_v0, %v341_v5 }
  0xac   : > { %v339_v7 = vpop.xlane.xlu0 %338 }
  0xad   : > { %v342_v8 = vmul.f32 0.03125, %v339_v7  ;;  %v345_v9 = vmul.f32 %v343_v6, %v343_v6 }
  0xaf   : > { %v344_v10 = vsub.f32 %v330_v1, %v342_v8  ;;  %v347_v11 = vsel %vm333_vm0, %v345_v9, 0.0 }
  0xb0   : > { %348 = vadd.xlane.f32.xlu1 %v347_v11 }
  0xb1   : > { %v346_v12 = vmul.f32 %v344_v10, %v344_v10 }
  0xb3   : > { %v350_v13 = vsel %vm333_vm0, %v346_v12, 0.0 }
  0xb4   : > { %351 = vadd.xlane.f32.xlu1 %v350_v13 }
 0x13d   : > { %v349_v26 = vpop.xlane.xlu1 %348 }
 0x13e   : > { %v353_v27 = vmul.f32 0.03125, %v349_v26 }
 0x140   : > { %v355_v28 = vadd.f32 1e-05, %v353_v27 }
 0x141   : > { %v352_v29 = vpop.xlane.xlu1 %351 }
 0x142   : > { %814 = vrsqrt.f32 %v355_v28  ;;  %v354_v30 = vmul.f32 0.03125, %v352_v29 }
 0x144   : > { %v356_v31 = vadd.f32 1e-05, %v354_v30 }
 0x146   : > { %816 = vrsqrt.f32 %v356_v31 }
 0x14c   : > { %v815_v32 = vpop.eup %814 }
 0x14d   : > { %v359_v34 = vmul.f32 %v815_v32, %v343_v6 }
 0x14f   : > { %v367_v36 = vmul.f32 %v707_v33, %v359_v34 }
 0x150   : > { %v817_v37 = vpop.eup %816 }
 0x151   : > { %v360_v38 = vmul.f32 %v817_v37, %v344_v10  ;;  %v375_v39 = vadd.f32 %v708_v35, %v367_v36 }
 0x153   : > { %v368_v40 = vmul.f32 %v707_v33, %v360_v38  ;;  %377 = vst.msk [vmem:[%s299_s20] sm:$0xff] %vm333_vm0, %v375_v39  ;;  %743 = vmatprep.mubr.msk.f32.mxu0 %vm333_vm0, %v375_v39  ;;  %754 = vmatprep.mubr.msk.f32.mxu1 %vm333_vm0, %v375_v39 }
 0x155   : > { %v376_v41 = vadd.f32 %v708_v35, %v368_v40 }
 0x157   : > { %378 = vst.msk [vmem:[%s299_s20 + $0x8] sm:$0xff] %vm333_vm0, %v376_v41  ;;  %744 = vmatmul.mubr.msk.f32.vlgmr.msra.gmra.mrb[0].mxu0 %vm333_vm0, %v376_v41  ;;  %755 = vmatmul.mubr.msk.f32.vlgmr.msra.gmra.mrb[0].mxu1 %vm333_vm0, %v376_v41 }
 0x158   : > { %831 = shalt.err (!%p828_p3)
}
 0x159   : > { %s832_s26 = scalar_lea.hbm %s1031_s25, 256  ;;  %s836_s21 = scalar_lea.hbm %s1093_s6, 512 }
 0x15a   : > { %p833_p4 = scmp.ne.s32.totalorder %s1031_s25, %s832_s26  ;;  %p837_p9 = scmp.lt.u32.totalorder %s1031_s25, %s1093_s6 }
 0x15b   : > { %p838_p10 = scmp.lt.u32.totalorder %s836_s21, %s832_s26  ;;  %p840_p12 = scmp.lt.u32.totalorder %s832_s26, %s1031_s25 }
 0x15c   : > { %p834_p7 = pnand %p833_p4, %p968_p5 }
 0x15d   : > { %p839_p11 = por %p838_p10, %p837_p9 }
 0x15e   : > { %p835_p8 = pneg %p834_p7 }
 0x15f   : > { %p841_p13 = por %p840_p12, %p839_p11 }
 0x161   : > { %p842_p0 = pnand %p841_p13, %p835_p8 }
 0x163   : > { %845 = shalt.err (!%p842_p0)
}
 0x164   : > { %s883_s12 = smov 128   ;;  %s884_s13 = smov 8   ;;  %v709_v42 = vld [vmem:[%s1092_s5] ss:$0 sm:$0xff] }
 0x165   : > { %773 = dma.vmem_to_hbm [thread:$0]  (%p968_p5), %s1033_s22, 256, %s1031_s25, %s1035_s10, %s883_s12, %s883_s12, %s884_s13  }
 0x166   : > { %s328_s26 = scalar_lea.vmem %s1095_s8, %s980_s18  ;;  %s323_s24 = scalar_lea.vmem %s1094_s7, %s980_s18 }
 0x22a   : > { %v745_v43 = vpop.f32.mrb[0].mxu0  ;;  %v756_v44 = vpop.f32.mrb[0].mxu1 }
 0x22b   : > { %v468_v45 = vadd.f32 %v745_v43, %v709_v42  ;;  %553 = vst [vmem:[%s328_s26 + $0x8] sm:$0xff] %v756_v44  ;;  %v462_v46 = vpop.f32.mrb[1].mxu0  ;;  %v543_v47 = vpop.f32.mrb[1].mxu1 }
 0x22c   : > { %v463_v48 = vadd.f32 %v709_v42, %v462_v46  ;;  %552 = vst [vmem:[%s328_s26] sm:$0xff] %v543_v47 }
 0x22d   : > { %472 = vst [vmem:[%s323_s24 + $0x8] sm:$0xff] %v468_v45 }
 0x22e   : > { %471 = vst [vmem:[%s323_s24] sm:$0xff] %v463_v48 }
 0x22f PF: > { %p779_p5 = scmp.ge.s32.totalorder %s880_s30, 2  ;;  %s599_s15 = sand.u32 1, %s868_s27  }
 0x230   : > { %s600_s22 = scalar_lea.sflag [#allocation3], %s599_s15 }
 0x231   : > { %p776_p1 = pnand %p779_p5, %p972_p6 }
 0x233   : > { %863 = dma.done.wait (!%p776_p1), %s600_s22, 256  }
 0x234   : > { %865 = vsyncadd (!%p776_p1), %s600_s22, 4294967040  ;;  %p19_p2 = scmp.ge.s32.totalorder %s955_s11, 4   ;;  %s1098_s27 = smov %s872_s28 }
 0x235   : > { %s1099_s28 = smov %s876_s29  ;;  %s1100_s29 = smov %s966_s14 }
 0x236   : > { %s1101_s30 = smov %s955_s11  ;;  %21 = sbr.rel (!%p19_p2) target bundleno = 3 (0x3), region = 103 }
 0x23d   :  { %621 = vsyncpa [#allocation3], 1 }
 0x23e   :  { %623 = vsyncpa [#allocation3 + $0x1], 1 }

// kernel: recycling_forward.3
= control target key start
LH: loop header
LB: loop body
LE: loop exit
PB: predicated region body
PF: predicated region fallthrough
CT: control target
= control target key end

     0   :  { %s4510_s0 = inlined_call_operand.hbm [shape: f32[2,16,16,128], index: 0, kind: input, shape index: {}]   ;;  %s4511_s1 = inlined_call_operand.vmem [shape: f32[2,16,256], index: 1, kind: input, shape index: {}]   ;;  %s4512_s2 = inlined_call_operand.vmem [shape: f32[2,16,128], index: 2, kind: input, shape index: {}]   ;;  %s4513_s3 = inlined_call_operand.vmem [shape: f32[2,16,128], index: 3, kind: input, shape index: {}]   ;;  %s4514_s4 = inlined_call_operand.vmem [shape: f32[2,9,16], index: 4, kind: input, shape index: {}]   ;;  %s4515_s5 = inlined_call_operand.vmem [shape: f32[2,16,9], index: 5, kind: input, shape index: {}]   ;;  %s4516_s6 = inlined_call_operand.vmem [shape: f32[1,36], index: 6, kind: input, shape index: {}]   ;;  %s4517_s7 = inlined_call_operand.vmem [shape: f32[1,256], index: 7, kind: input, shape index: {}]   ;;  %s4518_s8 = inlined_call_operand.vmem [shape: f32[1,256], index: 8, kind: input, shape index: {}]   ;;  %s4519_s9 = inlined_call_operand.vmem [shape: f32[1,128], index: 9, kind: input, shape index: {}]   ;;  %s4520_s10 = inlined_call_operand.vmem [shape: f32[1,128], index: 10, kind: input, shape index: {}]   ;;  %s4521_s11 = inlined_call_operand.vmem [shape: f32[36,128], index: 11, kind: input, shape index: {}]   ;;  %s4522_s12 = inlined_call_operand.hbm [shape: f32[2,16,16,128], index: 12, kind: output, shape index: {0}]   ;;  %s4523_s13 = inlined_call_operand.hbm [shape: f32[2,16,256], index: 13, kind: output, shape index: {1}]  }
   0x1   :  { %4553 = sst [smem:[#allocation51_spill]] %s4510_s0 }
   0x2   :  { %4554 = sst [smem:[#allocation52_spill]] %s4511_s1 }
   0x3   :  { %4555 = sst [smem:[#allocation53_spill]] %s4512_s2 }
   0x4   :  { %4556 = sst [smem:[#allocation54_spill]] %s4523_s13 }
   0x5   :  { %19 = vsyncpa [#allocation3], 0 }
   0x6   :  { %21 = vsyncpa [#allocation3 + $0x1], 0 }
   0x7   :  { %22 = vsyncpa [#allocation4], 0 }
   0x8   :  { %24 = vsyncpa [#allocation4 + $0x1], 0 }
   0x9   :  { %25 = vsyncpa [#allocation7], 0 }
   0xa   :  { %27 = vsyncpa [#allocation7 + $0x1], 0  ;;  %s3358_s25 = smov 0   ;;  %s3360_s26 = smov 0  }
   0xb   :  { %s3362_s27 = smov 0   ;;  %s3364_s28 = smov 0  }
   0xc   :  { %s3366_s29 = smov 0   ;;  %s3368_s30 = smov 0  }
   0xd LB: > { %4557 = sst [smem:[#allocation11_spill]] %s3246_s25  ;;  %s2710_s14 = sadd.s32 4294967295, %s3266_s30   ;;  %s3266_s30 = sphi %s3368_s30, %s33_s30   ;;  %s3262_s29 = sphi %s3366_s29, %s4653_s29   ;;  %s3258_s28 = sphi %s3364_s28, %s4652_s28   ;;  %s3254_s27 = sphi %s3362_s27, %s4656_s27   ;;  %s3250_s26 = sphi %s3360_s26, %s4655_s26   ;;  %s3246_s25 = sphi %s3358_s25, %s4654_s25  }
   0xe   : > { %4558 = sst [smem:[#allocation12_spill]] %s3262_s29  ;;  %s2711_s15 = sadd.s32 4294967294, %s3266_s30  }
   0xf   : > { %s45_s16 = sadd.s32 1, %s3262_s29  ;;  %s54_s17 = sadd.s32 1, %s3254_s27 }
  0x10   : > { %p47_p0 = scmp.ge.s32.totalorder %s45_s16, 2  ;;  %p61_p1 = scmp.ne.s32.totalorder %s3254_s27, %s3250_s26 }
  0x11   : > { %p62_p2 = scmp.eq.s32.totalorder %s3266_s30, 0  ;;  %p67_p3 = scmp.ne.s32.totalorder %s3250_s26, %s3246_s25 }
  0x12   : > { %s4658_s16 = smov (%p47_p0, %s45_s16), 0  ;;  %p68_p5 = scmp.eq.s32.totalorder %s2710_s14, 0 }
  0x13   : > { %4559 = sst [smem:[#allocation13_spill]] %s4658_s16  ;;  %p3399_p4 = por %p62_p2, %p61_p1 }
  0x14   : > { %s49_s19 = ssub.s32 %s3262_s29, %s4658_s16  ;;  %p355_p6 = scmp.eq.s32.totalorder %s2710_s14, 1 }
  0x15   : > { %p52_p7 = scmp.eq.s32.totalorder %s49_s19, 0  ;;  %p3405_p8 = por %p68_p5, %p67_p3 }
  0x16   : > { %p3409_p9 = por %p355_p6, %p61_p1  ;;  %p361_p10 = scmp.eq.s32.totalorder %s2711_s15, 1 }
  0x17   : > { %s3414_s22 = scalar_select %p52_p7, %s3254_s27, %s54_s17  }
  0x18   : > { %s4562_s21 = scalar_select %p3409_p9, 1, 0 }
  0x19   : > { %4563 = sst [smem:[#allocation14_spill]] %s3414_s22  ;;  %p3416_p11 = por %p361_p10, %p67_p3 }
  0x1a   : > { %p2909_p13 = scmp.lt.s32.totalorder %s3266_s30, 2  ;;  %s427_s24 = sand.u32 1, %s3254_s27  }
  0x1b   : > { %s4564_s23 = scalar_select %p3416_p11, 1, 0 }
  0x1c   : > { %s2714_s14 = sshll.u32 %s427_s24, 8  ;;  %s2775_s19 = sshll.u32 %s3262_s29, 12 }
  0x1d   : > { %s4565_s0 = sld [smem:[#allocation51_spill]]  ;;  %s431_s15 = scalar_lea.vmem [#allocation2], %s2714_s14 }
  0x1e   : > { %s441_s17 = sshll.u32 %s431_s15, 4  ;;  %p3433_p0 = pnand %p2909_p13, %p3399_p4  ;;  %s3429_s17 = int_to_ptr.vmem [resolvable:$true] %s441_s17 }
  0x1f   : > { %s3438_s29 = scalar_lea.sflag [#allocation3], %s427_s24 }
  0x20   : > { %p3124_p3 = pneg %p3433_p0 }
  0x23   : > { %s3427_s13 = scalar_lea.hbm %s4565_s0, %s2775_s19  ;;  %s3127_s18 = scalar_lea.hbm %s4565_s0, 8192 }
  0x24   : > { %s3122_s25 = scalar_lea.hbm %s3427_s13, 4096  ;;  %p3128_p4 = scmp.lt.u32.totalorder %s3427_s13, %s4565_s0 }
  0x25   : > { %p3123_p2 = scmp.ne.s32.totalorder %s3427_s13, %s3122_s25  ;;  %p3129_p7 = scmp.lt.u32.totalorder %s3127_s18, %s3122_s25 }
  0x26   : > { %p3131_p13 = scmp.lt.u32.totalorder %s3122_s25, %s3427_s13 }
  0x27   : > { %p3125_p5 = pnand %p3124_p3, %p3123_p2  ;;  %p3130_p10 = por %p3129_p7, %p3128_p4 }
  0x29   : > { %p3126_p6 = pneg %p3125_p5  ;;  %p3132_p12 = por %p3131_p13, %p3130_p10 }
  0x2b   : > { %p3133_p1 = pnand %p3132_p12, %p3126_p6 }
  0x2d   : > { %3136 = shalt.err (!%p3133_p1)
}
  0x2e   : > { %s3137_s24 = scalar_lea.vmem %s3429_s17, 4096  ;;  %s3268_s16 = smov [#allocation2]  }
  0x2f   : > { %p3138_p2 = scmp.ne.s32.totalorder %s3429_s17, %s3137_s24  ;;  %s3142_s14 = sshll.u32 %s3268_s16, 4  ;;  %s3143_s14 = int_to_ptr.vmem [resolvable:$false] %s3142_s14 }
  0x30   : > { %s3144_s19 = scalar_lea.vmem %s3143_s14, 8192  ;;  %p3145_p9 = scmp.lt.s32.totalorder %s3429_s17, %s3143_s14 }
  0x31   : > { %p3140_p5 = pnand %p3138_p2, %p3124_p3  ;;  %p3146_p4 = scmp.lt.s32.totalorder %s3144_s19, %s3137_s24 }
  0x33   : > { %p3141_p11 = pneg %p3140_p5  ;;  %p3147_p7 = por %p3146_p4, %p3145_p9 }
  0x35   : > { %p3148_p10 = pnand %p3147_p7, %p3141_p11 }
  0x37   : > { %3151 = shalt.err (!%p3148_p10)
}
  0x38   : > { %s3269_s25 = smov 128   ;;  %s3270_s18 = smov 8  }
  0x39   : > { %2901 = dma.hbm_to_vmem [thread:$0]  (!%p3433_p0), %s3427_s13, 4096, %s3429_s17, %s3438_s29, %s3269_s25, %s3269_s25, %s3270_s18  }
  0x3a   : > { %p505_p12 = scmp.lt.s32.totalorder %s3266_s30, 3  ;;  %p4567_p1 = scmp.ge.s32.totalorder %s3266_s30, 1 }
  0x3c   : > { %p506_p3 = pnand %p4567_p1, %p505_p12 }
  0x3e   : > { %509 = sbr.rel (%p506_p3) target bundleno = 1131 (0x46b), region = 68 }
  0x45   : > { %s3470_s15 = sand.u32 1, %s3250_s26  }
  0x46   : > { %s4529_s24 = sshll.u32 %s3470_s15, 8  ;;  %s512_s16 = scalar_lea.sflag [#allocation3], %s3470_s15 }
  0x47   : > { %s3476_s14 = scalar_lea.vmem [#allocation2], %s4529_s24 }
  0x48   : > { %3233 = dma.done.wait (%p3405_p8), %s512_s16, 4096  }
  0x49   : > { %3235 = vsyncadd (%p3405_p8), %s512_s16, 4294963200  ;;  %p603_p9 = scmp.lt.s32.totalorder %s3258_s28, 1  ;;  %v3271_v0 = vmov 1966171168   ;;  %v685_v2 = vlaneseq  ;;  %s4568_s2 = sld [smem:[#allocation53_spill]]  ;;  %v3278_v21 = vmov 4  }
  0x4a   : > { %v2194_v1 = vunpack.c.l.s4 %v3271_v0  ;;  %s3272_s16 = smov 3   ;;  %s3273_s22 = smov 123   ;;  %2976 = vset.pattern.permute.xlu0 %v3278_v21  ;;  %2977 = vset.pattern.permute.xlu1 %v3278_v21  ;;  %vm1462_vm4 = vcmask 1043456   ;;  %vm1365_vm5 = vcmask 293888  }
  0x4b   : > { %s3484_s13 = scalar_select %p603_p9, %s3258_s28, 1  ;;  %v3499_v4 = vshrl.u32 %v685_v2, 7 }
  0x4c   : > { %v2195_v3 = vunpack.c.0.s8 %v2194_v1  ;;  %s3274_s17 = smov 126   ;;  %s3276_s20 = smov 127  }
  0x4d   : > { %s3487_s29 = sshll.u32 %s3484_s13, 4  ;;  %s3277_s25 = smov 1  }
  0x4e   : > { %s641_s19 = scalar_lea.vmem %s4515_s5, %s3487_s29  ;;  %v3503_v7 = vsub.s32 %v2195_v3, %v3499_v4  ;;  %s4570_s1 = sld [smem:[#allocation52_spill]] }
  0x4f   : > { %s3497_s18 = scalar_lea.vmem %s4568_s2, %s3487_s29  ;;  %v718_v5 = vld [vmem:[%s641_s19] sm:$0xff]  ;;  %v719_v9 = vld [vmem:[%s641_s19 + $0x8] sm:$0xff]  ;;  %s3275_s19 = smov 124  }
  0x50   : > { %v2155_v6 = vld [vmem:[%s3497_s18 + $0x8] sm:$0xff]  ;;  %724 = vrot.lane.b32.xlu0 %v718_v5, %s3272_s16  ;;  %s2720_s24 = sshll.u32 %s3470_s15, 5  ;;  %p4647_p11 = scmp.ne.s32.totalorder %s4562_s21, 0 }
  0x51   : > { %v2241_v8 = vcombine.high %v2155_v6, %v2155_v6  ;;  %v3280_v6 = vmov 5   ;;  %s3282_s0 = smov [#allocation5]  }
  0x53   : > { %v3506_v10 = vrot.slane %v2241_v8, %v3503_v7 }
  0x54   : > { %726 = vrot.lane.b32.xlu0 %v719_v9, %s3272_s16  ;;  %s3279_s16 = smov 2  }
  0x55   : > { %v2257_v11 = vcombine.high %v3506_v10, %v3506_v10 }
  0x57   : > { %v3511_v12 = vrot.slane %v2257_v11, %v3503_v7 }
  0xc2   : > { %v725_v13 = vpop.permute.xlu0 %724 }
  0xc3   : > { %v730_v14 = vsub.f32 %v718_v5, %v725_v13 }
  0xc5   : > { %768 = vrot.lane.b32.xlu0 %v730_v14, %s3273_s22  ;;  %742 = vrot.lane.b32.xlu1 %v730_v14, %s3274_s17  ;;  %v788_v17 = vmul.f32 0.5680283, %v730_v14  ;;  %v800_v18 = vmul.f32 0.5406747, %v730_v14 }
  0xc6   : > { %v727_v15 = vpop.permute.xlu0 %726 }
  0xc7   : > { %v3515_v16 = vsub.f32 %v719_v9, %v727_v15 }
  0xc9   : > { %734 = vrot.lane.b32.xlu0 %v730_v14, %s3275_s19  ;;  %744 = vrot.lane.b32.xlu1 %v3515_v16, %s3274_s17  ;;  %v789_v19 = vmul.f32 0.5680283, %v3515_v16  ;;  %v801_v20 = vmul.f32 0.5406747, %v3515_v16 }
  0xcd   : > { %760 = vrot.lane.b32.xlu0 %v730_v14, %s3276_s20  ;;  %770 = vrot.lane.b32.xlu1 %v3515_v16, %s3273_s22 }
  0xd1   : > { %792 = vrot.lane.b32.xlu0 %v788_v17, %s3277_s25  ;;  %736 = vrot.lane.b32.xlu1 %v3515_v16, %s3275_s19  ;;  %s632_s19 = scalar_lea.vmem %s4514_s4, %s3487_s29 }
  0xd5   : > { %804 = vrot.lane.b32.xlu0 %v800_v18, %s3274_s17  ;;  %762 = vrot.lane.b32.xlu1 %v3515_v16, %s3276_s20 }
  0xd9   : > { %828 = vrot.lane.b32.xlu0 %v788_v17, %s3274_s17  ;;  %794 = vrot.lane.b32.xlu1 %v789_v19, %s3277_s25 }
  0xdd   : > { %806 = vrot.lane.b32.xlu1 %v801_v20, %s3274_s17 }
  0xe1   : > { %830 = vrot.lane.b32.xlu1 %v789_v19, %s3274_s17 }
 0x137   : > { %v743_v22 = vpop.permute.xlu1 %742  ;;  %v769_v24 = vpop.permute.xlu0 %768 }
 0x138   : > { %v748_v23 = vmul.f32 %v743_v22, %v730_v14  ;;  %v774_v26 = vmul.f32 %v769_v24, %v730_v14  ;;  %v720_v22 = vld [vmem:[%s632_s19] sm:$0xff]  ;;  %v721_v24 = vld [vmem:[%s632_s19 + $0x8] sm:$0x1]  ;;  %s2782_s19 = sshll.u32 %s3258_s28, 9 }
 0x13a   : > { %752 = vrot.lane.b32.xlu0 %v748_v23, %s3276_s20  ;;  %v853_v23 = vrot.slane %v720_v22, 5 }
 0x13b   : > { %v745_v25 = vpop.permute.xlu1 %744  ;;  %v735_v30 = vpop.permute.xlu0 %734 }
 0x13c   : > { %v749_v27 = vmul.f32 %v745_v25, %v3515_v16  ;;  %v740_v39 = vmul.f32 %v735_v30, %v730_v14  ;;  %v855_v25 = vsub.f32 %v720_v22, %v853_v23 }
 0x13e   : > { %754 = vrot.lane.b32.xlu1 %v749_v27, %s3276_s20  ;;  %778 = vrot.lane.b32.xlu0 %v774_v26, %s3279_s16  ;;  %v856_v26 = vsub.f32 %v721_v24, %v853_v23 }
 0x13f   : > { %v771_v28 = vpop.permute.xlu1 %770  ;;  %v761_v32 = vpop.permute.xlu0 %760 }
 0x140   : > { %v775_v29 = vmul.f32 %v771_v28, %v3515_v16  ;;  %v766_v43 = vmul.f32 %v761_v32, %v730_v14  ;;  %v872_v27 = vrot.slane %v856_v26, 5  ;;  %v862_v28 = vrot.slane %v855_v25, 2 }
 0x142   : > { %780 = vrot.lane.b32.xlu1 %v775_v29, %s3279_s16  ;;  %812 = vrot.lane.b32.xlu0 %v718_v5, %s3277_s25  ;;  %v869_v29 = vrot.slane %v855_v25, 1  ;;  %v874_v30 = vmul.f32 %v872_v27, %v855_v25  ;;  %v864_v32 = vmul.f32 %v862_v28, %v855_v25 }
 0x143   : > { %v737_v31 = vpop.permute.xlu1 %736  ;;  %v793_v34 = vpop.permute.xlu0 %792 }
 0x144   : > { %v741_v44 = vmul.f32 %v737_v31, %v3515_v16  ;;  %v858_v31 = vrot.slane %v856_v26, 4 }
 0x146   : > { %814 = vrot.lane.b32.xlu1 %v719_v9, %s3277_s25  ;;  %836 = vrot.lane.b32.xlu0 %v800_v18, %s3273_s22  ;;  %v3281_v18 = vmov 3   ;;  %s2781_s25 = sshll.u32 %s3258_s28, 12 }
 0x147   : > { %v763_v33 = vpop.permute.xlu1 %762  ;;  %v805_v36 = vpop.permute.xlu0 %804 }
 0x148   : > { %v767_v51 = vmul.f32 %v763_v33, %v3515_v16  ;;  %v871_v33 = vmul.f32 %v869_v29, %v855_v25 }
 0x14a   : > { %838 = vrot.lane.b32.xlu1 %v801_v20, %s3273_s22  ;;  %844 = vrot.lane.b32.xlu0 %v718_v5, %s3274_s17  ;;  %s2467_s22 = scalar_lea.sflag [#allocation4], %s3470_s15 }
 0x14b   : > { %v795_v35 = vpop.permute.xlu1 %794  ;;  %v829_v38 = vpop.permute.xlu0 %828 }
 0x14e   : > { %846 = vrot.lane.b32.xlu1 %v719_v9, %s3274_s17  ;;  %s2776_s17 = sshll.u32 %s3484_s13, 5 }
 0x14f   : > { %v807_v37 = vpop.permute.xlu1 %806  ;;  %s611_s20 = scalar_lea.vmem %s4570_s1, %s2776_s17  ;;  %s4095_s17 = scalar_lea.vmem %s4513_s3, %s3487_s29 }
 0x150   : > { %s4605_s29 = sshll.u32 %s3470_s15, 8  ;;  %s3156_s1 = sshll.u32 %s3282_s0, 4  ;;  %s3157_s1 = int_to_ptr.vmem [resolvable:$false] %s3156_s1 }
 0x151   : > { %s4152_s13 = scalar_lea.vmem [#allocation5], %s4605_s29  ;;  %s4424_s29 = scalar_lea.hbm %s4522_s12, %s2781_s25 }
 0x152   : > { %s2488_s16 = sshll.u32 %s4152_s13, 4  ;;  %s3158_s2 = scalar_lea.vmem %s3157_s1, 8192  ;;  %s4428_s16 = int_to_ptr.vmem [resolvable:$true] %s2488_s16 }
 0x153   : > { %v831_v40 = vpop.permute.xlu1 %830  ;;  %p3159_p13 = scmp.lt.s32.totalorder %s4428_s16, %s3157_s1 }
 0x1ac   : > { %v753_v41 = vpop.permute.xlu0 %752 }
 0x1ad   : > { %v758_v42 = vsub.f32 %v740_v39, %v753_v41 }
 0x1af   : > { %v786_v45 = vmul.f32 -0.5827343, %v758_v42  ;;  %v889_v42 = vmul.f32 0.5406747, %v855_v25 }
 0x1b0   : > { %v755_v46 = vpop.permute.xlu1 %754  ;;  %v779_v47 = vpop.permute.xlu0 %778 }
 0x1b1   : > { %v798_v48 = vadd.f32 %v793_v34, %v786_v45  ;;  %v759_v49 = vsub.f32 %v741_v44, %v755_v46  ;;  %v784_v50 = vsub.f32 %v766_v43, %v779_v47  ;;  %v834_v13 = vadd.f32 %v829_v38, %v786_v45 }
 0x1b2   : > { %v891_v47 = vrot.slane %v889_v42, 2 }
 0x1b3   : > { %v787_v52 = vmul.f32 -0.5827343, %v759_v49  ;;  %v820_v53 = vmul.f32 -0.5827343, %v784_v50  ;;  %v810_v54 = vsub.f32 %v798_v48, %v805_v36 }
 0x1b4   : > { %v781_v55 = vpop.permute.xlu1 %780  ;;  %v813_v56 = vpop.permute.xlu0 %812 }
 0x1b5   : > { %v799_v57 = vadd.f32 %v795_v35, %v787_v52  ;;  %v785_v58 = vsub.f32 %v767_v51, %v781_v55  ;;  %v818_v59 = vadd.f32 %v813_v56, %v810_v54  ;;  %v822_v60 = vadd.f32 %v820_v53, %v793_v34 }
 0x1b6   : > { %v835_v16 = vadd.f32 %v831_v40, %v787_v52  ;;  %v876_v34 = vrot.slane %v874_v30, 6  ;;  %v884_v40 = vmul.f32 0.5680283, %v855_v25  ;;  %v905_v52 = vmul.f32 0.5406747, %v856_v26 }
 0x1b7   : > { %v821_v61 = vmul.f32 -0.5827343, %v785_v58  ;;  %915 = vperm.xlu0 %2976, %v818_v59   ;;  %v811_v62 = vsub.f32 %v799_v57, %v807_v37  ;;  %v824_v2 = vsub.f32 %v822_v60, %v805_v36  ;;  %v866_v36 = vrot.slane %v864_v32, 1 }
 0x1b8   : > { %v815_v63 = vpop.permute.xlu1 %814  ;;  %v837_v3 = vpop.permute.xlu0 %836  ;;  %v878_v38 = vsub.f32 %v871_v33, %v876_v34  ;;  %v886_v45 = vrot.slane %v884_v40, 7  ;;  %v902_v51 = vrot.slane %v884_v40, 2  ;;  %v894_v55 = vrot.slane %v720_v22, 7 }
 0x1b9   : > { %v823_v0 = vadd.f32 %v821_v61, %v795_v35  ;;  %v819_v1 = vadd.f32 %v815_v63, %v811_v62  ;;  %v826_v9 = vadd.f32 %v824_v2, %v813_v56  ;;  %v842_v15 = vsub.f32 %v834_v13, %v837_v3 }
 0x1ba   : > { %v860_v35 = vmul.f32 %v858_v31, %v855_v25  ;;  %v897_v43 = vmul.f32 -0.5827343, %v878_v38  ;;  %v907_v57 = vrot.slane %v905_v52, 5  ;;  %v3542_v59 = vsub.s32 5, %v3499_v4 }
 0x1bb   : > { %v825_v5 = vsub.f32 %v823_v0, %v807_v37  ;;  %920 = vperm.xlu1 %2977, %v819_v1   ;;  %2979 = vset.pattern.permute.xlu0 %v3280_v6  ;;  %v879_v37 = vrot.slane %v855_v25, 4  ;;  %v3545_v61 = vsub.s32 4, %v3499_v4  ;;  %v3554_v32 = vsub.s32 0, %v3499_v4 }
 0x1bc   : > { %v839_v11 = vpop.permute.xlu1 %838  ;;  %v845_v14 = vpop.permute.xlu0 %844  ;;  %v868_v39 = vsub.f32 %v860_v35, %v866_v36  ;;  %v898_v48 = vadd.f32 %v897_v43, %v886_v45  ;;  %v1360_v43 = vld [vmem:[%s4521_s11] sm:$0xff] }
 0x1bd   : > { %v827_v8 = vadd.f32 %v825_v5, %v815_v63  ;;  %v850_v17 = vadd.f32 %v845_v14, %v842_v15  ;;  %v843_v20 = vsub.f32 %v835_v16, %v839_v11  ;;  %v881_v41 = vmul.f32 %v879_v37, %v855_v25 }
 0x1be   : > { %v883_v44 = vmul.f32 -0.5827343, %v868_v39  ;;  %v899_v53 = vsub.f32 %v898_v48, %v891_v47  ;;  %v910_v63 = vrot.slane %v720_v22, 2  ;;  %v1362_v48 = vld [vmem:[%s4521_s11 + $0x10] sm:$0xff] }
 0x1bf   : > { %2978 = vset.pattern.permute.xlu1 %v3280_v6  ;;  %936 = vperm.xlu0 %2979, %v827_v8   ;;  %v882_v46 = vsub.f32 %v881_v41, %v866_v36  ;;  %v3550_v6 = vsub.s32 3, %v3499_v4 }
 0x1c0   : > { %931 = vperm.xlu1 %2978, %v826_v9   ;;  %v847_v19 = vpop.permute.xlu1 %846  ;;  %v888_v49 = vadd.f32 %v886_v45, %v883_v44  ;;  %v900_v58 = vadd.f32 %v899_v53, %v894_v55  ;;  %v1361_v44 = vld [vmem:[%s4521_s11 + $0x8] sm:$0xff]  ;;  %v1009_v53 = vsub.s32 2, %v3499_v4 }
 0x1c1   : > { %v851_v21 = vadd.f32 %v847_v19, %v843_v20  ;;  %v901_v50 = vmul.f32 -0.5827343, %v882_v46  ;;  %v3571_v46 = vsub.s32 1, %v3499_v4 }
 0x1c2   : > { %v893_v54 = vsub.f32 %v888_v49, %v891_v47  ;;  %v942_v2 = vrot.slane %v900_v58, %v3542_v59  ;;  %v2878_v47 = vpack.c.bf16 %v1361_v44, %v1360_v43  ;;  %v1363_v49 = vld [vmem:[%s4521_s11 + $0x18] sm:$0xff]  ;;  %v3682_v44 = vld [vmem:[%s3476_s14 + $0x88] sm:$0xff] }
 0x1c3   : > { %2981 = vset.pattern.permute.xlu0 %v3281_v18  ;;  %v904_v56 = vadd.f32 %v902_v51, %v901_v50  ;;  %4569 = vst [vmem:[#allocation15_spill] sm:$0xff] %v3571_v46  ;;  %v2882_v51 = vpack.c.bf16 %v1363_v49, %v1362_v48  ;;  %v3685_v49 = vld [vmem:[%s3476_s14 + $0x80] sm:$0xff] }
 0x1c4   : > { %2980 = vset.pattern.permute.xlu1 %v3281_v18  ;;  %v896_v60 = vadd.f32 %v894_v55, %v893_v54  ;;  %2879 = vmatprep.subr.bf16.mxu0 %v2878_v47  ;;  %v1364_v54 = vld [vmem:[%s4521_s11 + $0x20] sm:$0xf] }
 0x1c5   : > { %947 = vperm.xlu1 %2980, %v850_v17   ;;  %v909_v62 = vsub.f32 %v904_v56, %v907_v57  ;;  %2886 = vmatprep.subr.bf16.mxu1 %v2878_v47 }
 0x1c6   : > { %v926_v3 = vrot.slane %v896_v60, %v3545_v61  ;;  %2881 = vmatpush3.bf16.msra.mxu0 %v2878_v47  ;;  %2889 = vmatpush3.bf16.msra.mxu1 %v2878_v47 }
 0x1c7   : > { %v912_v5 = vadd.f32 %v910_v63, %v909_v62  ;;  %2883 = vmatprep.subr.bf16.mxu0 %v2882_v51  ;;  %2887 = vmatprep.subr.bf16.mxu1 %v2882_v51 }
 0x1c9   : > { %952 = vperm.xlu1 %2980, %v851_v21   ;;  %v958_v14 = vrot.slane %v912_v5, %v3550_v6 }
 0x1ca   : > { %2885 = vmatpush3.bf16.msra.mxu0 %v2882_v51  ;;  %2890 = vmatpush3.bf16.msra.mxu1 %v2882_v51 }
 0x1cb   : > { %2828 = vmatprep.subr.msk.mxu0 %vm1462_vm4, %v1364_v54  ;;  %2888 = vmatprep.subr.msk.mxu1 %vm1462_vm4, %v1364_v54 }
 0x1ce   : > { %2829 = vmatpush3.msk.msra.mxu0 %vm1462_vm4, %v1364_v54  ;;  %2891 = vmatpush3.msk.msra.mxu1 %vm1462_vm4, %v1364_v54 }
 0x236   : > { %v916_v1 = vpop.permute.xlu0 %915 }
 0x237   : > { %v927_v13 = vsub.f32 %v916_v1, %v926_v3  ;;  %v1053_v1 = vsub.s32 6, %v3499_v4 }
 0x239   : > { %v961_v18 = vmul.f32 %v927_v13, %v927_v13  ;;  %v3627_v13 = vld [vmem:[%s3476_s14 + $0x20] sm:$0xff] }
 0x23a   : > { %v921_v0 = vpop.permute.xlu1 %920 }
 0x23b   : > { %v928_v19 = vsub.f32 %v921_v0, %v926_v3  ;;  %v1064_v3 = vsub.s32 7, %v3499_v4  ;;  %v3612_v4 = vld [vmem:[%s3476_s14 + $0x10] sm:$0xff] }
 0x23d   : > { %v962_v25 = vmul.f32 %v928_v19, %v928_v19  ;;  %v3653_v19 = vld [vmem:[%s3476_s14 + $0x58] sm:$0xff] }
 0x23e   : > { %v937_v9 = vpop.permute.xlu0 %936 }
 0x23f   : > { %v932_v8 = vpop.permute.xlu1 %931  ;;  %v944_v15 = vsub.f32 %v937_v9, %v942_v2  ;;  %v3619_v9 = vld [vmem:[%s3476_s14 + $0x8] sm:$0xff] }
 0x240   : > { %v943_v11 = vsub.f32 %v932_v8, %v942_v2  ;;  %v3616_v8 = vld [vmem:[%s3476_s14 + $0x18] sm:$0xff] }
 0x241   : > { %v964_v21 = vmul.f32 %v944_v15, %v944_v15  ;;  %v3635_v15 = vld [vmem:[%s3476_s14 + $0x30] sm:$0xff] }
 0x242   : > { %v963_v16 = vmul.f32 %v943_v11, %v943_v11  ;;  %v3624_v11 = vld [vmem:[%s3476_s14 + $0x28] sm:$0xff] }
 0x243   : > { %v966_v28 = vadd.f32 %v964_v21, %v962_v25  ;;  %v3665_v25 = vld [vmem:[%s3476_s14 + $0x60] sm:$0xff] }
 0x244   : > { %v948_v17 = vpop.permute.xlu1 %947  ;;  %v965_v22 = vadd.f32 %v963_v16, %v961_v18  ;;  %v3640_v16 = vld [vmem:[%s3476_s14 + $0x48] sm:$0xff]  ;;  %v3650_v18 = vld [vmem:[%s4516_s6] ss:$0 sm:$0xff] }
 0x245   : > { %v959_v20 = vsub.f32 %v948_v17, %v958_v14  ;;  %v3643_v17 = vld [vmem:[%s3476_s14 + $0x40] sm:$0xff] }
 0x247   : > { %v967_v23 = vmul.f32 %v959_v20, %v959_v20  ;;  %v3656_v20 = vld [vmem:[%s3476_s14 + $0x50] sm:$0xff] }
 0x248   : > { %v953_v24 = vpop.permute.xlu1 %952 }
 0x249   : > { %v969_v26 = vadd.f32 %v967_v23, %v965_v22  ;;  %v960_v27 = vsub.f32 %v953_v24, %v958_v14  ;;  %v3632_v14 = vld [vmem:[%s3476_s14 + $0x38] sm:$0xff]  ;;  %v3662_v23 = vld [vmem:[%s3476_s14 + $0x68] sm:$0xff] }
 0x24b   : > { %2984 = vrsqrt.f32 %v969_v26  ;;  %v968_v29 = vmul.f32 %v960_v27, %v960_v27  ;;  %vm973_vm0 = vcmp.eq.f32.partialorder %v969_v26, inf  ;;  %v976_v34 = vand.u32 2147483648, %v969_v26 }
 0x24c   : > { %vm975_vm1 = vcmp.eq.f32.partialorder %v969_v26, 0.0 }
 0x24d   : > { %v970_v30 = vadd.f32 %v968_v29, %v966_v28 }
 0x24f   : > { %2986 = vrsqrt.f32 %v970_v30  ;;  %vm980_vm2 = vcmp.eq.f32.partialorder %v970_v30, inf  ;;  %v983_v40 = vand.u32 2147483648, %v970_v30  ;;  %vm982_vm3 = vcmp.eq.f32.partialorder %v970_v30, 0.0 }
 0x255   : > { %v2985_v31 = vpop.eup %2984 }
 0x256   : > { %v972_v33 = vmul.f32 %v2985_v31, %v969_v26  ;;  %v3672_v31 = vld [vmem:[%s3476_s14 + $0x78] sm:$0xff] }
 0x258   : > { %v974_v35 = vsel %vm973_vm0, %v969_v26, %v972_v33 }
 0x259   : > { %v2987_v36 = vpop.eup %2986  ;;  %v3556_v37 = vsel %vm975_vm1, %v976_v34, %v974_v35 }
 0x25a   : > { %v979_v38 = vmul.f32 %v2987_v36, %v970_v30  ;;  %v988_v39 = vrot.slane %v3556_v37, %v3554_v32  ;;  %v999_v50 = vrot.slane %v3556_v37, %v3571_v46  ;;  %v1010_v55 = vrot.slane %v3556_v37, %v1009_v53  ;;  %v3675_v36 = vld [vmem:[%s3476_s14 + $0x70] sm:$0xff] }
 0x25b   : > { %v1021_v57 = vrot.slane %v3556_v37, %v3550_v6  ;;  %v1032_v60 = vrot.slane %v3556_v37, %v3545_v61  ;;  %v1043_v63 = vrot.slane %v3556_v37, %v3542_v59  ;;  %v1054_v2 = vrot.slane %v3556_v37, %v1053_v1 }
 0x25c   : > { %990 = vbcast.lane.b32.xlu0 %v988_v39, 256  ;;  %v981_v41 = vsel %vm980_vm2, %v970_v30, %v979_v38 }
 0x25d   : > { %v3560_v42 = vsel %vm982_vm3, %v983_v40, %v981_v41 }
 0x25e   : > { %v1076_v45 = vrot.slane %v3560_v42, %v3554_v32  ;;  %v1087_v52 = vrot.slane %v3560_v42, %v3571_v46  ;;  %v1098_v56 = vrot.slane %v3560_v42, %v1009_v53  ;;  %v1109_v58 = vrot.slane %v3560_v42, %v3550_v6  ;;  %v3608_v6 = vld [vmem:[%s3476_s14] sm:$0xff] }
 0x25f   : > { %v1120_v62 = vrot.slane %v3560_v42, %v3545_v61  ;;  %v1131_v0 = vrot.slane %v3560_v42, %v3542_v59  ;;  %v1142_v61 = vrot.slane %v3560_v42, %v1053_v1  ;;  %v1065_v59 = vrot.slane %v3556_v37, %v1064_v3 }
 0x260   : > { %994 = vbcast.lane.b32.xlu0 %v988_v39, 264  ;;  %1078 = vbcast.lane.b32.xlu1 %v1076_v45, 256  ;;  %v1153_v5 = vrot.slane %v3560_v42, %v1064_v3 }
 0x264   : > { %1001 = vbcast.lane.b32.xlu0 %v999_v50, 256  ;;  %1082 = vbcast.lane.b32.xlu1 %v1076_v45, 264 }
 0x268   : > { %1005 = vbcast.lane.b32.xlu0 %v999_v50, 264  ;;  %1089 = vbcast.lane.b32.xlu1 %v1087_v52, 256 }
 0x26c   : > { %1012 = vbcast.lane.b32.xlu0 %v1010_v55, 256  ;;  %1093 = vbcast.lane.b32.xlu1 %v1087_v52, 264 }
 0x270   : > { %1016 = vbcast.lane.b32.xlu0 %v1010_v55, 264  ;;  %1100 = vbcast.lane.b32.xlu1 %v1098_v56, 256 }
 0x274   : > { %1023 = vbcast.lane.b32.xlu0 %v1021_v57, 256  ;;  %1104 = vbcast.lane.b32.xlu1 %v1098_v56, 264 }
 0x278   : > { %1027 = vbcast.lane.b32.xlu0 %v1021_v57, 264  ;;  %1111 = vbcast.lane.b32.xlu1 %v1109_v58, 256 }
 0x27c   : > { %1034 = vbcast.lane.b32.xlu0 %v1032_v60, 256  ;;  %1115 = vbcast.lane.b32.xlu1 %v1109_v58, 264 }
 0x280   : > { %1038 = vbcast.lane.b32.xlu0 %v1032_v60, 264  ;;  %1122 = vbcast.lane.b32.xlu1 %v1120_v62, 256  ;;  %v3692_v60 = vld [vmem:[%s3476_s14 + $0x98] sm:$0xff] }
 0x284   : > { %1045 = vbcast.lane.b32.xlu0 %v1043_v63, 256  ;;  %1126 = vbcast.lane.b32.xlu1 %v1120_v62, 264 }
 0x288   : > { %1049 = vbcast.lane.b32.xlu0 %v1043_v63, 264  ;;  %1133 = vbcast.lane.b32.xlu1 %v1131_v0, 256 }
 0x28c   : > { %1056 = vbcast.lane.b32.xlu0 %v1054_v2, 256  ;;  %1137 = vbcast.lane.b32.xlu1 %v1131_v0, 264  ;;  %v3695_v0 = vld [vmem:[%s3476_s14 + $0x90] sm:$0xff] }
 0x290   : > { %1060 = vbcast.lane.b32.xlu0 %v1054_v2, 264  ;;  %1144 = vbcast.lane.b32.xlu1 %v1142_v61, 256 }
 0x294   : > { %1067 = vbcast.lane.b32.xlu0 %v1065_v59, 256  ;;  %1148 = vbcast.lane.b32.xlu1 %v1142_v61, 264 }
 0x298   : > { %1071 = vbcast.lane.b32.xlu0 %v1065_v59, 264  ;;  %1155 = vbcast.lane.b32.xlu1 %v1153_v5, 256 }
 0x29c   : > { %1159 = vbcast.lane.b32.xlu1 %v1153_v5, 264 }
 0x2b7   : > { %1725 = vadd.xlane.f32.xlu0 %v3608_v6 }
 0x2bb   : > { %1729 = vadd.xlane.f32.xlu0 %v3612_v4 }
 0x2bf   : > { %1731 = vadd.xlane.f32.xlu0 %v3616_v8 }
 0x2c0   : > { %1727 = vadd.xlane.f32.xlu1 %v3619_v9 }
 0x2c3   : > { %1735 = vadd.xlane.f32.xlu0 %v3624_v11 }
 0x2c4   : > { %1733 = vadd.xlane.f32.xlu1 %v3627_v13 }
 0x2c7   : > { %1739 = vadd.xlane.f32.xlu0 %v3632_v14 }
 0x2c8   : > { %1737 = vadd.xlane.f32.xlu1 %v3635_v15 }
 0x2cb   : > { %1743 = vadd.xlane.f32.xlu0 %v3640_v16 }
 0x2cc   : > { %1741 = vadd.xlane.f32.xlu1 %v3643_v17 }
 0x2ce   : > { %v991_v21 = vpop.permute.xlu0 %990 }
 0x2cf   : > { %v1168_v22 = vsub.f32 %v991_v21, %v3650_v18  ;;  %1747 = vadd.xlane.f32.xlu0 %v3653_v19 }
 0x2d0   : > { %1745 = vadd.xlane.f32.xlu1 %v3656_v20 }
 0x2d1   : > { %v1200_v24 = vmul.f32 1.8, %v1168_v22 }
 0x2d2   : > { %v1079_v26 = vpop.permute.xlu1 %1078  ;;  %v995_v27 = vpop.permute.xlu0 %994 }
 0x2d3   : > { %v1232_v28 = vmul.f32 %v1200_v24, %v1200_v24  ;;  %v1184_v29 = vsub.f32 %v1079_v26, %v3650_v18  ;;  %v1169_v30 = vsub.f32 %v995_v27, %v3650_v18  ;;  %1751 = vadd.xlane.f32.xlu0 %v3662_v23  ;;  %v3702_v27 = vld [vmem:[%s3476_s14 + $0xa8] sm:$0xff] }
 0x2d4   : > { %1749 = vadd.xlane.f32.xlu1 %v3665_v25 }
 0x2d5   : > { %v1264_v33 = vsub.f32 0.0, %v1232_v28  ;;  %v1216_v34 = vmul.f32 1.8, %v1184_v29  ;;  %v1201_v35 = vmul.f32 1.8, %v1169_v30 }
 0x2d6   : > { %v1083_v37 = vpop.permute.xlu1 %1082  ;;  %v1002_v38 = vpop.permute.xlu0 %1001 }
 0x2d7   : > { %v1296_v39 = vmul.f32 1.442695, %v1264_v33  ;;  %v1248_v40 = vmul.f32 %v1216_v34, %v1216_v34  ;;  %v1233_v41 = vmul.f32 %v1201_v35, %v1201_v35  ;;  %v1185_v42 = vsub.f32 %v1083_v37, %v3650_v18  ;;  %1755 = vadd.xlane.f32.xlu0 %v3672_v31  ;;  %v3705_v33 = vld [vmem:[%s3476_s14 + $0xa0] sm:$0xff] }
 0x2d8   : > { %v1170_v43 = vsub.f32 %v1002_v38, %v3650_v18  ;;  %1753 = vadd.xlane.f32.xlu1 %v3675_v36 }
 0x2d9   : > { %2988 = vpow2.f32 %v1296_v39  ;;  %v1280_v45 = vsub.f32 0.0, %v1248_v40  ;;  %v1265_v47 = vsub.f32 0.0, %v1233_v41  ;;  %v1217_v48 = vmul.f32 1.8, %v1185_v42 }
 0x2da   : > { %v1202_v50 = vmul.f32 1.8, %v1170_v43  ;;  %v1090_v51 = vpop.permute.xlu1 %1089  ;;  %v1006_v52 = vpop.permute.xlu0 %1005 }
 0x2db   : > { %v1328_v53 = vmul.f32 1.442695, %v1280_v45  ;;  %v1298_v54 = vmul.f32 1.442695, %v1265_v47  ;;  %v1249_v55 = vmul.f32 %v1217_v48, %v1217_v48  ;;  %v1186_v56 = vsub.f32 %v1090_v51, %v3650_v18  ;;  %1759 = vadd.xlane.f32.xlu0 %v3682_v44  ;;  %v3713_v47 = vld [vmem:[%s3476_s14 + $0xb8] sm:$0xff] }
 0x2dc   : > { %v1234_v57 = vmul.f32 %v1202_v50, %v1202_v50  ;;  %v1171_v58 = vsub.f32 %v1006_v52, %v3650_v18  ;;  %1757 = vadd.xlane.f32.xlu1 %v3685_v49  ;;  %v3716_v52 = vld [vmem:[%s3476_s14 + $0xb0] sm:$0xff] }
 0x2dd   : > { %2990 = vpow2.f32 %v1328_v53  ;;  %v1281_v62 = vsub.f32 0.0, %v1249_v55  ;;  %v1218_v63 = vmul.f32 1.8, %v1186_v56 }
 0x2de   : > { %2992 = vpow2.f32 %v1298_v54  ;;  %v1266_v1 = vsub.f32 0.0, %v1234_v57  ;;  %v1203_v2 = vmul.f32 1.8, %v1171_v58  ;;  %v1094_v61 = vpop.permute.xlu1 %1093  ;;  %v1013_v3 = vpop.permute.xlu0 %1012 }
 0x2df   : > { %v1330_v59 = vmul.f32 1.442695, %v1281_v62  ;;  %v1250_v5 = vmul.f32 %v1218_v63, %v1218_v63  ;;  %v1187_v21 = vsub.f32 %v1094_v61, %v3650_v18  ;;  %v1172_v22 = vsub.f32 %v1013_v3, %v3650_v18  ;;  %1763 = vadd.xlane.f32.xlu0 %v3692_v60  ;;  %v3724_v3 = vld [vmem:[%s3476_s14 + $0xc8] sm:$0xff] }
 0x2e0   : > { %v1300_v24 = vmul.f32 1.442695, %v1266_v1  ;;  %v1235_v26 = vmul.f32 %v1203_v2, %v1203_v2  ;;  %1761 = vadd.xlane.f32.xlu1 %v3695_v0 }
 0x2e1   : > { %2994 = vpow2.f32 %v1330_v59  ;;  %v1282_v28 = vsub.f32 0.0, %v1250_v5  ;;  %v1219_v29 = vmul.f32 1.8, %v1187_v21  ;;  %v1204_v30 = vmul.f32 1.8, %v1172_v22  ;;  %v3728_v21 = vld [vmem:[%s3476_s14 + $0xc0] sm:$0xff] }
 0x2e2   : > { %2996 = vpow2.f32 %v1300_v24  ;;  %v1267_v34 = vsub.f32 0.0, %v1235_v26  ;;  %v1101_v35 = vpop.permute.xlu1 %1100  ;;  %v1017_v37 = vpop.permute.xlu0 %1016 }
 0x2e3   : > { %v2989_v38 = vpop.eup %2988  ;;  %v1332_v39 = vmul.f32 1.442695, %v1282_v28  ;;  %v1251_v40 = vmul.f32 %v1219_v29, %v1219_v29  ;;  %v1236_v41 = vmul.f32 %v1204_v30, %v1204_v30  ;;  %v1188_v42 = vsub.f32 %v1101_v35, %v3650_v18  ;;  %1767 = vadd.xlane.f32.xlu0 %v3702_v27 }
 0x2e4   : > { %v1302_v43 = vmul.f32 1.442695, %v1267_v34  ;;  %v1173_v45 = vsub.f32 %v1017_v37, %v3650_v18  ;;  %1765 = vadd.xlane.f32.xlu1 %v3705_v33  ;;  %2830 = vmatprep.mubr.msk.f32.mxu0 %vm1365_vm5, %v2989_v38 }
 0x2e5   : > { %2998 = vpow2.f32 %v1332_v39  ;;  %v1283_v48 = vsub.f32 0.0, %v1251_v40  ;;  %v1268_v50 = vsub.f32 0.0, %v1236_v41  ;;  %v1220_v51 = vmul.f32 1.8, %v1188_v42  ;;  %v3736_v41 = vld [vmem:[%s3476_s14 + $0xd8] sm:$0xff] }
 0x2e6   : > { %3000 = vpow2.f32 %v1302_v43  ;;  %v1205_v53 = vmul.f32 1.8, %v1173_v45  ;;  %v1105_v54 = vpop.permute.xlu1 %1104  ;;  %v1024_v55 = vpop.permute.xlu0 %1023 }
 0x2e7   : > { %v2991_v56 = vpop.eup %2990  ;;  %v1334_v57 = vmul.f32 1.442695, %v1283_v48  ;;  %v1304_v58 = vmul.f32 1.442695, %v1268_v50  ;;  %v1252_v62 = vmul.f32 %v1220_v51, %v1220_v51  ;;  %v1189_v63 = vsub.f32 %v1105_v54, %v3650_v18  ;;  %1771 = vadd.xlane.f32.xlu0 %v3713_v47  ;;  %v3740_v48 = vld [vmem:[%s3476_s14 + $0xd0] sm:$0xff] }
 0x2e8   : > { %v2993_v1 = vpop.eup %2992  ;;  %v1237_v2 = vmul.f32 %v1205_v53, %v1205_v53  ;;  %v1174_v61 = vsub.f32 %v1024_v55, %v3650_v18  ;;  %1769 = vadd.xlane.f32.xlu1 %v3716_v52  ;;  %2854 = vmatprep.mubr.msk.f32.mxu1 %vm1365_vm5, %v2991_v56 }
 0x2e9   : > { %3002 = vpow2.f32 %v1334_v57  ;;  %v1284_v59 = vsub.f32 0.0, %v1252_v62  ;;  %v1221_v5 = vmul.f32 1.8, %v1189_v63  ;;  %2831 = vmatmul.mubr.msk.f32.vlgmr.msra.gmra.mrb[0].mxu0 %vm1365_vm5, %v2993_v1 }
 0x2ea   : > { %3004 = vpow2.f32 %v1304_v58  ;;  %v1269_v22 = vsub.f32 0.0, %v1237_v2  ;;  %v1206_v24 = vmul.f32 1.8, %v1174_v61  ;;  %v1112_v26 = vpop.permute.xlu1 %1111  ;;  %v1028_v28 = vpop.permute.xlu0 %1027  ;;  %v3749_v2 = vld [vmem:[%s3476_s14 + $0xe8] sm:$0xff] }
 0x2eb   : > { %v2995_v29 = vpop.eup %2994  ;;  %v1336_v30 = vmul.f32 1.442695, %v1284_v59  ;;  %v1253_v34 = vmul.f32 %v1221_v5, %v1221_v5  ;;  %v1190_v35 = vsub.f32 %v1112_v26, %v3650_v18  ;;  %v1175_v37 = vsub.f32 %v1028_v28, %v3650_v18  ;;  %1775 = vadd.xlane.f32.xlu0 %v3724_v3 }
 0x2ec   : > { %v2997_v38 = vpop.eup %2996  ;;  %v1306_v39 = vmul.f32 1.442695, %v1269_v22  ;;  %v1238_v40 = vmul.f32 %v1206_v24, %v1206_v24  ;;  %1773 = vadd.xlane.f32.xlu1 %v3728_v21  ;;  %2855 = vmatmul.mubr.msk.f32.vlgmr.msra.gmra.mrb[0].mxu1 %vm1365_vm5, %v2995_v29  ;;  %v3753_v22 = vld [vmem:[%s3476_s14 + $0xe0] sm:$0xff] }
 0x2ed   : > { %3006 = vpow2.f32 %v1336_v30  ;;  %v1285_v42 = vsub.f32 0.0, %v1253_v34  ;;  %v1222_v43 = vmul.f32 1.8, %v1190_v35  ;;  %v1207_v45 = vmul.f32 1.8, %v1175_v37  ;;  %2833 = vmatprep.mubr.msk.f32.mxu0 %vm1365_vm5, %v2997_v38  ;;  %v3760_v38 = vld [vmem:[%s611_s20 + $0x10] sm:$0xff] }
 0x2ee   : > { %3008 = vpow2.f32 %v1306_v39  ;;  %v1270_v50 = vsub.f32 0.0, %v1238_v40  ;;  %v1116_v51 = vpop.permute.xlu1 %1115  ;;  %v1035_v53 = vpop.permute.xlu0 %1034  ;;  %v3762_v39 = vld [vmem:[%s611_s20 + $0x18] sm:$0xff] }
 0x2ef   : > { %v2999_v54 = vpop.eup %2998  ;;  %v1338_v55 = vmul.f32 1.442695, %v1285_v42  ;;  %v1254_v56 = vmul.f32 %v1222_v43, %v1222_v43  ;;  %v1239_v57 = vmul.f32 %v1207_v45, %v1207_v45  ;;  %v1191_v58 = vsub.f32 %v1116_v51, %v3650_v18  ;;  %1779 = vadd.xlane.f32.xlu0 %v3736_v41  ;;  %v3768_v45 = vld [vmem:[%s3476_s14 + $0xf8] sm:$0xff] }
 0x2f0   : > { %v3001_v62 = vpop.eup %3000  ;;  %v1308_v63 = vmul.f32 1.442695, %v1270_v50  ;;  %v1176_v1 = vsub.f32 %v1035_v53, %v3650_v18  ;;  %1777 = vadd.xlane.f32.xlu1 %v3740_v48  ;;  %2857 = vmatprep.mubr.msk.f32.mxu1 %vm1365_vm5, %v2999_v54  ;;  %v3772_v53 = vld [vmem:[%s3476_s14 + $0xf0] sm:$0xff]  ;;  %v3774_v54 = vld [vmem:[%s611_s20] sm:$0xff] }
 0x2f1   : > { %3010 = vpow2.f32 %v1338_v55  ;;  %v1286_v61 = vsub.f32 0.0, %v1254_v56  ;;  %v1271_v59 = vsub.f32 0.0, %v1239_v57  ;;  %v1223_v5 = vmul.f32 1.8, %v1191_v58  ;;  %2834 = vmatmul.mubr.msk.f32.gmra.mrb[2].mxu0 %vm1365_vm5, %v3001_v62  ;;  %v3776_v55 = vld [vmem:[%s611_s20 + $0x8] sm:$0xff]  ;;  %s600_s20 = scalar_lea.vmem [#allocation6], %s2720_s24 }
 0x2f2   : > { %3012 = vpow2.f32 %v1308_v63  ;;  %v1208_v24 = vmul.f32 1.8, %v1176_v1  ;;  %v1123_v26 = vpop.permute.xlu1 %1122  ;;  %v1039_v28 = vpop.permute.xlu0 %1038  ;;  %v654_v63 = vadd.f32 %v3762_v39, %v3760_v38  ;;  %s2507_s14 = sshll.u32 %s600_s20, 4  ;;  %s4646_s24 = sld [smem:[#allocation54_spill]]  ;;  %s4436_s14 = int_to_ptr.vmem [resolvable:$true] %s2507_s14 }
 0x2f3   : > { %v3003_v29 = vpop.eup %3002  ;;  %v1340_v30 = vmul.f32 1.442695, %v1286_v61  ;;  %v1310_v34 = vmul.f32 1.442695, %v1271_v59  ;;  %v1255_v35 = vmul.f32 %v1223_v5, %v1223_v5  ;;  %v1192_v37 = vsub.f32 %v1123_v26, %v3650_v18  ;;  %1783 = vadd.xlane.f32.xlu0 %v3749_v2 }
 0x2f4   : > { %v3005_v40 = vpop.eup %3004  ;;  %v1240_v42 = vmul.f32 %v1208_v24, %v1208_v24  ;;  %v1177_v43 = vsub.f32 %v1039_v28, %v3650_v18  ;;  %1781 = vadd.xlane.f32.xlu1 %v3753_v22  ;;  %2858 = vmatmul.mubr.msk.f32.gmra.mrb[2].mxu1 %vm1365_vm5, %v3003_v29 }
 0x2f5   : > { %3014 = vpow2.f32 %v1340_v30  ;;  %v1287_v50 = vsub.f32 0.0, %v1255_v35  ;;  %v1224_v51 = vmul.f32 1.8, %v1192_v37  ;;  %2836 = vmatprep.mubr.msk.f32.mxu0 %vm1365_vm5, %v3005_v40  ;;  %v651_v30 = vadd.f32 %v3776_v55, %v3774_v54 }
 0x2f6   : > { %3016 = vpow2.f32 %v1310_v34  ;;  %v1272_v56 = vsub.f32 0.0, %v1240_v42  ;;  %v1209_v57 = vmul.f32 1.8, %v1177_v43  ;;  %v1127_v58 = vpop.permute.xlu1 %1126  ;;  %v1046_v62 = vpop.permute.xlu0 %1045 }
 0x2f7   : > { %v3007_v1 = vpop.eup %3006  ;;  %v1342_v61 = vmul.f32 1.442695, %v1287_v50  ;;  %v1256_v59 = vmul.f32 %v1224_v51, %v1224_v51  ;;  %v1193_v5 = vsub.f32 %v1127_v58, %v3650_v18  ;;  %v1178_v24 = vsub.f32 %v1046_v62, %v3650_v18  ;;  %1787 = vadd.xlane.f32.xlu0 %v3768_v45 }
 0x2f8   : > { %v3009_v26 = vpop.eup %3008  ;;  %v1312_v28 = vmul.f32 1.442695, %v1272_v56  ;;  %v1241_v29 = vmul.f32 %v1209_v57, %v1209_v57  ;;  %1785 = vadd.xlane.f32.xlu1 %v3772_v53  ;;  %2860 = vmatprep.mubr.msk.f32.mxu1 %vm1365_vm5, %v3007_v1  ;;  %s4434_s25 = scalar_lea.hbm %s4646_s24, %s2782_s19 }
 0x2f9   : > { %3018 = vpow2.f32 %v1342_v61  ;;  %v1288_v34 = vsub.f32 0.0, %v1256_v59  ;;  %v1225_v35 = vmul.f32 1.8, %v1193_v5  ;;  %v1210_v37 = vmul.f32 1.8, %v1178_v24  ;;  %2837 = vmatmul.mubr.msk.f32.gmra.mrb[4].mxu0 %vm1365_vm5, %v3009_v26 }
 0x2fa   : > { %3020 = vpow2.f32 %v1312_v28  ;;  %v1273_v40 = vsub.f32 0.0, %v1241_v29  ;;  %v1134_v42 = vpop.permute.xlu1 %1133  ;;  %v1050_v43 = vpop.permute.xlu0 %1049 }
 0x2fb   : > { %v3011_v50 = vpop.eup %3010  ;;  %v1344_v51 = vmul.f32 1.442695, %v1288_v34  ;;  %v1257_v56 = vmul.f32 %v1225_v35, %v1225_v35  ;;  %v1242_v57 = vmul.f32 %v1210_v37, %v1210_v37  ;;  %v1194_v58 = vsub.f32 %v1134_v42, %v3650_v18  ;;  %655 = vadd.xlane.f32.xlu0 %v654_v63 }
 0x2fc   : > { %v3013_v62 = vpop.eup %3012  ;;  %v1314_v1 = vmul.f32 1.442695, %v1273_v40  ;;  %v1179_v61 = vsub.f32 %v1050_v43, %v3650_v18  ;;  %2861 = vmatmul.mubr.msk.f32.gmra.mrb[4].mxu1 %vm1365_vm5, %v3011_v50  ;;  %652 = vadd.xlane.f32.xlu1 %v651_v30 }
 0x2fd   : > { %3022 = vpow2.f32 %v1344_v51  ;;  %v1289_v59 = vsub.f32 0.0, %v1257_v56  ;;  %v1274_v5 = vsub.f32 0.0, %v1242_v57  ;;  %v1226_v24 = vmul.f32 1.8, %v1194_v58  ;;  %2839 = vmatprep.mubr.msk.f32.mxu0 %vm1365_vm5, %v3013_v62 }
 0x2fe   : > { %3024 = vpow2.f32 %v1314_v1  ;;  %v1211_v26 = vmul.f32 1.8, %v1179_v61  ;;  %v1138_v28 = vpop.permute.xlu1 %1137  ;;  %v1057_v29 = vpop.permute.xlu0 %1056 }
 0x2ff   : > { %v3015_v34 = vpop.eup %3014  ;;  %v1346_v35 = vmul.f32 1.442695, %v1289_v59  ;;  %v1316_v63 = vmul.f32 1.442695, %v1274_v5  ;;  %v1258_v37 = vmul.f32 %v1226_v24, %v1226_v24  ;;  %v1195_v40 = vsub.f32 %v1138_v28, %v3650_v18 }
 0x300   : > { %v3017_v42 = vpop.eup %3016  ;;  %v1243_v43 = vmul.f32 %v1211_v26, %v1211_v26  ;;  %v1180_v30 = vsub.f32 %v1057_v29, %v3650_v18  ;;  %2863 = vmatprep.mubr.msk.f32.mxu1 %vm1365_vm5, %v3015_v34 }
 0x301   : > { %3026 = vpow2.f32 %v1346_v35  ;;  %v1290_v50 = vsub.f32 0.0, %v1258_v37  ;;  %v1227_v51 = vmul.f32 1.8, %v1195_v40  ;;  %2840 = vmatmul.mubr.msk.f32.gmra.mrb[6].mxu0 %vm1365_vm5, %v3017_v42 }
 0x302   : > { %3028 = vpow2.f32 %v1316_v63  ;;  %v1275_v56 = vsub.f32 0.0, %v1243_v43  ;;  %v1212_v57 = vmul.f32 1.8, %v1180_v30  ;;  %v1145_v58 = vpop.permute.xlu1 %1144  ;;  %v1061_v62 = vpop.permute.xlu0 %1060 }
 0x303   : > { %v3019_v1 = vpop.eup %3018  ;;  %v1348_v61 = vmul.f32 1.442695, %v1290_v50  ;;  %v1259_v59 = vmul.f32 %v1227_v51, %v1227_v51  ;;  %v1196_v5 = vsub.f32 %v1145_v58, %v3650_v18  ;;  %v1181_v24 = vsub.f32 %v1061_v62, %v3650_v18 }
 0x304   : > { %v3021_v26 = vpop.eup %3020  ;;  %v1318_v28 = vmul.f32 1.442695, %v1275_v56  ;;  %v1244_v29 = vmul.f32 %v1212_v57, %v1212_v57  ;;  %2864 = vmatmul.mubr.msk.f32.gmra.mrb[6].mxu1 %vm1365_vm5, %v3019_v1 }
 0x305   : > { %3030 = vpow2.f32 %v1348_v61  ;;  %v1291_v34 = vsub.f32 0.0, %v1259_v59  ;;  %v1228_v35 = vmul.f32 1.8, %v1196_v5  ;;  %v1213_v63 = vmul.f32 1.8, %v1181_v24  ;;  %2842 = vmatprep.mubr.msk.f32.mxu0 %vm1365_vm5, %v3021_v26 }
 0x306   : > { %3032 = vpow2.f32 %v1318_v28  ;;  %v1276_v37 = vsub.f32 0.0, %v1244_v29  ;;  %v1149_v40 = vpop.permute.xlu1 %1148  ;;  %v1068_v42 = vpop.permute.xlu0 %1067 }
 0x307   : > { %v3023_v43 = vpop.eup %3022  ;;  %v1350_v30 = vmul.f32 1.442695, %v1291_v34  ;;  %v1260_v50 = vmul.f32 %v1228_v35, %v1228_v35  ;;  %v1245_v51 = vmul.f32 %v1213_v63, %v1213_v63  ;;  %v1197_v58 = vsub.f32 %v1149_v40, %v3650_v18 }
 0x308   : > { %v3025_v56 = vpop.eup %3024  ;;  %v1320_v57 = vmul.f32 1.442695, %v1276_v37  ;;  %v1182_v62 = vsub.f32 %v1068_v42, %v3650_v18  ;;  %2866 = vmatprep.mubr.msk.f32.mxu1 %vm1365_vm5, %v3023_v43 }
 0x309   : > { %3034 = vpow2.f32 %v1350_v30  ;;  %v1292_v1 = vsub.f32 0.0, %v1260_v50  ;;  %v1277_v61 = vsub.f32 0.0, %v1245_v51  ;;  %v1229_v59 = vmul.f32 1.8, %v1197_v58  ;;  %2843 = vmatmul.mubr.msk.f32.gmra.mrb[8].mxu0 %vm1365_vm5, %v3025_v56 }
 0x30a   : > { %3036 = vpow2.f32 %v1320_v57  ;;  %v1214_v5 = vmul.f32 1.8, %v1182_v62  ;;  %v1156_v24 = vpop.permute.xlu1 %1155  ;;  %v1072_v26 = vpop.permute.xlu0 %1071 }
 0x30b   : > { %v3027_v28 = vpop.eup %3026  ;;  %v1352_v29 = vmul.f32 1.442695, %v1292_v1  ;;  %v1322_v34 = vmul.f32 1.442695, %v1277_v61  ;;  %v1261_v35 = vmul.f32 %v1229_v59, %v1229_v59  ;;  %v1198_v63 = vsub.f32 %v1156_v24, %v3650_v18 }
 0x30c   : > { %v3029_v37 = vpop.eup %3028  ;;  %v1246_v40 = vmul.f32 %v1214_v5, %v1214_v5  ;;  %v1183_v42 = vsub.f32 %v1072_v26, %v3650_v18  ;;  %2867 = vmatmul.mubr.msk.f32.gmra.mrb[8].mxu1 %vm1365_vm5, %v3027_v28 }
 0x30d   : > { %3038 = vpow2.f32 %v1352_v29  ;;  %v1293_v43 = vsub.f32 0.0, %v1261_v35  ;;  %v1230_v30 = vmul.f32 1.8, %v1198_v63  ;;  %2845 = vmatprep.mubr.msk.f32.mxu0 %vm1365_vm5, %v3029_v37 }
 0x30e   : > { %3040 = vpow2.f32 %v1322_v34  ;;  %v1278_v50 = vsub.f32 0.0, %v1246_v40  ;;  %v1215_v51 = vmul.f32 1.8, %v1183_v42  ;;  %v1160_v58 = vpop.permute.xlu1 %1159 }
 0x30f   : > { %v3031_v56 = vpop.eup %3030  ;;  %v1354_v57 = vmul.f32 1.442695, %v1293_v43  ;;  %v1262_v62 = vmul.f32 %v1230_v30, %v1230_v30  ;;  %v1199_v1 = vsub.f32 %v1160_v58, %v3650_v18 }
 0x310   : > { %v3033_v61 = vpop.eup %3032  ;;  %v1324_v59 = vmul.f32 1.442695, %v1278_v50  ;;  %v1247_v5 = vmul.f32 %v1215_v51, %v1215_v51  ;;  %2869 = vmatprep.mubr.msk.f32.mxu1 %vm1365_vm5, %v3031_v56 }
 0x311   : > { %3042 = vpow2.f32 %v1354_v57  ;;  %v1294_v24 = vsub.f32 0.0, %v1262_v62  ;;  %v1231_v26 = vmul.f32 1.8, %v1199_v1  ;;  %2846 = vmatmul.mubr.msk.f32.gmra.mrb[10].mxu0 %vm1365_vm5, %v3033_v61 }
 0x312   : > { %3044 = vpow2.f32 %v1324_v59  ;;  %v1279_v28 = vsub.f32 0.0, %v1247_v5 }
 0x313   : > { %v3035_v29 = vpop.eup %3034  ;;  %v1356_v34 = vmul.f32 1.442695, %v1294_v24  ;;  %v1263_v35 = vmul.f32 %v1231_v26, %v1231_v26 }
 0x314   : > { %v3037_v63 = vpop.eup %3036  ;;  %v1326_v37 = vmul.f32 1.442695, %v1279_v28  ;;  %2870 = vmatmul.mubr.msk.f32.gmra.mrb[10].mxu1 %vm1365_vm5, %v3035_v29 }
 0x315   : > { %3046 = vpow2.f32 %v1356_v34  ;;  %v1295_v18 = vsub.f32 0.0, %v1263_v35  ;;  %2848 = vmatprep.mubr.msk.f32.mxu0 %vm1365_vm5, %v3037_v63 }
 0x316   : > { %3048 = vpow2.f32 %v1326_v37 }
 0x317   : > { %v3039_v40 = vpop.eup %3038  ;;  %v1358_v42 = vmul.f32 1.442695, %v1295_v18 }
 0x318   : > { %v3041_v43 = vpop.eup %3040  ;;  %2872 = vmatprep.mubr.msk.f32.mxu1 %vm1365_vm5, %v3039_v40 }
 0x319   : > { %3050 = vpow2.f32 %v1358_v42  ;;  %2849 = vmatmul.mubr.msk.f32.gmra.mrb[12].mxu0 %vm1365_vm5, %v3041_v43 }
 0x31b   : > { %v3043_v30 = vpop.eup %3042 }
 0x31c   : > { %v3045_v50 = vpop.eup %3044  ;;  %2873 = vmatmul.mubr.msk.f32.gmra.mrb[12].mxu1 %vm1365_vm5, %v3043_v30 }
 0x31d   : > { %2851 = vmatprep.mubr.msk.f32.mxu0 %vm1365_vm5, %v3045_v50 }
 0x31f   : > { %v3047_v51 = vpop.eup %3046 }
 0x320   : > { %v3049_v58 = vpop.eup %3048  ;;  %2875 = vmatprep.mubr.msk.f32.mxu1 %vm1365_vm5, %v3047_v51 }
 0x321   : > { %2852 = vmatmul.mubr.msk.f32.gmra.mrb[14].mxu0 %vm1365_vm5, %v3049_v58 }
 0x323   : > { %v3051_v56 = vpop.eup %3050 }
 0x324   : > { %2876 = vmatmul.mubr.msk.f32.gmra.mrb[14].mxu1 %vm1365_vm5, %v3051_v56 }
 0x344   : > { %v1726_v57 = vpop.xlane.xlu0 %1725 }
 0x345   : > { %v1790_v62 = vmul.f32 0.0078125, %v1726_v57 }
 0x347   : > { %v3821_v1 = vsub.f32 %v3608_v6, %v1790_v62 }
 0x348   : > { %v1730_v61 = vpop.xlane.xlu0 %1729 }
 0x349   : > { %v1792_v59 = vmul.f32 0.0078125, %v1730_v61  ;;  %v1854_v5 = vmul.f32 %v3821_v1, %v3821_v1 }
 0x34b   : > { %v3826_v24 = vsub.f32 %v3612_v4, %v1792_v59  ;;  %1886 = vadd.xlane.f32.xlu1 %v1854_v5 }
 0x34c   : > { %v1732_v26 = vpop.xlane.xlu0 %1731 }
 0x34d   : > { %v1728_v28 = vpop.xlane.xlu1 %1727  ;;  %v1793_v29 = vmul.f32 0.0078125, %v1732_v26  ;;  %v1856_v34 = vmul.f32 %v3826_v24, %v3826_v24 }
 0x34e   : > { %v1791_v35 = vmul.f32 0.0078125, %v1728_v28 }
 0x34f   : > { %1890 = vadd.xlane.f32.xlu1 %v1856_v34  ;;  %v3834_v63 = vsub.f32 %v3616_v8, %v1793_v29 }
 0x350   : > { %v3831_v6 = vsub.f32 %v3619_v9, %v1791_v35  ;;  %v1736_v37 = vpop.xlane.xlu0 %1735 }
 0x351   : > { %v1734_v18 = vpop.xlane.xlu1 %1733  ;;  %v1795_v40 = vmul.f32 0.0078125, %v1736_v37  ;;  %v1857_v9 = vmul.f32 %v3834_v63, %v3834_v63 }
 0x352   : > { %v1794_v4 = vmul.f32 0.0078125, %v1734_v18  ;;  %v1855_v42 = vmul.f32 %v3831_v6, %v3831_v6 }
 0x353   : > { %v3842_v30 = vsub.f32 %v3624_v11, %v1795_v40 }
 0x354   : > { %v3839_v43 = vsub.f32 %v3627_v13, %v1794_v4  ;;  %1888 = vadd.xlane.f32.xlu0 %v1855_v42  ;;  %v1740_v50 = vpop.xlane.xlu0 %1739 }
 0x355   : > { %v1738_v8 = vpop.xlane.xlu1 %1737  ;;  %v1797_v51 = vmul.f32 0.0078125, %v1740_v50  ;;  %v1859_v62 = vmul.f32 %v3842_v30, %v3842_v30 }
 0x356   : > { %v1796_v58 = vmul.f32 0.0078125, %v1738_v8  ;;  %v1858_v56 = vmul.f32 %v3839_v43, %v3839_v43 }
 0x357   : > { %v3852_v13 = vsub.f32 %v3632_v14, %v1797_v51 }
 0x358   : > { %v3849_v57 = vsub.f32 %v3635_v15, %v1796_v58  ;;  %1892 = vadd.xlane.f32.xlu0 %v1857_v9  ;;  %1894 = vadd.xlane.f32.xlu1 %v1858_v56  ;;  %v1744_v11 = vpop.xlane.xlu0 %1743 }
 0x359   : > { %v1742_v61 = vpop.xlane.xlu1 %1741  ;;  %v1799_v59 = vmul.f32 0.0078125, %v1744_v11  ;;  %v1861_v29 = vmul.f32 %v3852_v13, %v3852_v13 }
 0x35a   : > { %v1798_v5 = vmul.f32 0.0078125, %v1742_v61  ;;  %v1860_v26 = vmul.f32 %v3849_v57, %v3849_v57 }
 0x35b   : > { %v3862_v15 = vsub.f32 %v3640_v16, %v1799_v59 }
 0x35c   : > { %v3859_v28 = vsub.f32 %v3643_v17, %v1798_v5  ;;  %1896 = vadd.xlane.f32.xlu0 %v1859_v62  ;;  %1898 = vadd.xlane.f32.xlu1 %v1860_v26  ;;  %v1748_v14 = vpop.xlane.xlu0 %1747 }
 0x35d   : > { %v1746_v34 = vpop.xlane.xlu1 %1745  ;;  %v1801_v35 = vmul.f32 0.0078125, %v1748_v14  ;;  %v1863_v4 = vmul.f32 %v3862_v15, %v3862_v15 }
 0x35e   : > { %v1800_v37 = vmul.f32 0.0078125, %v1746_v34  ;;  %v1862_v18 = vmul.f32 %v3859_v28, %v3859_v28 }
 0x35f   : > { %v3872_v17 = vsub.f32 %v3653_v19, %v1801_v35 }
 0x360   : > { %v3869_v40 = vsub.f32 %v3656_v20, %v1800_v37  ;;  %1900 = vadd.xlane.f32.xlu0 %v1861_v29  ;;  %1902 = vadd.xlane.f32.xlu1 %v1862_v18  ;;  %v1752_v16 = vpop.xlane.xlu0 %1751 }
 0x361   : > { %v1750_v42 = vpop.xlane.xlu1 %1749  ;;  %v1803_v50 = vmul.f32 0.0078125, %v1752_v16  ;;  %v1865_v58 = vmul.f32 %v3872_v17, %v3872_v17 }
 0x362   : > { %v1802_v9 = vmul.f32 0.0078125, %v1750_v42  ;;  %v1864_v8 = vmul.f32 %v3869_v40, %v3869_v40 }
 0x363   : > { %v3882_v20 = vsub.f32 %v3662_v23, %v1803_v50 }
 0x364   : > { %v3879_v51 = vsub.f32 %v3665_v25, %v1802_v9  ;;  %1904 = vadd.xlane.f32.xlu0 %v1863_v4  ;;  %1906 = vadd.xlane.f32.xlu1 %v1864_v8  ;;  %v1756_v19 = vpop.xlane.xlu0 %1755 }
 0x365   : > { %v1754_v56 = vpop.xlane.xlu1 %1753  ;;  %v1805_v11 = vmul.f32 0.0078125, %v1756_v19  ;;  %v1867_v5 = vmul.f32 %v3882_v20, %v3882_v20 }
 0x366   : > { %v1804_v62 = vmul.f32 0.0078125, %v1754_v56  ;;  %v1866_v61 = vmul.f32 %v3879_v51, %v3879_v51 }
 0x367   : > { %v3892_v25 = vsub.f32 %v3672_v31, %v1805_v11 }
 0x368   : > { %v3889_v59 = vsub.f32 %v3675_v36, %v1804_v62  ;;  %1908 = vadd.xlane.f32.xlu0 %v1865_v58  ;;  %1910 = vadd.xlane.f32.xlu1 %v1866_v61  ;;  %v1760_v23 = vpop.xlane.xlu0 %1759 }
 0x369   : > { %v1758_v26 = vpop.xlane.xlu1 %1757  ;;  %v1807_v14 = vmul.f32 0.0078125, %v1760_v23  ;;  %v1869_v37 = vmul.f32 %v3892_v25, %v3892_v25 }
 0x36a   : > { %v1806_v29 = vmul.f32 0.0078125, %v1758_v26  ;;  %v1868_v34 = vmul.f32 %v3889_v59, %v3889_v59 }
 0x36b   : > { %v3902_v36 = vsub.f32 %v3682_v44, %v1807_v14 }
 0x36c   : > { %v3899_v35 = vsub.f32 %v3685_v49, %v1806_v29  ;;  %1912 = vadd.xlane.f32.xlu0 %v1867_v5  ;;  %1914 = vadd.xlane.f32.xlu1 %v1868_v34  ;;  %v1764_v31 = vpop.xlane.xlu0 %1763 }
 0x36d   : > { %v1762_v18 = vpop.xlane.xlu1 %1761  ;;  %v1809_v16 = vmul.f32 0.0078125, %v1764_v31  ;;  %v1871_v9 = vmul.f32 %v3902_v36, %v3902_v36 }
 0x36e   : > { %v1808_v4 = vmul.f32 0.0078125, %v1762_v18  ;;  %v1870_v42 = vmul.f32 %v3899_v35, %v3899_v35 }
 0x36f   : > { %v3912_v49 = vsub.f32 %v3692_v60, %v1809_v16 }
 0x370   : > { %v3909_v50 = vsub.f32 %v3695_v0, %v1808_v4  ;;  %1916 = vadd.xlane.f32.xlu0 %v1869_v37  ;;  %1918 = vadd.xlane.f32.xlu1 %v1870_v42  ;;  %v1768_v44 = vpop.xlane.xlu0 %1767 }
 0x371   : > { %4571 = vst [vmem:[#allocation16_spill] sm:$0xff] %v3912_v49  ;;  %v1766_v8 = vpop.xlane.xlu1 %1765  ;;  %v1811_v19 = vmul.f32 0.0078125, %v1768_v44  ;;  %v1873_v62 = vmul.f32 %v3912_v49, %v3912_v49 }
 0x372   : > { %v1810_v58 = vmul.f32 0.0078125, %v1766_v8  ;;  %v1872_v56 = vmul.f32 %v3909_v50, %v3909_v50 }
 0x373   : > { %v3922_v0 = vsub.f32 %v3702_v27, %v1811_v19 }
 0x374   : > { %v3919_v11 = vsub.f32 %v3705_v33, %v1810_v58  ;;  %1920 = vadd.xlane.f32.xlu0 %v1871_v9  ;;  %1922 = vadd.xlane.f32.xlu1 %v1872_v56  ;;  %v1772_v60 = vpop.xlane.xlu0 %1771 }
 0x375   : > { %4573 = vst [vmem:[#allocation18_spill] sm:$0xff] %v3922_v0  ;;  %v1770_v61 = vpop.xlane.xlu1 %1769  ;;  %v1813_v23 = vmul.f32 0.0078125, %v1772_v60  ;;  %v1875_v29 = vmul.f32 %v3922_v0, %v3922_v0 }
 0x376   : > { %4572 = vst [vmem:[#allocation17_spill] sm:$0xff] %v3919_v11  ;;  %v1812_v5 = vmul.f32 0.0078125, %v1770_v61  ;;  %v1874_v26 = vmul.f32 %v3919_v11, %v3919_v11 }
 0x377   : > { %v3932_v33 = vsub.f32 %v3713_v47, %v1813_v23 }
 0x378   : > { %v3929_v14 = vsub.f32 %v3716_v52, %v1812_v5  ;;  %1924 = vadd.xlane.f32.xlu0 %v1873_v62  ;;  %1926 = vadd.xlane.f32.xlu1 %v1874_v26  ;;  %v1776_v27 = vpop.xlane.xlu0 %1775 }
 0x379   : > { %4575 = vst [vmem:[#allocation20_spill] sm:$0xff] %v3932_v33  ;;  %v1774_v34 = vpop.xlane.xlu1 %1773  ;;  %v1815_v31 = vmul.f32 0.0078125, %v1776_v27  ;;  %v1877_v4 = vmul.f32 %v3932_v33, %v3932_v33 }
 0x37a   : > { %4574 = vst [vmem:[#allocation19_spill] sm:$0xff] %v3929_v14  ;;  %v1814_v37 = vmul.f32 0.0078125, %v1774_v34  ;;  %v1876_v18 = vmul.f32 %v3929_v14, %v3929_v14 }
 0x37b   : > { %v3942_v52 = vsub.f32 %v3724_v3, %v1815_v31 }
 0x37c   : > { %v3939_v16 = vsub.f32 %v3728_v21, %v1814_v37  ;;  %1928 = vadd.xlane.f32.xlu0 %v1875_v29  ;;  %1930 = vadd.xlane.f32.xlu1 %v1876_v18  ;;  %v1780_v47 = vpop.xlane.xlu0 %1779 }
 0x37d   : > { %4577 = vst [vmem:[#allocation22_spill] sm:$0xff] %v3942_v52  ;;  %v1778_v42 = vpop.xlane.xlu1 %1777  ;;  %v1817_v44 = vmul.f32 0.0078125, %v1780_v47  ;;  %v1879_v58 = vmul.f32 %v3942_v52, %v3942_v52 }
 0x37e   : > { %4576 = vst [vmem:[#allocation21_spill] sm:$0xff] %v3939_v16  ;;  %v1816_v9 = vmul.f32 0.0078125, %v1778_v42  ;;  %v1878_v8 = vmul.f32 %v3939_v16, %v3939_v16 }
 0x37f   : > { %v3952_v21 = vsub.f32 %v3736_v41, %v1817_v44 }
 0x380   : > { %v3949_v19 = vsub.f32 %v3740_v48, %v1816_v9  ;;  %1932 = vadd.xlane.f32.xlu0 %v1877_v4  ;;  %1934 = vadd.xlane.f32.xlu1 %v1878_v8  ;;  %v1784_v3 = vpop.xlane.xlu0 %1783 }
 0x381   : > { %4579 = vst [vmem:[#allocation24_spill] sm:$0xff] %v3952_v21  ;;  %v1782_v56 = vpop.xlane.xlu1 %1781  ;;  %v1819_v60 = vmul.f32 0.0078125, %v1784_v3  ;;  %v1881_v5 = vmul.f32 %v3952_v21, %v3952_v21 }
 0x382   : > { %4578 = vst [vmem:[#allocation23_spill] sm:$0xff] %v3949_v19  ;;  %v1818_v62 = vmul.f32 0.0078125, %v1782_v56  ;;  %v1880_v61 = vmul.f32 %v3949_v19, %v3949_v19 }
 0x383   : > { %v3962_v48 = vsub.f32 %v3749_v2, %v1819_v60 }
 0x384   : > { %v3959_v23 = vsub.f32 %v3753_v22, %v1818_v62  ;;  %1936 = vadd.xlane.f32.xlu0 %v1879_v58  ;;  %1938 = vadd.xlane.f32.xlu1 %v1880_v61  ;;  %v1788_v41 = vpop.xlane.xlu0 %1787 }
 0x385   : > { %4581 = vst [vmem:[#allocation26_spill] sm:$0xff] %v3962_v48  ;;  %v1786_v26 = vpop.xlane.xlu1 %1785  ;;  %v1821_v27 = vmul.f32 0.0078125, %v1788_v41  ;;  %v1883_v37 = vmul.f32 %v3962_v48, %v3962_v48 }
 0x386   : > { %4580 = vst [vmem:[#allocation25_spill] sm:$0xff] %v3959_v23  ;;  %v1820_v29 = vmul.f32 0.0078125, %v1786_v26  ;;  %v1882_v34 = vmul.f32 %v3959_v23, %v3959_v23 }
 0x387   : > { %v3972_v22 = vsub.f32 %v3768_v45, %v1821_v27 }
 0x388   : > { %v3969_v31 = vsub.f32 %v3772_v53, %v1820_v29  ;;  %1940 = vadd.xlane.f32.xlu0 %v1881_v5  ;;  %1942 = vadd.xlane.f32.xlu1 %v1882_v34  ;;  %v656_v2 = vpop.xlane.xlu0 %655 }
 0x389   : > { %4583 = vst [vmem:[#allocation28_spill] sm:$0xff] %v3972_v22  ;;  %v653_v18 = vpop.xlane.xlu1 %652  ;;  %v659_v47 = vmul.f32 0.00390625, %v656_v2  ;;  %v1885_v8 = vmul.f32 %v3972_v22, %v3972_v22 }
 0x38a   : > { %4582 = vst [vmem:[#allocation27_spill] sm:$0xff] %v3969_v31  ;;  %v658_v4 = vmul.f32 0.00390625, %v653_v18  ;;  %v1884_v42 = vmul.f32 %v3969_v31, %v3969_v31 }
 0x38b   : > { %v3979_v44 = vsub.f32 %v3760_v38, %v659_v47  ;;  %v3982_v53 = vsub.f32 %v3762_v39, %v659_v47 }
 0x38c   : > { %v3985_v45 = vsub.f32 %v3774_v54, %v658_v4  ;;  %v3988_v9 = vsub.f32 %v3776_v55, %v658_v4  ;;  %1944 = vadd.xlane.f32.xlu0 %v1883_v37  ;;  %1946 = vadd.xlane.f32.xlu1 %v1884_v42 }
 0x38d   : > { %4584 = vst [vmem:[#allocation29_spill] sm:$0xff] %v3979_v44  ;;  %4585 = vst [vmem:[#allocation30_spill] sm:$0xff] %v3982_v53  ;;  %v666_v3 = vmul.f32 %v3979_v44, %v3979_v44  ;;  %v667_v38 = vmul.f32 %v3982_v53, %v3982_v53  ;;  %v2154_v53 = vld [vmem:[%s3497_s18] sm:$0xff] }
 0x38e   : > { %4586 = vst [vmem:[#allocation31_spill] sm:$0xff] %v3985_v45  ;;  %4587 = vst [vmem:[#allocation32_spill] sm:$0xff] %v3988_v9  ;;  %v664_v39 = vmul.f32 %v3985_v45, %v3985_v45  ;;  %v665_v54 = vmul.f32 %v3988_v9, %v3988_v9  ;;  %v2192_v44 = vcombine.high %v2154_v53, %v2154_v53 }
 0x38f   : > { %v671_v58 = vadd.f32 %v667_v38, %v666_v3  ;;  %v2199_v22 = vrot.slane %v2154_v53, %v3503_v7 }
 0x390   : > { %1948 = vadd.xlane.f32.xlu0 %v1885_v8  ;;  %v668_v55 = vadd.f32 %v665_v54, %v664_v39  ;;  %v2206_v48 = vrot.slane %v2192_v44, %v3503_v7 }
 0x391   : > { %v2207_v23 = vcombine.high %v2199_v22, %v2199_v22 }
 0x392   : > { %669 = vadd.xlane.f32.xlu1 %v668_v55 }
 0x393   : > { %v4054_v44 = vrot.slane %v2207_v23, %v3503_v7 }
 0x394   : > { %672 = vadd.xlane.f32.xlu0 %v671_v58 }
 0x3bc   : > { %v4000_v56 = vpop.f32.mrb[0].mxu0 }
 0x3bd   : > { %v4002_v60 = vpop.f32.mrb[1].mxu0 }
 0x3bf   : > { %v4004_v62 = vpop.f32.mrb[0].mxu1 }
 0x3c0   : > { %4588 = vst [vmem:[#allocation33_spill] sm:$0xff] %v4004_v62  ;;  %v4006_v61 = vpop.f32.mrb[1].mxu1 }
 0x3c4   : > { %v4008_v41 = vpop.f32.mrb[2].mxu0 }
 0x3c5   : > { %v4010_v5 = vpop.f32.mrb[3].mxu0 }
 0x3c7   : > { %v4012_v26 = vpop.f32.mrb[2].mxu1 }
 0x3c8   : > { %4589 = vst [vmem:[#allocation34_spill] sm:$0xff] %v4012_v26  ;;  %v4014_v27 = vpop.f32.mrb[3].mxu1 }
 0x3c9   : > { %4590 = vst [vmem:[#allocation35_spill] sm:$0xff] %v4014_v27  ;;  %v4117_v27 = vld [vmem:[%s4095_s17] sm:$0xff] }
 0x3cc   : > { %v4016_v29 = vpop.f32.mrb[4].mxu0 }
 0x3cd   : > { %v4018_v34 = vpop.f32.mrb[5].mxu0 }
 0x3cf   : > { %v4020_v2 = vpop.f32.mrb[4].mxu1 }
 0x3d0   : > { %4591 = vst [vmem:[#allocation36_spill] sm:$0xff] %v4020_v2  ;;  %v4022_v37 = vpop.f32.mrb[5].mxu1 }
 0x3d1   : > { %4592 = vst [vmem:[#allocation37_spill] sm:$0xff] %v4022_v37 }
 0x3d4   : > { %v4024_v18 = vpop.f32.mrb[6].mxu0 }
 0x3d5   : > { %v4026_v47 = vpop.f32.mrb[7].mxu0 }
 0x3d7   : > { %v4028_v4 = vpop.f32.mrb[6].mxu1 }
 0x3d8   : > { %4593 = vst [vmem:[#allocation38_spill] sm:$0xff] %v4028_v4  ;;  %v4030_v42 = vpop.f32.mrb[7].mxu1  ;;  %v1887_v8 = vpop.xlane.xlu1 %1886 }
 0x3d9   : > { %4594 = vst [vmem:[#allocation39_spill] sm:$0xff] %v4030_v42  ;;  %v1950_v3 = vmul.f32 0.0078125, %v1887_v8  ;;  %v3121_v8 = vld.sshfl [vmem:[%s3497_s18 + $0x8] sm:$0xff pattern:$0x75316420] }
 0x3db   : > { %v1982_v38 = vadd.f32 1e-05, %v1950_v3 }
 0x3dc   : > { %v4032_v39 = vpop.f32.mrb[8].mxu0  ;;  %v1891_v54 = vpop.xlane.xlu1 %1890 }
 0x3dd   : > { %3052 = vrsqrt.f32 %v1982_v38  ;;  %v4034_v55 = vpop.f32.mrb[9].mxu0  ;;  %v1952_v58 = vmul.f32 0.0078125, %v1891_v54  ;;  %v2256_v38 = vcombine.high %v3121_v8, %v3121_v8  ;;  %v2208_v54 = vcombine.high %v2206_v48, %v2206_v48 }
 0x3df   : > { %v1984_v9 = vadd.f32 1e-05, %v1952_v58  ;;  %v4037_v45 = vpop.f32.mrb[8].mxu1  ;;  %v2215_v58 = vrot.slane %v2199_v22, %v3503_v7  ;;  %v4059_v22 = vld [vmem:[%s4519_s9] ss:$0 sm:$0xff]  ;;  %v4074_v16 = vrot.slane %v2208_v54, %v3503_v7 }
 0x3e0   : > { %4595 = vst [vmem:[#allocation40_spill] sm:$0xff] %v4037_v45  ;;  %v4039_v46 = vpop.f32.mrb[9].mxu1 }
 0x3e1   : > { %4596 = vst [vmem:[#allocation41_spill] sm:$0xff] %v4039_v46  ;;  %3054 = vrsqrt.f32 %v1984_v9  ;;  %v1889_v31 = vpop.xlane.xlu0 %1888  ;;  %v2264_v46 = vrot.slane %v3121_v8, %v3503_v7 }
 0x3e2   : > { %v1951_v3 = vmul.f32 0.0078125, %v1889_v31  ;;  %v4051_v31 = vrot.slane %v2206_v48, %v3503_v7 }
 0x3e4   : > { %v1983_v21 = vadd.f32 1e-05, %v1951_v3  ;;  %v4044_v4 = vpop.f32.mrb[10].mxu0  ;;  %v2237_v3 = vcombine.high %v2215_v58, %v2215_v58 }
 0x3e5   : > { %v4047_v19 = vpop.f32.mrb[11].mxu0  ;;  %v1893_v45 = vpop.xlane.xlu0 %1892 }
 0x3e6   : > { %3056 = vrsqrt.f32 %v1983_v21  ;;  %v1953_v53 = vmul.f32 0.0078125, %v1893_v45  ;;  %v1895_v9 = vpop.xlane.xlu1 %1894  ;;  %v4065_v21 = vrot.slane %v3506_v10, %v3503_v7  ;;  %v4068_v45 = vrot.slane %v2256_v38, %v3503_v7  ;;  %v4081_v10 = vld [vmem:[%s4520_s10] ss:$0 sm:$0xff] }
 0x3e7   : > { %v3053_v42 = vpop.eup %3052  ;;  %v1954_v52 = vmul.f32 0.0078125, %v1895_v9  ;;  %v4061_v2 = vpop.f32.mrb[10].mxu1 }
 0x3e8   : > { %4597 = vst [vmem:[#allocation42_spill] sm:$0xff] %v4061_v2  ;;  %v2046_v48 = vmul.f32 %v3053_v42, %v3821_v1  ;;  %v1985_v23 = vadd.f32 1e-05, %v1953_v53  ;;  %v4071_v8 = vpop.f32.mrb[11].mxu1  ;;  %v2286_v2 = vcombine.high %v2264_v46, %v2264_v46  ;;  %v2239_v1 = vcombine.high %v4054_v44, %v4054_v44 }
 0x3e9   : > { %4598 = vst [vmem:[#allocation43_spill] sm:$0xff] %v4071_v8  ;;  %v1986_v38 = vadd.f32 1e-05, %v1954_v52  ;;  %v1897_v37 = vpop.xlane.xlu0 %1896  ;;  %v4089_v8 = vrot.slane %v2215_v58, %v3554_v32  ;;  %v2240_v58 = vcombine.high %v4074_v16, %v4074_v16 }
 0x3ea   : > { %v2084_v42 = vmul.f32 %v4059_v22, %v2046_v48  ;;  %3058 = vrsqrt.f32 %v1985_v23  ;;  %v1955_v7 = vmul.f32 0.0078125, %v1897_v37  ;;  %v1899_v54 = vpop.xlane.xlu1 %1898 }
 0x3eb   : > { %v3055_v53 = vpop.eup %3054  ;;  %3060 = vrsqrt.f32 %v1986_v38  ;;  %v1956_v33 = vmul.f32 0.0078125, %v1899_v54  ;;  %v4107_v38 = vrot.slane %v4054_v44, %v3554_v32  ;;  %v4110_v54 = vrot.slane %v2237_v3, %v3554_v32 }
 0x3ec   : > { %v2122_v37 = vadd.f32 %v4081_v10, %v2084_v42  ;;  %v2048_v48 = vmul.f32 %v3055_v53, %v3826_v24  ;;  %v1987_v23 = vadd.f32 1e-05, %v1955_v7  ;;  %v4101_v9 = vpop.f32.mrb[12].mxu0  ;;  %v4121_v44 = vrot.slane %v4051_v31, %v3554_v32 }
 0x3ed   : > { %v1988_v14 = vadd.f32 1e-05, %v1956_v33  ;;  %v4112_v52 = vpop.f32.mrb[13].mxu0  ;;  %v1901_v26 = vpop.xlane.xlu0 %1900  ;;  %v4124_v3 = vrot.slane %v2264_v46, %v3554_v32  ;;  %v4137_v46 = vrot.slane %v2286_v2, %v3554_v32  ;;  %v4148_v2 = vrot.slane %v2239_v1, %v3554_v32 }
 0x3ee   : > { %v2158_v42 = vadd.f32 %v2122_v37, %v4002_v60  ;;  %v2086_v24 = vmul.f32 %v4059_v22, %v2048_v48  ;;  %3062 = vrsqrt.f32 %v1987_v23  ;;  %v1957_v7 = vmul.f32 0.0078125, %v1901_v26  ;;  %v1903_v53 = vpop.xlane.xlu1 %1902 }
 0x3ef   : > { %4599 = vst [vmem:[#allocation44_spill] sm:$0xff] %v4124_v3  ;;  %3064 = vrsqrt.f32 %v1988_v14  ;;  %v1958_v33 = vmul.f32 0.0078125, %v1903_v53  ;;  %v4126_v0 = vpop.f32.mrb[12].mxu1  ;;  %v4130_v60 = vrot.slane %v4068_v45, %v3554_v32  ;;  %4603 = vst [vmem:[#allocation48_spill] sm:$0xff] %v4137_v46  ;;  %v4141_v14 = vrot.slane %v4065_v21, %v3554_v32 }
 0x3f0   : > { %4600 = vst [vmem:[#allocation45_spill] sm:$0xff] %v4126_v0  ;;  %v3057_v11 = vpop.eup %3056  ;;  %v2370_v26 = vadd.f32 %v4089_v8, %v2158_v42  ;;  %v2124_v37 = vadd.f32 %v4081_v10, %v2086_v24  ;;  %v1989_v48 = vadd.f32 1e-05, %v1957_v7  ;;  %v4134_v23 = vpop.f32.mrb[13].mxu1 }
 0x3f1   : > { %4601 = vst [vmem:[#allocation46_spill] sm:$0xff] %v4130_v60  ;;  %4602 = vst [vmem:[#allocation47_spill] sm:$0xff] %v4134_v23  ;;  %v2047_v53 = vmul.f32 %v3057_v11, %v3831_v6  ;;  %v1990_v0 = vadd.f32 1e-05, %v1958_v33  ;;  %v1905_v62 = vpop.xlane.xlu0 %1904 }
 0x3f2   : > { %4604 = vst [vmem:[#allocation49_spill] sm:$0xff] %v4141_v14  ;;  %v2402_v60 = vadd.f32 %v2370_v26, %v4117_v27  ;;  %v2160_v42 = vadd.f32 %v2124_v37, %v4010_v5  ;;  %3066 = vrsqrt.f32 %v1989_v48  ;;  %v1959_v24 = vmul.f32 0.0078125, %v1905_v62  ;;  %v1907_v7 = vpop.xlane.xlu1 %1906  ;;  %v4182_v14 = vld [vmem:[%s4095_s17 + $0x8] sm:$0xff]  ;;  %s3152_s17 = scalar_lea.vmem %s4428_s16, 4096 }
 0x3f3   : > { %v2085_v23 = vmul.f32 %v4059_v22, %v2047_v53  ;;  %3068 = vrsqrt.f32 %v1990_v0  ;;  %v1960_v46 = vmul.f32 0.0078125, %v1907_v7  ;;  %v4158_v62 = vrot.slane %v4074_v16, %v3554_v32  ;;  %p3153_p8 = scmp.ne.s32.totalorder %s4428_s16, %s3152_s17  ;;  %p3160_p2 = scmp.lt.s32.totalorder %s3158_s2, %s3152_s17 }
 0x3f4   : > { %v3059_v3 = vpop.eup %3058  ;;  %2434 = vst [vmem:[%s4152_s13] sm:$0xff] %v2402_v60  ;;  %v2372_v6 = vadd.f32 %v4107_v38, %v2160_v42  ;;  %v1991_v11 = vadd.f32 1e-05, %v1959_v24  ;;  %v4160_v5 = vpop.f32.mrb[14].mxu0  ;;  %v4606_v0 = vcombine.high %v4051_v31, %v4051_v31  ;;  %v4173_v53 = vrot.slane %v2240_v58, %v3554_v32 }
 0x3f5   : > { %v3061_v33 = vpop.eup %3060  ;;  %v2123_v26 = vadd.f32 %v4081_v10, %v2085_v23  ;;  %v2049_v60 = vmul.f32 %v3059_v3, %v3834_v63  ;;  %v1992_v37 = vadd.f32 1e-05, %v1960_v46  ;;  %v4170_v48 = vpop.f32.mrb[15].mxu0  ;;  %p3154_p0 = pnand %p3153_p8, %p4647_p11  ;;  %p3161_p5 = por %p3160_p2, %p3159_p13 }
 0x3f6   : > { %v4166_v1 = vrot.slane %v4606_v0, %v3554_v32  ;;  %v1909_v16 = vpop.xlane.xlu0 %1908  ;;  %v2404_v42 = vadd.f32 %v2372_v6, %v4117_v27  ;;  %v2050_v31 = vmul.f32 %v3061_v33, %v3839_v43  ;;  %3070 = vrsqrt.f32 %v1991_v11  ;;  %v1911_v7 = vpop.xlane.xlu1 %1910 }
 0x3f7   : > { %v1961_v24 = vmul.f32 0.0078125, %v1909_v16  ;;  %v2159_v23 = vadd.f32 %v4000_v56, %v2123_v26  ;;  %v2087_v63 = vmul.f32 %v4059_v22, %v2049_v60  ;;  %3072 = vrsqrt.f32 %v1992_v37  ;;  %v4179_v46 = vpop.f32.mrb[14].mxu1  ;;  %p3155_p6 = pneg %p3154_p0 }
 0x3f8   : > { %v1962_v3 = vmul.f32 0.0078125, %v1911_v7  ;;  %4607 = vst [vmem:[#allocation50_spill] sm:$0xff] %v4179_v46  ;;  %v3063_v0 = vpop.eup %3062  ;;  %2436 = vst [vmem:[%s4152_s13 + $0x10] sm:$0xff] %v2404_v42  ;;  %v2088_v58 = vmul.f32 %v4059_v22, %v2050_v31  ;;  %v4186_v49 = vpop.f32.mrb[15].mxu1  ;;  %v4608_v43 = vcombine.high %v4068_v45, %v4068_v45  ;;  %v4196_v11 = vrot.slane %v3511_v12, %v3554_v32 }
 0x3f9   : > { %v1993_v6 = vadd.f32 1e-05, %v1961_v24  ;;  %v3065_v33 = vpop.eup %3064  ;;  %v2371_v26 = vadd.f32 %v4089_v8, %v2159_v23  ;;  %v2125_v60 = vadd.f32 %v4081_v10, %v2087_v63  ;;  %v2051_v37 = vmul.f32 %v3063_v0, %v3842_v30  ;;  %p3162_p4 = pnand %p3161_p5, %p3155_p6 }
 0x3fa   : > { %v4192_v56 = vrot.slane %v4608_v43, %v3554_v32  ;;  %v1994_v16 = vadd.f32 1e-05, %v1962_v3  ;;  %v1913_v42 = vpop.xlane.xlu0 %1912  ;;  %v2126_v31 = vadd.f32 %v4081_v10, %v2088_v58  ;;  %v2052_v45 = vmul.f32 %v3065_v33, %v3849_v57  ;;  %v1915_v7 = vpop.xlane.xlu1 %1914 }
 0x3fb   : > { %3074 = vrsqrt.f32 %v1993_v6  ;;  %v1963_v24 = vmul.f32 0.0078125, %v1913_v42  ;;  %v2403_v43 = vadd.f32 %v2371_v26, %v4182_v14  ;;  %v2161_v46 = vadd.f32 %v4008_v41, %v2125_v60 }
 0x3fc   : > { %v2089_v8 = vmul.f32 %v4059_v22, %v2051_v37  ;;  %3076 = vrsqrt.f32 %v1994_v16  ;;  %v3067_v23 = vpop.eup %3066  ;;  %v2162_v30 = vadd.f32 %v2126_v31, %v4018_v34  ;;  %v2090_v63 = vmul.f32 %v4059_v22, %v2052_v45 }
 0x3fd   : > { %v1995_v3 = vadd.f32 1e-05, %v1963_v24  ;;  %v1964_v0 = vmul.f32 0.0078125, %v1915_v7  ;;  %v3069_v58 = vpop.eup %3068  ;;  %2435 = vst [vmem:[%s4152_s13 + $0x8] sm:$0xff] %v2403_v43  ;;  %v2373_v57 = vadd.f32 %v4107_v38, %v2161_v46  ;;  %v2053_v33 = vmul.f32 %v3067_v23, %v3852_v13 }
 0x3fe   : > { %v2127_v6 = vadd.f32 %v4081_v10, %v2089_v8  ;;  %v1917_v26 = vpop.xlane.xlu0 %1916  ;;  %v4609_v41 = vcombine.high %v4065_v21, %v4065_v21  ;;  %v2374_v34 = vadd.f32 %v4110_v54, %v2162_v30  ;;  %v2128_v37 = vadd.f32 %v4081_v10, %v2090_v63  ;;  %v1919_v38 = vpop.xlane.xlu1 %1918 }
 0x3ff   : > { %v2054_v16 = vmul.f32 %v3069_v58, %v3859_v28  ;;  %3078 = vrsqrt.f32 %v1995_v3  ;;  %v2405_v46 = vadd.f32 %v2373_v57, %v4182_v14  ;;  %v2091_v42 = vmul.f32 %v4059_v22, %v2053_v33 }
 0x400   : > { %v4216_v60 = vrot.slane %v4609_v41, %v3554_v32  ;;  %v2163_v13 = vadd.f32 %v4016_v29, %v2127_v6  ;;  %v1996_v31 = vadd.f32 1e-05, %v1964_v0  ;;  %v3071_v21 = vpop.eup %3070  ;;  %v2406_v45 = vadd.f32 %v2374_v34, %v4117_v27 }
 0x401   : > { %v2164_v24 = vadd.f32 %v2128_v37, %v4026_v47  ;;  %v2092_v7 = vmul.f32 %v4059_v22, %v2054_v16  ;;  %v1965_v43 = vmul.f32 0.0078125, %v1917_v26  ;;  %v3073_v8 = vpop.eup %3072  ;;  %2437 = vst [vmem:[%s4152_s13 + $0x18] sm:$0xff] %v2405_v46  ;;  %v2129_v23 = vadd.f32 %v4081_v10, %v2091_v42 }
 0x402   : > { %v2375_v28 = vadd.f32 %v4110_v54, %v2163_v13  ;;  %v2055_v30 = vmul.f32 %v3071_v21, %v3862_v15  ;;  %3080 = vrsqrt.f32 %v1996_v31  ;;  %v1921_v29 = vpop.xlane.xlu0 %1920  ;;  %2438 = vst [vmem:[%s4152_s13 + $0x20] sm:$0xff] %v2406_v45  ;;  %v2056_v47 = vmul.f32 %v3073_v8, %v3869_v40  ;;  %v1923_v58 = vpop.xlane.xlu1 %1922 }
 0x403   : > { %v2376_v63 = vadd.f32 %v4148_v2, %v2164_v24  ;;  %v2130_v3 = vadd.f32 %v4081_v10, %v2092_v7  ;;  %v1997_v0 = vadd.f32 1e-05, %v1965_v43  ;;  %v2165_v54 = vadd.f32 %v4024_v18, %v2129_v23 }
 0x404   : > { %v2407_v57 = vadd.f32 %v2375_v28, %v4182_v14  ;;  %v2093_v6 = vmul.f32 %v4059_v22, %v2055_v30  ;;  %v1966_v15 = vmul.f32 0.0078125, %v1919_v38  ;;  %v2094_v34 = vmul.f32 %v4059_v22, %v2056_v47 }
 0x405   : > { %v3075_v33 = vpop.eup %3074  ;;  %v2408_v26 = vadd.f32 %v2376_v63, %v4117_v27  ;;  %v2166_v41 = vadd.f32 %v2130_v3, %v4034_v55  ;;  %3082 = vrsqrt.f32 %v1997_v0  ;;  %v2377_v40 = vadd.f32 %v4148_v2, %v2165_v54 }
 0x406   : > { %v3077_v37 = vpop.eup %3076  ;;  %2439 = vst [vmem:[%s4152_s13 + $0x28] sm:$0xff] %v2407_v57  ;;  %v2131_v16 = vadd.f32 %v4081_v10, %v2093_v6  ;;  %v2057_v46 = vmul.f32 %v3075_v33, %v3872_v17  ;;  %v1998_v18 = vadd.f32 1e-05, %v1966_v15  ;;  %v1925_v13 = vpop.xlane.xlu0 %1924  ;;  %v2132_v42 = vadd.f32 %v4081_v10, %v2094_v34 }
 0x407   : > { %2440 = vst [vmem:[%s4152_s13 + $0x30] sm:$0xff] %v2408_v26  ;;  %v2378_v38 = vadd.f32 %v4121_v44, %v2166_v41  ;;  %v2058_v55 = vmul.f32 %v3077_v37, %v3879_v51  ;;  %v1967_v31 = vmul.f32 0.0078125, %v1921_v29  ;;  %v1927_v21 = vpop.xlane.xlu1 %1926  ;;  %v2409_v45 = vadd.f32 %v2377_v40, %v4182_v14 }
 0x408   : > { %v2167_v2 = vadd.f32 %v4032_v39, %v2131_v16  ;;  %v2095_v24 = vmul.f32 %v4059_v22, %v2057_v46  ;;  %3084 = vrsqrt.f32 %v1998_v18  ;;  %v2168_v43 = vadd.f32 %v2132_v42, %v4047_v19 }
 0x409   : > { %v3079_v17 = vpop.eup %3078  ;;  %v2410_v7 = vadd.f32 %v2378_v38, %v4117_v27  ;;  %v2096_v8 = vmul.f32 %v4059_v22, %v2058_v55  ;;  %v1999_v28 = vadd.f32 1e-05, %v1967_v31  ;;  %2441 = vst [vmem:[%s4152_s13 + $0x38] sm:$0xff] %v2409_v45  ;;  %v1968_v29 = vmul.f32 0.0078125, %v1923_v58 }
 0x40a   : > { %v2379_v51 = vadd.f32 %v4121_v44, %v2167_v2  ;;  %v2133_v23 = vadd.f32 %v4081_v10, %v2095_v24  ;;  %v2059_v30 = vmul.f32 %v3079_v17, %v3882_v20  ;;  %v1929_v39 = vpop.xlane.xlu0 %1928  ;;  %v2380_v63 = vadd.f32 %v4158_v62, %v2168_v43 }
 0x40b   : > { %2442 = vst [vmem:[%s4152_s13 + $0x40] sm:$0xff] %v2410_v7  ;;  %v2134_v3 = vadd.f32 %v4081_v10, %v2096_v8  ;;  %3086 = vrsqrt.f32 %v1999_v28  ;;  %v1969_v19 = vmul.f32 0.0078125, %v1925_v13  ;;  %v1931_v47 = vpop.xlane.xlu1 %1930  ;;  %v2000_v20 = vadd.f32 1e-05, %v1968_v29 }
 0x40c   : > { %v3081_v0 = vpop.eup %3080  ;;  %v2411_v57 = vadd.f32 %v2379_v51, %v4182_v14  ;;  %v2169_v44 = vadd.f32 %v4044_v4, %v2133_v23  ;;  %v2097_v54 = vmul.f32 %v4059_v22, %v2059_v30  ;;  %v2412_v58 = vadd.f32 %v2380_v63, %v4117_v27 }
 0x40d   : > { %v2170_v6 = vadd.f32 %v2134_v3, %v4112_v52  ;;  %v2060_v15 = vmul.f32 %v3081_v0, %v3889_v59  ;;  %v2001_v33 = vadd.f32 1e-05, %v1969_v19  ;;  %3088 = vrsqrt.f32 %v2000_v20 }
 0x40e   : > { %2443 = vst [vmem:[%s4152_s13 + $0x48] sm:$0xff] %v2411_v57  ;;  %v2381_v26 = vadd.f32 %v4158_v62, %v2169_v44  ;;  %v2135_v41 = vadd.f32 %v4081_v10, %v2097_v54  ;;  %v1970_v34 = vmul.f32 0.0078125, %v1927_v21  ;;  %v1933_v37 = vpop.xlane.xlu0 %1932  ;;  %2444 = vst [vmem:[%s4152_s13 + $0x50] sm:$0xff] %v2412_v58  ;;  %v1971_v52 = vmul.f32 0.0078125, %v1929_v39 }
 0x40f   : > { %v3083_v40 = vpop.eup %3082  ;;  %v2382_v4 = vadd.f32 %v4166_v1, %v2170_v6  ;;  %v2098_v16 = vmul.f32 %v4059_v22, %v2060_v15  ;;  %3090 = vrsqrt.f32 %v2001_v33  ;;  %v1935_v46 = vpop.xlane.xlu1 %1934  ;;  %v1972_v31 = vmul.f32 0.0078125, %v1931_v47 }
 0x410   : > { %v2413_v59 = vadd.f32 %v2381_v26, %v4182_v14  ;;  %v2171_v62 = vadd.f32 %v4101_v9, %v2135_v41  ;;  %v2061_v18 = vmul.f32 %v3083_v40, %v3892_v25  ;;  %v2002_v13 = vadd.f32 1e-05, %v1970_v34  ;;  %v4610_v34 = vld [vmem:[#allocation16_spill] sm:$0xff] }
 0x411   : > { %v2414_v38 = vadd.f32 %v2382_v4, %v4117_v27  ;;  %v2136_v42 = vadd.f32 %v4081_v10, %v2098_v16  ;;  %v2003_v55 = vadd.f32 1e-05, %v1971_v52  ;;  %v1973_v24 = vmul.f32 0.0078125, %v1933_v37  ;;  %v4611_v4 = vld [vmem:[#allocation44_spill] sm:$0xff] }
 0x412   : > { %v3085_v21 = vpop.eup %3084  ;;  %2445 = vst [vmem:[%s4152_s13 + $0x58] sm:$0xff] %v2413_v59  ;;  %v2383_v45 = vadd.f32 %v4166_v1, %v2171_v62  ;;  %v2099_v2 = vmul.f32 %v4059_v22, %v2061_v18  ;;  %3092 = vrsqrt.f32 %v2002_v13  ;;  %v1937_v17 = vpop.xlane.xlu0 %1936  ;;  %v2004_v7 = vadd.f32 1e-05, %v1972_v31  ;;  %v4613_v31 = vld [vmem:[#allocation17_spill] sm:$0xff] }
 0x413   : > { %2446 = vst [vmem:[%s4152_s13 + $0x60] sm:$0xff] %v2414_v38  ;;  %v2172_v25 = vadd.f32 %v2136_v42, %v4170_v48  ;;  %v2062_v9 = vmul.f32 %v3085_v21, %v3899_v35  ;;  %3094 = vrsqrt.f32 %v2003_v55  ;;  %v1939_v43 = vpop.xlane.xlu1 %1938  ;;  %v2005_v51 = vadd.f32 1e-05, %v1973_v24 }
 0x414   : > { %v2415_v8 = vadd.f32 %v2383_v45, %v4182_v14  ;;  %v2137_v28 = vadd.f32 %v4081_v10, %v2099_v2  ;;  %v1974_v1 = vmul.f32 0.0078125, %v1935_v46  ;;  %3096 = vrsqrt.f32 %v2004_v7 }
 0x415   : > { %v3087_v23 = vpop.eup %3086  ;;  %v2384_v30 = vadd.f32 %v4173_v53, %v2172_v25  ;;  %v2100_v29 = vmul.f32 %v4059_v22, %v2062_v9  ;;  %v1975_v39 = vmul.f32 0.0078125, %v1937_v17  ;;  %3098 = vrsqrt.f32 %v2005_v51  ;;  %v4614_v17 = vld [vmem:[#allocation18_spill] sm:$0xff] }
 0x416   : > { %2447 = vst [vmem:[%s4152_s13 + $0x68] sm:$0xff] %v2415_v8  ;;  %v2173_v48 = vadd.f32 %v4160_v5, %v2137_v28  ;;  %v2063_v35 = vmul.f32 %v3087_v23, %v3902_v36  ;;  %v2006_v63 = vadd.f32 1e-05, %v1974_v1  ;;  %v1941_v3 = vpop.xlane.xlu0 %1940  ;;  %v1976_v57 = vmul.f32 0.0078125, %v1939_v43  ;;  %v4615_v43 = vld [vmem:[#allocation35_spill] sm:$0xff] }
 0x417   : > { %v2416_v19 = vadd.f32 %v2384_v30, %v4117_v27  ;;  %v2138_v47 = vadd.f32 %v4081_v10, %v2100_v29  ;;  %v2007_v0 = vadd.f32 1e-05, %v1975_v39  ;;  %v1943_v44 = vpop.xlane.xlu1 %1942  ;;  %v3089_v54 = vpop.eup %3088  ;;  %v1977_v5 = vmul.f32 0.0078125, %v1941_v3  ;;  %v4616_v30 = vld [vmem:[#allocation34_spill] sm:$0xff] }
 0x418   : > { %v2385_v20 = vadd.f32 %v4173_v53, %v2173_v48  ;;  %v2101_v58 = vmul.f32 %v4059_v22, %v2063_v35  ;;  %3100 = vrsqrt.f32 %v2006_v63  ;;  %v2064_v15 = vmul.f32 %v3089_v54, %v3909_v50  ;;  %v4617_v48 = vld [vmem:[#allocation19_spill] sm:$0xff]  ;;  %v4618_v63 = vld [vmem:[#allocation46_spill] sm:$0xff] }
 0x419   : > { %v3091_v6 = vpop.eup %3090  ;;  %2448 = vst [vmem:[%s4152_s13 + $0x70] sm:$0xff] %v2416_v19  ;;  %v2174_v36 = vadd.f32 %v2138_v47, %v4006_v61  ;;  %3102 = vrsqrt.f32 %v2007_v0  ;;  %v2008_v33 = vadd.f32 1e-05, %v1976_v57  ;;  %v2009_v53 = vadd.f32 1e-05, %v1977_v5  ;;  %v4612_v61 = vld [vmem:[#allocation33_spill] sm:$0xff] }
 0x41a   : > { %v2417_v26 = vadd.f32 %v2385_v20, %v4182_v14  ;;  %v2139_v41 = vadd.f32 %v4081_v10, %v2101_v58  ;;  %v2065_v37 = vmul.f32 %v3091_v6, %v4610_v34  ;;  %v1945_v40 = vpop.xlane.xlu0 %1944  ;;  %v2102_v52 = vmul.f32 %v4059_v22, %v2064_v15  ;;  %v4619_v47 = vld [vmem:[#allocation20_spill] sm:$0xff] }
 0x41b   : > { %v2386_v16 = vadd.f32 %v4611_v4, %v2174_v36  ;;  %3104 = vrsqrt.f32 %v2008_v33  ;;  %v1978_v46 = vmul.f32 0.0078125, %v1943_v44  ;;  %v1979_v18 = vmul.f32 0.0078125, %v1945_v40  ;;  %v1947_v13 = vpop.xlane.xlu1 %1946  ;;  %v4620_v36 = vld [vmem:[#allocation37_spill] sm:$0xff] }
 0x41c   : > { %v3093_v59 = vpop.eup %3092  ;;  %2449 = vst [vmem:[%s4152_s13 + $0x78] sm:$0xff] %v2417_v26  ;;  %v2175_v50 = vadd.f32 %v4612_v61, %v2139_v41  ;;  %v2103_v62 = vmul.f32 %v4059_v22, %v2065_v37  ;;  %3106 = vrsqrt.f32 %v2009_v53  ;;  %v2140_v55 = vadd.f32 %v4081_v10, %v2102_v52  ;;  %v4621_v26 = vld [vmem:[#allocation21_spill] sm:$0xff]  ;;  %v4622_v37 = vld [vmem:[#allocation36_spill] sm:$0xff] }
 0x41d   : > { %v3095_v38 = vpop.eup %3094  ;;  %v2418_v42 = vadd.f32 %v2386_v16, %v4117_v27  ;;  %v2066_v21 = vmul.f32 %v3093_v59, %v4613_v31  ;;  %v2010_v45 = vadd.f32 1e-05, %v1978_v46  ;;  %v2011_v9 = vadd.f32 1e-05, %v1979_v18  ;;  %v4624_v46 = vld [vmem:[#allocation48_spill] sm:$0xff] }
 0x41e   : > { %v2387_v2 = vadd.f32 %v4611_v4, %v2175_v50  ;;  %v2141_v24 = vadd.f32 %v4081_v10, %v2103_v62  ;;  %v2067_v25 = vmul.f32 %v3095_v38, %v4614_v17  ;;  %v3097_v7 = vpop.eup %3096  ;;  %v2176_v8 = vadd.f32 %v2140_v55, %v4615_v43  ;;  %v4623_v4 = vld [vmem:[#allocation22_spill] sm:$0xff]  ;;  %v4626_v55 = vld [vmem:[#allocation23_spill] sm:$0xff] }
 0x41f   : > { %2450 = vst [vmem:[%s4152_s13 + $0x80] sm:$0xff] %v2418_v42  ;;  %v2104_v28 = vmul.f32 %v4059_v22, %v2066_v21  ;;  %3108 = vrsqrt.f32 %v2010_v45  ;;  %v1980_v51 = vmul.f32 0.0078125, %v1947_v13  ;;  %v3099_v1 = vpop.eup %3098  ;;  %v2068_v35 = vmul.f32 %v3097_v7, %v4617_v48  ;;  %v4625_v13 = vld [vmem:[#allocation39_spill] sm:$0xff]  ;;  %v1949_v21 = vpop.xlane.xlu0 %1948 }
 0x420   : > { %v2419_v23 = vadd.f32 %v2387_v2, %v4182_v14  ;;  %v2177_v29 = vadd.f32 %v4616_v30, %v2141_v24  ;;  %v2105_v39 = vmul.f32 %v4059_v22, %v2067_v25  ;;  %v2388_v3 = vadd.f32 %v4618_v63, %v2176_v8  ;;  %v4627_v2 = vld [vmem:[#allocation38_spill] sm:$0xff]  ;;  %v4628_v25 = vld [vmem:[#allocation24_spill] sm:$0xff] }
 0x421   : > { %v2142_v19 = vadd.f32 %v4081_v10, %v2104_v28  ;;  %v2069_v0 = vmul.f32 %v3099_v1, %v4619_v47  ;;  %3110 = vrsqrt.f32 %v2011_v9  ;;  %v2106_v20 = vmul.f32 %v4059_v22, %v2068_v35  ;;  %v4630_v35 = vld [vmem:[#allocation40_spill] sm:$0xff] }
 0x422   : > { %v3101_v57 = vpop.eup %3100  ;;  %2451 = vst [vmem:[%s4152_s13 + $0x88] sm:$0xff] %v2419_v23  ;;  %v2389_v44 = vadd.f32 %v4618_v63, %v2177_v29  ;;  %v2143_v54 = vadd.f32 %v4081_v10, %v2105_v39  ;;  %v2012_v58 = vadd.f32 1e-05, %v1980_v51  ;;  %v2420_v6 = vadd.f32 %v2388_v3, %v4117_v27  ;;  %v4629_v23 = vld [vmem:[#allocation41_spill] sm:$0xff] }
 0x423   : > { %v3103_v5 = vpop.eup %3102  ;;  %v2178_v15 = vadd.f32 %v2142_v19, %v4620_v36  ;;  %v2107_v33 = vmul.f32 %v4059_v22, %v2069_v0  ;;  %v2070_v41 = vmul.f32 %v3101_v57, %v4621_v26  ;;  %v2144_v40 = vadd.f32 %v4081_v10, %v2106_v20  ;;  %v4631_v19 = vld [vmem:[#allocation25_spill] sm:$0xff]  ;;  %v670_v0 = vpop.xlane.xlu1 %669 }
 0x424   : > { %v2421_v34 = vadd.f32 %v2389_v44, %v4182_v14  ;;  %v2179_v53 = vadd.f32 %v4622_v37, %v2143_v54  ;;  %v2071_v16 = vmul.f32 %v3103_v5, %v4623_v4  ;;  %2452 = vst [vmem:[%s4152_s13 + $0x90] sm:$0xff] %v2420_v6  ;;  %3112 = vrsqrt.f32 %v2012_v58  ;;  %v4633_v6 = vld [vmem:[#allocation43_spill] sm:$0xff]  ;;  %v4635_v37 = vld [vmem:[#allocation42_spill] sm:$0xff] }
 0x425   : > { %v3105_v52 = vpop.eup %3104  ;;  %v2390_v59 = vadd.f32 %v4624_v46, %v2178_v15  ;;  %v2145_v61 = vadd.f32 %v4081_v10, %v2107_v33  ;;  %v2108_v50 = vmul.f32 %v4059_v22, %v2070_v41  ;;  %v2180_v38 = vadd.f32 %v2144_v40, %v4625_v13  ;;  %v4634_v33 = vld [vmem:[#allocation26_spill] sm:$0xff]  ;;  %v673_v41 = vpop.xlane.xlu0 %672 }
 0x426   : > { %v3107_v62 = vpop.eup %3106  ;;  %2453 = vst [vmem:[%s4152_s13 + $0x98] sm:$0xff] %v2421_v34  ;;  %v2391_v18 = vadd.f32 %v4624_v46, %v2179_v53  ;;  %v2109_v42 = vmul.f32 %v4059_v22, %v2071_v16  ;;  %v2072_v31 = vmul.f32 %v3105_v52, %v4626_v55  ;;  %v1981_v39 = vmul.f32 0.0078125, %v1949_v21 }
 0x427   : > { %v2422_v45 = vadd.f32 %v2390_v59, %v4117_v27  ;;  %v2181_v24 = vadd.f32 %v4627_v2, %v2145_v61  ;;  %v2146_v17 = vadd.f32 %v4081_v10, %v2108_v50  ;;  %v2073_v9 = vmul.f32 %v3107_v62, %v4628_v25  ;;  %v4638_v2 = vld [vmem:[#allocation45_spill] sm:$0xff] }
 0x428   : > { %v2423_v7 = vadd.f32 %v2391_v18, %v4182_v14  ;;  %v2392_v43 = vadd.f32 %v4192_v56, %v2180_v38  ;;  %v2147_v8 = vadd.f32 %v4081_v10, %v2109_v42  ;;  %v2110_v28 = vmul.f32 %v4059_v22, %v2072_v31  ;;  %v4636_v38 = vld [vmem:[#allocation47_spill] sm:$0xff] }
 0x429   : > { %v3109_v51 = vpop.eup %3108  ;;  %2454 = vst [vmem:[%s4152_s13 + $0xa0] sm:$0xff] %v2422_v45  ;;  %v2393_v1 = vadd.f32 %v4192_v56, %v2181_v24  ;;  %v2182_v30 = vadd.f32 %v2146_v17, %v4629_v23  ;;  %v2111_v29 = vmul.f32 %v4059_v22, %v2073_v9  ;;  %v4632_v56 = vld [vmem:[#allocation49_spill] sm:$0xff]  ;;  %v2013_v58 = vadd.f32 1e-05, %v1981_v39  ;;  %v4637_v31 = vld [vmem:[#allocation27_spill] sm:$0xff] }
 0x42a   : > { %2455 = vst [vmem:[%s4152_s13 + $0xa8] sm:$0xff] %v2423_v7  ;;  %v2424_v48 = vadd.f32 %v2392_v43, %v4117_v27  ;;  %v2183_v63 = vadd.f32 %v4630_v35, %v2147_v8  ;;  %v2148_v3 = vadd.f32 %v4081_v10, %v2110_v28  ;;  %v2074_v47 = vmul.f32 %v3109_v51, %v4631_v19  ;;  %v4640_v35 = vld [vmem:[#allocation15_spill] sm:$0xff] }
 0x42b   : > { %v3111_v57 = vpop.eup %3110  ;;  %v2425_v44 = vadd.f32 %v2393_v1, %v4182_v14  ;;  %v2394_v54 = vadd.f32 %v4632_v56, %v2182_v30  ;;  %v2149_v20 = vadd.f32 %v4081_v10, %v2111_v29  ;;  %3114 = vrsqrt.f32 %v2013_v58  ;;  %v649_v1 = vld [vmem:[%s4517_s7] sm:$0x3]  ;;  %v4639_v30 = vld [vmem:[#allocation28_spill] sm:$0xff] }
 0x42c   : > { %2456 = vst [vmem:[%s4152_s13 + $0xb0] sm:$0xff] %v2424_v48  ;;  %v2395_v5 = vadd.f32 %v4632_v56, %v2183_v63  ;;  %v2184_v36 = vadd.f32 %v2148_v3, %v4633_v6  ;;  %v2112_v15 = vmul.f32 %v4059_v22, %v2074_v47  ;;  %v2075_v26 = vmul.f32 %v3111_v57, %v4634_v33  ;;  %v4641_v57 = vld [vmem:[#allocation31_spill] sm:$0xff]  ;;  %v4644_v6 = vld [vmem:[#allocation29_spill] sm:$0xff] }
 0x42d   : > { %2457 = vst [vmem:[%s4152_s13 + $0xb8] sm:$0xff] %v2425_v44  ;;  %v2426_v34 = vadd.f32 %v2394_v54, %v4117_v27  ;;  %v2185_v53 = vadd.f32 %v4635_v37, %v2149_v20  ;;  %v674_v40 = vmul.f32 0.00390625, %v670_v0  ;;  %v2289_v61 = vcombine.high %v3511_v12, %v3511_v12  ;;  %v4643_v54 = vld [vmem:[#allocation50_spill] sm:$0xff] }
 0x42e   : > { %v2427_v4 = vadd.f32 %v2395_v5, %v4182_v14  ;;  %v2396_v16 = vadd.f32 %v4196_v11, %v2184_v36  ;;  %v2150_v52 = vadd.f32 %v4081_v10, %v2112_v15  ;;  %v2113_v46 = vmul.f32 %v4059_v22, %v2075_v26  ;;  %v3113_v59 = vpop.eup %3112 }
 0x42f   : > { %2458 = vst [vmem:[%s4152_s13 + $0xc0] sm:$0xff] %v2426_v34  ;;  %v2397_v50 = vadd.f32 %v4196_v11, %v2185_v53  ;;  %v676_v62 = vadd.f32 1e-05, %v674_v40  ;;  %v675_v18 = vmul.f32 0.00390625, %v673_v41  ;;  %v2076_v21 = vmul.f32 %v3113_v59, %v4637_v31 }
 0x430   : > { %2459 = vst [vmem:[%s4152_s13 + $0xc8] sm:$0xff] %v2427_v4  ;;  %v2428_v13 = vadd.f32 %v2396_v16, %v4117_v27  ;;  %v2186_v42 = vadd.f32 %v2150_v52, %v4636_v38  ;;  %v2151_v55 = vadd.f32 %v4081_v10, %v2113_v46  ;;  %v2353_v7 = vrot.slane %v2289_v61, %v3554_v32 }
 0x431   : > { %v2429_v45 = vadd.f32 %v2397_v50, %v4182_v14  ;;  %3116 = vrsqrt.f32 %v676_v62  ;;  %v677_v12 = vadd.f32 1e-05, %v675_v18  ;;  %v2114_v17 = vmul.f32 %v4059_v22, %v2076_v21 }
 0x432   : > { %2460 = vst [vmem:[%s4152_s13 + $0xd0] sm:$0xff] %v2428_v13  ;;  %v2398_v11 = vadd.f32 %v4216_v60, %v2186_v42  ;;  %v2187_v24 = vadd.f32 %v4638_v2, %v2151_v55  ;;  %v692_v63 = vrot.slane %v649_v1, %v4640_v35 }
 0x433   : > { %2461 = vst [vmem:[%s4152_s13 + $0xd8] sm:$0xff] %v2429_v45  ;;  %3118 = vrsqrt.f32 %v677_v12  ;;  %v2152_v43 = vadd.f32 %v4081_v10, %v2114_v17 }
 0x434   : > { %v2430_v25 = vadd.f32 %v2398_v11, %v4117_v27  ;;  %v2399_v9 = vadd.f32 %v4216_v60, %v2187_v24  ;;  %v650_v60 = vld [vmem:[%s4518_s8] sm:$0x3] }
 0x435   : > { %v2188_v28 = vadd.f32 %v2152_v43, %v4186_v49  ;;  %v3115_v51 = vpop.eup %3114  ;;  %v688_v49 = vrot.slane %v649_v1, %v3554_v32  ;;  %v707_v19 = vrot.slane %v650_v60, %v4640_v35  ;;  %v703_v0 = vrot.slane %v650_v60, %v3554_v32 }
 0x436   : > { %2462 = vst [vmem:[%s4152_s13 + $0xe0] sm:$0xff] %v2430_v25  ;;  %v2431_v8 = vadd.f32 %v2399_v9, %v4182_v14  ;;  %v2077_v29 = vmul.f32 %v3115_v51, %v4639_v30 }
 0x437   : > { %v2400_v23 = vadd.f32 %v2353_v7, %v2188_v28 }
 0x438   : > { %2463 = vst [vmem:[%s4152_s13 + $0xe8] sm:$0xff] %v2431_v8  ;;  %v2115_v48 = vmul.f32 %v4059_v22, %v2077_v29 }
 0x439   : > { %v2432_v39 = vadd.f32 %v2400_v23, %v4117_v27  ;;  %v4642_v27 = vld [vmem:[#allocation32_spill] sm:$0xff] }
 0x43a   : > { %v2153_v47 = vadd.f32 %v4081_v10, %v2115_v48  ;;  %v4645_v10 = vld [vmem:[#allocation30_spill] sm:$0xff] }
 0x43b   : > { %v3117_v3 = vpop.eup %3116  ;;  %2464 = vst [vmem:[%s4152_s13 + $0xf0] sm:$0xff] %v2432_v39 }
 0x43c   : > { %v680_v44 = vmul.f32 %v3117_v3, %v4641_v57  ;;  %v681_v56 = vmul.f32 %v3117_v3, %v4642_v27  ;;  %v2189_v20 = vadd.f32 %v4643_v54, %v2153_v47 }
 0x43d   : > { %v3119_v22 = vpop.eup %3118 }
 0x43e   : > { %v695_v58 = vmul.f32 %v688_v49, %v680_v44  ;;  %v696_v5 = vmul.f32 %v692_v63, %v681_v56  ;;  %v682_v36 = vmul.f32 %v3119_v22, %v4644_v6  ;;  %v683_v15 = vmul.f32 %v3119_v22, %v4645_v10 }
 0x43f   : > { %v2401_v32 = vadd.f32 %v2353_v7, %v2189_v20 }
 0x440   : > { %v710_v33 = vadd.f32 %v703_v0, %v695_v58  ;;  %v711_v26 = vadd.f32 %v707_v19, %v696_v5  ;;  %v697_v41 = vmul.f32 %v688_v49, %v682_v36  ;;  %v698_v34 = vmul.f32 %v692_v63, %v683_v15 }
 0x441   : > { %v2433_v37 = vadd.f32 %v2401_v32, %v4182_v14 }
 0x442   : > { %714 = vst [vmem:[%s600_s20] sm:$0xff] %v710_v33  ;;  %715 = vst [vmem:[%s600_s20 + $0x8] sm:$0xff] %v711_v26  ;;  %v712_v53 = vadd.f32 %v703_v0, %v697_v41  ;;  %v713_v40 = vadd.f32 %v707_v19, %v698_v34 }
 0x443   : > { %2465 = vst [vmem:[%s4152_s13 + $0xf8] sm:$0xff] %v2433_v37 }
 0x444   : > { %716 = vst [vmem:[%s600_s20 + $0x10] sm:$0xff] %v712_v53  ;;  %717 = vst [vmem:[%s600_s20 + $0x18] sm:$0xff] %v713_v40 }
 0x445   : > { %3165 = shalt.err (!%p3162_p4)
}
 0x446   : > { %s3166_s13 = scalar_lea.hbm %s4424_s29, 4096  ;;  %s3170_s0 = scalar_lea.hbm %s4522_s12, 8192 }
 0x447   : > { %p3167_p7 = scmp.ne.s32.totalorder %s4424_s29, %s3166_s13  ;;  %p3171_p1 = scmp.lt.u32.totalorder %s4424_s29, %s4522_s12 }
 0x448   : > { %p3172_p3 = scmp.lt.u32.totalorder %s3170_s0, %s3166_s13  ;;  %p3174_p8 = scmp.lt.u32.totalorder %s3166_s13, %s4424_s29 }
 0x449   : > { %p3168_p10 = pnand %p3167_p7, %p4647_p11 }
 0x44a   : > { %p3173_p9 = por %p3172_p3, %p3171_p1 }
 0x44b   : > { %p3169_p12 = pneg %p3168_p10 }
 0x44c   : > { %p3175_p0 = por %p3174_p8, %p3173_p9 }
 0x44e   : > { %p3176_p6 = pnand %p3175_p0, %p3169_p12 }
 0x450   : > { %3179 = shalt.err (!%p3176_p6)
}
 0x451   : > { %s3283_s2 = smov 128   ;;  %s3284_s18 = smov 8  }
 0x452   : > { %2894 = dma.vmem_to_hbm [thread:$0]  (%p4647_p11), %s4428_s16, 4096, %s4424_s29, %s2467_s22, %s3283_s2, %s3283_s2, %s3284_s18  }
 0x453   : > { %s2472_s17 = scalar_lea.sflag [#allocation7], %s3470_s15  ;;  %s3180_s19 = scalar_lea.vmem %s4436_s14, 512 }
 0x454   : > { %p3181_p13 = scmp.ne.s32.totalorder %s4436_s14, %s3180_s19  ;;  %s3285_s13 = smov [#allocation6]  }
 0x455   : > { %s3184_s20 = sshll.u32 %s3285_s13, 4  ;;  %s3185_s20 = int_to_ptr.vmem [resolvable:$false] %s3184_s20 }
 0x456   : > { %p3182_p2 = pnand %p3181_p13, %p4647_p11  ;;  %s3186_s0 = scalar_lea.vmem %s3185_s20, 1024 }
 0x457   : > { %p3187_p4 = scmp.lt.s32.totalorder %s4436_s14, %s3185_s20  ;;  %p3188_p7 = scmp.lt.s32.totalorder %s3186_s0, %s3180_s19 }
 0x458   : > { %p3183_p5 = pneg %p3182_p2 }
 0x459   : > { %p3189_p10 = por %p3188_p7, %p3187_p4 }
 0x45b   : > { %p3190_p12 = pnand %p3189_p10, %p3183_p5 }
 0x45d   : > { %3193 = shalt.err (!%p3190_p12)
}
 0x45e   : > { %s3194_s16 = scalar_lea.hbm %s4434_s25, 512  ;;  %s3198_s28 = scalar_lea.hbm %s4646_s24, 1024 }
 0x45f   : > { %p3195_p1 = scmp.ne.s32.totalorder %s4434_s25, %s3194_s16  ;;  %p3199_p8 = scmp.lt.u32.totalorder %s4434_s25, %s4646_s24 }
 0x460   : > { %p3200_p0 = scmp.lt.u32.totalorder %s3198_s28, %s3194_s16  ;;  %p3202_p13 = scmp.lt.u32.totalorder %s3194_s16, %s4434_s25 }
 0x461   : > { %p3196_p3 = pnand %p3195_p1, %p4647_p11 }
 0x462   : > { %p3201_p6 = por %p3200_p0, %p3199_p8 }
 0x463   : > { %p3197_p9 = pneg %p3196_p3 }
 0x464   : > { %p3203_p2 = por %p3202_p13, %p3201_p6 }
 0x466   : > { %p3204_p5 = pnand %p3203_p2, %p3197_p9 }
 0x468   : > { %3207 = shalt.err (!%p3204_p5)
}
 0x469   : > { %s3286_s18 = smov 256   ;;  %s3287_s19 = smov 16  }
 0x46a   : > { %2895 = dma.vmem_to_hbm [thread:$0]  (%p4647_p11), %s4436_s14, 512, %s4434_s25, %s2472_s17, %s3286_s18, %s3286_s18, %s3287_s19  }
 0x46b PF: > { %s4648_s13 = sld [smem:[#allocation11_spill]]  ;;  %p4649_p4 = scmp.ne.s32.totalorder %s4564_s23, 0 }
 0x46c   : > { %p4650_p7 = scmp.ge.s32.totalorder %s3266_s30, 2 }
 0x46e   : > { %p2903_p10 = pnand %p4650_p7, %p4649_p4 }
 0x471   : > { %s2522_s20 = sand.u32 1, %s4648_s13  }
 0x472   : > { %s2523_s0 = scalar_lea.sflag [#allocation4], %s2522_s20 }
 0x473   : > { %3237 = dma.done.wait (!%p2903_p10), %s2523_s0, 4096  }
 0x474   : > { %3239 = vsyncadd (!%p2903_p10), %s2523_s0, 4294963200  ;;  %s2532_s16 = scalar_lea.sflag [#allocation7], %s2522_s20 }
 0x475   : > { %3241 = dma.done.wait (!%p2903_p10), %s2532_s16, 512  }
 0x476   : > { %3243 = vsyncadd (!%p2903_p10), %s2532_s16, 4294966784  ;;  %s33_s30 = sadd.s32 1, %s3266_s30   ;;  %s4651_s21 = sld [smem:[#allocation14_spill]] }
 0x477   : > { %p30_p12 = scmp.ge.s32.totalorder %s33_s30, 4   ;;  %s4652_s28 = sld [smem:[#allocation12_spill]] }
 0x478   : > { %s4653_s29 = sld [smem:[#allocation13_spill]]  ;;  %s4654_s25 = smov %s3250_s26 }
 0x479   : > { %s4655_s26 = smov %s3254_s27  ;;  %32 = sbr.rel (!%p30_p12) target bundleno = 13 (0xd), region = 145 }
 0x47c   : > { %s4656_s27 = smov %s4651_s21 }
 0x480   :  { %2537 = vsyncpa [#allocation3], 1 }
 0x481   :  { %2539 = vsyncpa [#allocation3 + $0x1], 1 }
 0x482   :  { %2540 = vsyncpa [#allocation4], 1 }
 0x483   :  { %2542 = vsyncpa [#allocation4 + $0x1], 1 }
 0x484   :  { %2543 = vsyncpa [#allocation7], 1 }
 0x485   :  { %2545 = vsyncpa [#allocation7 + $0x1], 1 }

</bundles_post_ra>
